<compile_context>
chip_gen: v7x
topology: tpu7x:2x2x1
jax: 0.10.0
libtpu: 0.0.40
codegen_flags: <defaults>
</compile_context>

<pallas_src>
import functools

import jax
import jax.numpy as jnp
from jax import lax
from jax.experimental import pallas as pl
from jax.experimental.pallas import tpu as pltpu


LN_EPS = 1e-5


def _layer_norm(x, gamma, beta):
    mu = jnp.mean(x, axis=-1, keepdims=True)
    var = jnp.mean((x - mu) ** 2, axis=-1, keepdims=True)
    return (x - mu) * lax.rsqrt(var + LN_EPS) * gamma + beta


def transformer_block_kernel(
    x_ref,            # (Bb, T, E)  f32
    wqkv_ref,         # (E, 3E)     bf16  [Wq*scale | Wk | Wv]
    wo_ref, bo_ref,   # (E, E) bf16, (1, E) f32
    w1_ref, b1_ref,   # (E, 4E) bf16, (1, 4E) f32
    w2_ref, b2_ref,   # (4E, E) bf16, (1, E) f32
    g1_ref, be1_ref,  # (1, E) f32  layer-norm 1 gamma/beta
    g2_ref, be2_ref,  # (1, E) f32  layer-norm 2 gamma/beta
    out_ref,          # (Bb, T, E)  f32
    *, num_heads,
):
    Bb, T, E = x_ref.shape
    Hs = E // num_heads

    x2d = x_ref[...].reshape(Bb * T, E)                      # f32

    # ---- LayerNorm 1 (f32 elementwise) ----
    h = _layer_norm(x2d, g1_ref[...], be1_ref[...])

    # ---- Fused QKV projection: one lane-dense MXU matmul.  The attention
    # scale is already folded into the Q columns of wqkv. ----
    qkv = jnp.dot(h.astype(jnp.bfloat16), wqkv_ref[...],
                  preferred_element_type=jnp.float32)        # (Bb*T, 3E) f32
    qkv = qkv.astype(jnp.bfloat16)                           # cast once, full width
    q = qkv[:, 0 * E:1 * E].reshape(Bb, T, E)
    k = qkv[:, 1 * E:2 * E].reshape(Bb, T, E)
    v = qkv[:, 2 * E:3 * E].reshape(Bb, T, E)

    # Causal mask built once as (1, T, T); broadcast over the batch tile.
    row = lax.broadcasted_iota(jnp.int32, (T, T), 0)
    col = lax.broadcasted_iota(jnp.int32, (T, T), 1)
    causal = (col <= row)[None, :, :]

    # ---- Multi-head causal self-attention (static head loop, batched over
    # the batch tile).  Head outputs are concatenated lane-dense so the output
    # projection below is a single K=E contraction. ----
    head_outs = []
    for hh in range(num_heads):                              # static, small H
        sl = slice(hh * Hs, (hh + 1) * Hs)
        qh, kh, vh = q[:, :, sl], k[:, :, sl], v[:, :, sl]   # bf16 slices
        s = jnp.einsum('bqd,bkd->bqk', qh, kh,
                       preferred_element_type=jnp.float32)   # scale pre-folded
        s = jnp.where(causal, s, -jnp.inf)
        m = jnp.max(s, axis=-1, keepdims=True)
        e = jnp.exp(s - m)
        denom = jnp.sum(e, axis=-1, keepdims=True)
        # NOTE: approx reciprocal on the EUP; within the 2e-2 tolerance used here.
        p = e * pl.reciprocal(denom, approx=True)
        oh = jnp.einsum('bqk,bkd->bqd', p.astype(jnp.bfloat16), vh,
                        preferred_element_type=jnp.float32)  # (Bb, T, Hs)
        head_outs.append(oh.astype(jnp.bfloat16))
    cat = jnp.concatenate(head_outs, axis=-1).reshape(Bb * T, E)   # bf16, lane-dense

    sa = jnp.dot(cat, wo_ref[...],
                 preferred_element_type=jnp.float32) + bo_ref[...]

    x1 = x2d + sa                                            # residual 1 (f32)

    # ---- LayerNorm 2 + FeedForward (bf16 matmuls, f32 elementwise) ----
    h2 = _layer_norm(x1, g2_ref[...], be2_ref[...])
    f = jnp.dot(h2.astype(jnp.bfloat16), w1_ref[...],
                preferred_element_type=jnp.float32) + b1_ref[...]
    f = jnp.maximum(f, 0.0)                                  # ReLU (f32)
    f = jnp.dot(f.astype(jnp.bfloat16), w2_ref[...],
                preferred_element_type=jnp.float32) + b2_ref[...]

    out_ref[...] = (x1 + f).reshape(Bb, T, E)                # residual 2


def fuse_params(params, *, num_heads):
    """One-time weight repacking (do NOT call per forward pass)."""
    E = params["wo"].shape[0]

    def fuse(w):                                   # (H, E, Hs) -> (E, H*Hs)
        return jnp.transpose(w, (1, 0, 2)).reshape(E, E)

    scale = E ** (-0.5)   # reference scales scores by C**-0.5 with C = num_embed
    wqkv = jnp.concatenate(
        [fuse(params["wq"]) * scale, fuse(params["wk"]), fuse(params["wv"])],
        axis=-1).astype(jnp.bfloat16)

    return {
        "wqkv": wqkv,
        "wo": params["wo"].astype(jnp.bfloat16), "bo": params["bo"],
        "w1": params["w1"].astype(jnp.bfloat16), "b1": params["b1"],
        "w2": params["w2"].astype(jnp.bfloat16), "b2": params["b2"],
        "g1": params["g1"], "be1": params["be1"],
        "g2": params["g2"], "be2": params["be2"],
    }


def _default_batch_tile(B, T):
    # Maximize matmul M = Bb*T.  Only split the grid in two (for the two
    # TensorCores on v7x / megacore) when each half still fills M >= 128;
    # otherwise keep one big tile (v5e has a single TC anyway).
    if B % 2 == 0 and (B // 2) * T >= 128:
        return B // 2
    return B


def transformer_block(x, fused, *, num_heads, batch_tile=None):
    B, T, E = x.shape
    Bb = batch_tile if batch_tile is not None else _default_batch_tile(B, T)
    assert B % Bb == 0

    def full(a):
        return pl.BlockSpec(a.shape, lambda b, _n=len(a.shape): (0,) * _n)

    in_specs = [
        pl.BlockSpec((Bb, T, E), lambda b: (b, 0, 0)),       # x (batch tile)
        full(fused["wqkv"]),
        full(fused["wo"]), full(fused["bo"]),
        full(fused["w1"]), full(fused["b1"]),
        full(fused["w2"]), full(fused["b2"]),
        full(fused["g1"]), full(fused["be1"]),
        full(fused["g2"]), full(fused["be2"]),
    ]
    out_spec = pl.BlockSpec((Bb, T, E), lambda b: (b, 0, 0))

    kernel = functools.partial(transformer_block_kernel, num_heads=num_heads)

    return pl.pallas_call(
        kernel,
        out_shape=jax.ShapeDtypeStruct((B, T, E), jnp.float32),
        grid_spec=pltpu.PrefetchScalarGridSpec(
            num_scalar_prefetch=0,
            grid=(B // Bb,),
            in_specs=in_specs,
            out_specs=out_spec,
        ),
        compiler_params=pltpu.CompilerParams(
            dimension_semantics=("parallel",),               # shards over 2 TCs on v7x
        ),
    )(
        x, fused["wqkv"], fused["wo"], fused["bo"], fused["w1"], fused["b1"],
        fused["w2"], fused["b2"], fused["g1"], fused["be1"],
        fused["g2"], fused["be2"],
    )


def make_params(key, num_embed, num_heads):
    head_size = num_embed // num_heads
    ks = jax.random.split(key, 8)
    s = 0.02
    return {
        # per-head Q/K/V projections (no bias), stored (in, out)
        "wq": s * jax.random.normal(ks[0], (num_heads, num_embed, head_size), jnp.float32),
        "wk": s * jax.random.normal(ks[1], (num_heads, num_embed, head_size), jnp.float32),
        "wv": s * jax.random.normal(ks[2], (num_heads, num_embed, head_size), jnp.float32),
        # output projection
        "wo": s * jax.random.normal(ks[3], (num_embed, num_embed), jnp.float32),
        "bo": s * jax.random.normal(ks[4], (1, num_embed), jnp.float32),
        # feed-forward
        "w1": s * jax.random.normal(ks[5], (num_embed, 4 * num_embed), jnp.float32),
        "b1": s * jax.random.normal(ks[6], (1, 4 * num_embed), jnp.float32),
        "w2": s * jax.random.normal(ks[7], (4 * num_embed, num_embed), jnp.float32),
        "b2": jnp.zeros((1, num_embed), jnp.float32),
        # layer norms
        "g1": jnp.ones((1, num_embed), jnp.float32),
        "be1": jnp.zeros((1, num_embed), jnp.float32),
        "g2": jnp.ones((1, num_embed), jnp.float32),
        "be2": jnp.zeros((1, num_embed), jnp.float32),
    }


def reference_block(x, params, *, num_heads):
    """Pure-JAX f32 reference mirroring the PyTorch forward (eval mode)."""
    B, T, E = x.shape

    def ln(v, g, b):
        mu = jnp.mean(v, -1, keepdims=True)
        var = jnp.mean((v - mu) ** 2, -1, keepdims=True)
        return (v - mu) / jnp.sqrt(var + LN_EPS) * g + b

    h = ln(x, params["g1"], params["be1"])
    causal = jnp.tril(jnp.ones((T, T), bool))
    outs = []
    for i in range(num_heads):
        q = h @ params["wq"][i]
        k = h @ params["wk"][i]
        v = h @ params["wv"][i]
        wei = (q @ jnp.swapaxes(k, -1, -2)) * E ** (-0.5)    # C**-0.5 as in PyTorch ref
        wei = jnp.where(causal, wei, -jnp.inf)
        wei = jax.nn.softmax(wei, axis=-1)
        outs.append(wei @ v)
    cat = jnp.concatenate(outs, axis=-1)
    x1 = x + cat @ params["wo"] + params["bo"]
    h2 = ln(x1, params["g2"], params["be2"])
    f = jnp.maximum(h2 @ params["w1"] + params["b1"], 0.0) @ params["w2"] + params["b2"]
    return x1 + f


if __name__ == "__main__":
    # batch, seq (block_size), num_embed, num_heads — E chosen lane-dense (128).
    B, T, E, H = 4, 16, 128, 4

    key = jax.random.PRNGKey(0)
    kx, kp = jax.random.split(key)
    x = jax.random.normal(kx, (B, T, E), jnp.float32)
    params = make_params(kp, E, H)

    fused = fuse_params(params, num_heads=H)                 # one-time repack
    out = jax.block_until_ready(transformer_block(x, fused, num_heads=H))

    ref = reference_block(x, params, num_heads=H)
    assert out.shape == (B, T, E)
    max_err = float(jnp.max(jnp.abs(out - ref)))
    assert jnp.allclose(out, ref, atol=2e-2, rtol=2e-2), f"mismatch vs reference (max abs err {max_err})"

    print("KERNEL_OK")
</pallas_src>

<mosaic_0001>
module attributes {stable_mosaic.version = 11 : i64} {
  func.func @transformer_block_kernel(%arg0: i32, %arg1: memref<4x16x128xf32, #tpu.memory_space<vmem>>, %arg2: memref<128x384xbf16, #tpu.memory_space<vmem>>, %arg3: memref<128x128xbf16, #tpu.memory_space<vmem>>, %arg4: memref<1x128xf32, #tpu.memory_space<vmem>>, %arg5: memref<128x512xbf16, #tpu.memory_space<vmem>>, %arg6: memref<1x512xf32, #tpu.memory_space<vmem>>, %arg7: memref<512x128xbf16, #tpu.memory_space<vmem>>, %arg8: memref<1x128xf32, #tpu.memory_space<vmem>>, %arg9: memref<1x128xf32, #tpu.memory_space<vmem>>, %arg10: memref<1x128xf32, #tpu.memory_space<vmem>>, %arg11: memref<1x128xf32, #tpu.memory_space<vmem>>, %arg12: memref<1x128xf32, #tpu.memory_space<vmem>>, %arg13: memref<4x16x128xf32, #tpu.memory_space<vmem>>) attributes {dimension_semantics = [#tpu.dimension_semantics<parallel>], iteration_bounds = array<i64: 1>, scalar_prefetch = 0 : i64, scratch_operands = 0 : i64, tpu.core_type = #tpu.core_type<tc>, window_params = [{transform_indices = @transform_0, window_bounds = array<i64: 4, 16, 128>}, {pipeline_mode = #tpu.pipeline_mode<synchronous>, transform_indices = @transform_1, window_bounds = array<i64: 128, 384>}, {pipeline_mode = #tpu.pipeline_mode<synchronous>, transform_indices = @transform_2, window_bounds = array<i64: 128, 128>}, {pipeline_mode = #tpu.pipeline_mode<synchronous>, transform_indices = @transform_3, window_bounds = array<i64: 1, 128>}, {pipeline_mode = #tpu.pipeline_mode<synchronous>, transform_indices = @transform_4, window_bounds = array<i64: 128, 512>}, {pipeline_mode = #tpu.pipeline_mode<synchronous>, transform_indices = @transform_5, window_bounds = array<i64: 1, 512>}, {pipeline_mode = #tpu.pipeline_mode<synchronous>, transform_indices = @transform_6, window_bounds = array<i64: 512, 128>}, {pipeline_mode = #tpu.pipeline_mode<synchronous>, transform_indices = @transform_7, window_bounds = array<i64: 1, 128>}, {pipeline_mode = #tpu.pipeline_mode<synchronous>, transform_indices = @transform_8, window_bounds = array<i64: 1, 128>}, {pipeline_mode = #tpu.pipeline_mode<synchronous>, transform_indices = @transform_9, window_bounds = array<i64: 1, 128>}, {pipeline_mode = #tpu.pipeline_mode<synchronous>, transform_indices = @transform_10, window_bounds = array<i64: 1, 128>}, {pipeline_mode = #tpu.pipeline_mode<synchronous>, transform_indices = @transform_11, window_bounds = array<i64: 1, 128>}, {transform_indices = @transform_12, window_bounds = array<i64: 4, 16, 128>}]} {
    %c0 = arith.constant 0 : index
    %c0_0 = arith.constant 0 : index
    %c0_1 = arith.constant 0 : index
    %0 = vector.load %arg1[%c0, %c0_0, %c0_1] : memref<4x16x128xf32, #tpu.memory_space<vmem>>, vector<4x16x128xf32>
    %1 = vector.shape_cast %0 : vector<4x16x128xf32> to vector<64x128xf32>
    %c0_2 = arith.constant 0 : index
    %c0_3 = arith.constant 0 : index
    %2 = vector.load %arg9[%c0_2, %c0_3] : memref<1x128xf32, #tpu.memory_space<vmem>>, vector<1x128xf32>
    %c0_4 = arith.constant 0 : index
    %c0_5 = arith.constant 0 : index
    %3 = vector.load %arg10[%c0_4, %c0_5] : memref<1x128xf32, #tpu.memory_space<vmem>>, vector<1x128xf32>
    %cst = arith.constant dense<0.000000e+00> : vector<64xf32>
    %4 = vector.multi_reduction <add>, %1, %cst [1] : vector<64x128xf32> to vector<64xf32>
    %5 = vector.shape_cast %4 : vector<64xf32> to vector<64x1xf32>
    %cst_6 = arith.constant 1.280000e+02 : f32
    %6 = vector.broadcast %cst_6 : f32 to vector<64x1xf32>
    %7 = arith.divf %5, %6 : vector<64x1xf32>
    %8 = vector.broadcast %7 : vector<64x1xf32> to vector<64x128xf32>
    %9 = arith.subf %1, %8 : vector<64x128xf32>
    %10 = arith.mulf %9, %9 : vector<64x128xf32>
    %cst_7 = arith.constant dense<0.000000e+00> : vector<64xf32>
    %11 = vector.multi_reduction <add>, %10, %cst_7 [1] : vector<64x128xf32> to vector<64xf32>
    %12 = vector.shape_cast %11 : vector<64xf32> to vector<64x1xf32>
    %cst_8 = arith.constant 1.280000e+02 : f32
    %13 = vector.broadcast %cst_8 : f32 to vector<64x1xf32>
    %14 = arith.divf %12, %13 : vector<64x1xf32>
    %15 = vector.broadcast %7 : vector<64x1xf32> to vector<64x128xf32>
    %16 = arith.subf %1, %15 : vector<64x128xf32>
    %cst_9 = arith.constant 9.99999974E-6 : f32
    %17 = vector.broadcast %cst_9 : f32 to vector<64x1xf32>
    %18 = arith.addf %14, %17 : vector<64x1xf32>
    %19 = math.rsqrt %18 : vector<64x1xf32>
    %20 = vector.broadcast %19 : vector<64x1xf32> to vector<64x128xf32>
    %21 = arith.mulf %16, %20 : vector<64x128xf32>
    %22 = vector.broadcast %2 : vector<1x128xf32> to vector<64x128xf32>
    %23 = arith.mulf %21, %22 : vector<64x128xf32>
    %24 = vector.broadcast %3 : vector<1x128xf32> to vector<64x128xf32>
    %25 = arith.addf %23, %24 : vector<64x128xf32>
    %26 = arith.truncf %25 : vector<64x128xf32> to vector<64x128xbf16>
    %c0_10 = arith.constant 0 : index
    %c0_11 = arith.constant 0 : index
    %27 = vector.load %arg2[%c0_10, %c0_11] : memref<128x384xbf16, #tpu.memory_space<vmem>>, vector<128x384xbf16>
    %cst_12 = arith.constant dense<0.000000e+00> : vector<64x384xf32>
    %28 = tpu.matmul %26, %27, %cst_12 {dimension_numbers = #tpu.dot_dimension_numbers<[1], [0], [0], [1], [0, 0, 1, 1], [], []>} : vector<64x128xbf16>, vector<128x384xbf16>, vector<64x384xf32> -> vector<64x384xf32>
    %29 = arith.truncf %28 : vector<64x384xf32> to vector<64x384xbf16>
    %30 = vector.extract_strided_slice %29 {offsets = [0, 0], sizes = [64, 128], strides = [1, 1]} : vector<64x384xbf16> to vector<64x128xbf16>
    %31 = vector.shape_cast %30 : vector<64x128xbf16> to vector<4x16x128xbf16>
    %32 = vector.extract_strided_slice %29 {offsets = [0, 128], sizes = [64, 128], strides = [1, 1]} : vector<64x384xbf16> to vector<64x128xbf16>
    %33 = vector.shape_cast %32 : vector<64x128xbf16> to vector<4x16x128xbf16>
    %34 = vector.extract_strided_slice %29 {offsets = [0, 256], sizes = [64, 128], strides = [1, 1]} : vector<64x384xbf16> to vector<64x128xbf16>
    %35 = vector.shape_cast %34 : vector<64x128xbf16> to vector<4x16x128xbf16>
    %36 = tpu.iota {dimensions = array<i32: 0>} : vector<16x16xi32>
    %37 = tpu.iota {dimensions = array<i32: 1>} : vector<16x16xi32>
    %38 = arith.cmpi sle, %37, %36 : vector<16x16xi32>
    %39 = vector.shape_cast %38 : vector<16x16xi1> to vector<1x16x16xi1>
    %40 = vector.extract_strided_slice %31 {offsets = [0, 0, 0], sizes = [4, 16, 32], strides = [1, 1, 1]} : vector<4x16x128xbf16> to vector<4x16x32xbf16>
    %41 = vector.extract_strided_slice %33 {offsets = [0, 0, 0], sizes = [4, 16, 32], strides = [1, 1, 1]} : vector<4x16x128xbf16> to vector<4x16x32xbf16>
    %42 = vector.extract_strided_slice %35 {offsets = [0, 0, 0], sizes = [4, 16, 32], strides = [1, 1, 1]} : vector<4x16x128xbf16> to vector<4x16x32xbf16>
    "tpu.trace_start"() <{level = 10 : i32, message = "bqd,bkd->bqk"}> : () -> ()
    %cst_13 = arith.constant dense<0.000000e+00> : vector<4x16x16xf32>
    %43 = tpu.matmul %40, %41, %cst_13 {dimension_numbers = #tpu.dot_dimension_numbers<[2], [2], [1], [1], [0, 0, 0, 1, 1, 1], [0], [0]>} : vector<4x16x32xbf16>, vector<4x16x32xbf16>, vector<4x16x16xf32> -> vector<4x16x16xf32>
    %cst_14 = arith.constant 0xFF800000 : f32
    "tpu.trace_stop"() : () -> ()
    %44 = vector.shape_cast %39 : vector<1x16x16xi1> to vector<1x16x16xi1>
    %45 = vector.broadcast %44 : vector<1x16x16xi1> to vector<4x16x16xi1>
    %46 = vector.broadcast %cst_14 : f32 to vector<4x16x16xf32>
    %47 = arith.select %45, %43, %46 : vector<4x16x16xi1>, vector<4x16x16xf32>
    %cst_15 = arith.constant dense<0xFF800000> : vector<4x16xf32>
    %48 = vector.multi_reduction <maximumf>, %47, %cst_15 [2] : vector<4x16x16xf32> to vector<4x16xf32>
    %49 = vector.shape_cast %48 : vector<4x16xf32> to vector<4x16x1xf32>
    %50 = vector.broadcast %49 : vector<4x16x1xf32> to vector<4x16x16xf32>
    %51 = arith.subf %47, %50 : vector<4x16x16xf32>
    %52 = math.exp %51 : vector<4x16x16xf32>
    %cst_16 = arith.constant dense<0.000000e+00> : vector<4x16xf32>
    %53 = vector.multi_reduction <add>, %52, %cst_16 [2] : vector<4x16x16xf32> to vector<4x16xf32>
    %54 = vector.shape_cast %53 : vector<4x16xf32> to vector<4x16x1xf32>
    %55 = tpu.reciprocal %54 {approx = true} : vector<4x16x1xf32> -> vector<4x16x1xf32>
    %56 = vector.broadcast %55 : vector<4x16x1xf32> to vector<4x16x16xf32>
    %57 = arith.mulf %52, %56 : vector<4x16x16xf32>
    %58 = arith.truncf %57 : vector<4x16x16xf32> to vector<4x16x16xbf16>
    "tpu.trace_start"() <{level = 10 : i32, message = "bqk,bkd->bqd"}> : () -> ()
    %cst_17 = arith.constant dense<0.000000e+00> : vector<4x16x32xf32>
    %59 = tpu.matmul %58, %42, %cst_17 {dimension_numbers = #tpu.dot_dimension_numbers<[2], [1], [1], [2], [0, 0, 0, 1, 1, 2], [0], [0]>} : vector<4x16x16xbf16>, vector<4x16x32xbf16>, vector<4x16x32xf32> -> vector<4x16x32xf32>
    "tpu.trace_stop"() : () -> ()
    %60 = arith.truncf %59 : vector<4x16x32xf32> to vector<4x16x32xbf16>
    %61 = vector.extract_strided_slice %31 {offsets = [0, 0, 32], sizes = [4, 16, 32], strides = [1, 1, 1]} : vector<4x16x128xbf16> to vector<4x16x32xbf16>
    %62 = vector.extract_strided_slice %33 {offsets = [0, 0, 32], sizes = [4, 16, 32], strides = [1, 1, 1]} : vector<4x16x128xbf16> to vector<4x16x32xbf16>
    %63 = vector.extract_strided_slice %35 {offsets = [0, 0, 32], sizes = [4, 16, 32], strides = [1, 1, 1]} : vector<4x16x128xbf16> to vector<4x16x32xbf16>
    "tpu.trace_start"() <{level = 10 : i32, message = "bqd,bkd->bqk"}> : () -> ()
    %cst_18 = arith.constant dense<0.000000e+00> : vector<4x16x16xf32>
    %64 = tpu.matmul %61, %62, %cst_18 {dimension_numbers = #tpu.dot_dimension_numbers<[2], [2], [1], [1], [0, 0, 0, 1, 1, 1], [0], [0]>} : vector<4x16x32xbf16>, vector<4x16x32xbf16>, vector<4x16x16xf32> -> vector<4x16x16xf32>
    %cst_19 = arith.constant 0xFF800000 : f32
    "tpu.trace_stop"() : () -> ()
    %65 = vector.shape_cast %39 : vector<1x16x16xi1> to vector<1x16x16xi1>
    %66 = vector.broadcast %65 : vector<1x16x16xi1> to vector<4x16x16xi1>
    %67 = vector.broadcast %cst_19 : f32 to vector<4x16x16xf32>
    %68 = arith.select %66, %64, %67 : vector<4x16x16xi1>, vector<4x16x16xf32>
    %cst_20 = arith.constant dense<0xFF800000> : vector<4x16xf32>
    %69 = vector.multi_reduction <maximumf>, %68, %cst_20 [2] : vector<4x16x16xf32> to vector<4x16xf32>
    %70 = vector.shape_cast %69 : vector<4x16xf32> to vector<4x16x1xf32>
    %71 = vector.broadcast %70 : vector<4x16x1xf32> to vector<4x16x16xf32>
    %72 = arith.subf %68, %71 : vector<4x16x16xf32>
    %73 = math.exp %72 : vector<4x16x16xf32>
    %cst_21 = arith.constant dense<0.000000e+00> : vector<4x16xf32>
    %74 = vector.multi_reduction <add>, %73, %cst_21 [2] : vector<4x16x16xf32> to vector<4x16xf32>
    %75 = vector.shape_cast %74 : vector<4x16xf32> to vector<4x16x1xf32>
    %76 = tpu.reciprocal %75 {approx = true} : vector<4x16x1xf32> -> vector<4x16x1xf32>
    %77 = vector.broadcast %76 : vector<4x16x1xf32> to vector<4x16x16xf32>
    %78 = arith.mulf %73, %77 : vector<4x16x16xf32>
    %79 = arith.truncf %78 : vector<4x16x16xf32> to vector<4x16x16xbf16>
    "tpu.trace_start"() <{level = 10 : i32, message = "bqk,bkd->bqd"}> : () -> ()
    %cst_22 = arith.constant dense<0.000000e+00> : vector<4x16x32xf32>
    %80 = tpu.matmul %79, %63, %cst_22 {dimension_numbers = #tpu.dot_dimension_numbers<[2], [1], [1], [2], [0, 0, 0, 1, 1, 2], [0], [0]>} : vector<4x16x16xbf16>, vector<4x16x32xbf16>, vector<4x16x32xf32> -> vector<4x16x32xf32>
    "tpu.trace_stop"() : () -> ()
    %81 = arith.truncf %80 : vector<4x16x32xf32> to vector<4x16x32xbf16>
    %82 = vector.extract_strided_slice %31 {offsets = [0, 0, 64], sizes = [4, 16, 32], strides = [1, 1, 1]} : vector<4x16x128xbf16> to vector<4x16x32xbf16>
    %83 = vector.extract_strided_slice %33 {offsets = [0, 0, 64], sizes = [4, 16, 32], strides = [1, 1, 1]} : vector<4x16x128xbf16> to vector<4x16x32xbf16>
    %84 = vector.extract_strided_slice %35 {offsets = [0, 0, 64], sizes = [4, 16, 32], strides = [1, 1, 1]} : vector<4x16x128xbf16> to vector<4x16x32xbf16>
    "tpu.trace_start"() <{level = 10 : i32, message = "bqd,bkd->bqk"}> : () -> ()
    %cst_23 = arith.constant dense<0.000000e+00> : vector<4x16x16xf32>
    %85 = tpu.matmul %82, %83, %cst_23 {dimension_numbers = #tpu.dot_dimension_numbers<[2], [2], [1], [1], [0, 0, 0, 1, 1, 1], [0], [0]>} : vector<4x16x32xbf16>, vector<4x16x32xbf16>, vector<4x16x16xf32> -> vector<4x16x16xf32>
    %cst_24 = arith.constant 0xFF800000 : f32
    "tpu.trace_stop"() : () -> ()
    %86 = vector.shape_cast %39 : vector<1x16x16xi1> to vector<1x16x16xi1>
    %87 = vector.broadcast %86 : vector<1x16x16xi1> to vector<4x16x16xi1>
    %88 = vector.broadcast %cst_24 : f32 to vector<4x16x16xf32>
    %89 = arith.select %87, %85, %88 : vector<4x16x16xi1>, vector<4x16x16xf32>
    %cst_25 = arith.constant dense<0xFF800000> : vector<4x16xf32>
    %90 = vector.multi_reduction <maximumf>, %89, %cst_25 [2] : vector<4x16x16xf32> to vector<4x16xf32>
    %91 = vector.shape_cast %90 : vector<4x16xf32> to vector<4x16x1xf32>
    %92 = vector.broadcast %91 : vector<4x16x1xf32> to vector<4x16x16xf32>
    %93 = arith.subf %89, %92 : vector<4x16x16xf32>
    %94 = math.exp %93 : vector<4x16x16xf32>
    %cst_26 = arith.constant dense<0.000000e+00> : vector<4x16xf32>
    %95 = vector.multi_reduction <add>, %94, %cst_26 [2] : vector<4x16x16xf32> to vector<4x16xf32>
    %96 = vector.shape_cast %95 : vector<4x16xf32> to vector<4x16x1xf32>
    %97 = tpu.reciprocal %96 {approx = true} : vector<4x16x1xf32> -> vector<4x16x1xf32>
    %98 = vector.broadcast %97 : vector<4x16x1xf32> to vector<4x16x16xf32>
    %99 = arith.mulf %94, %98 : vector<4x16x16xf32>
    %100 = arith.truncf %99 : vector<4x16x16xf32> to vector<4x16x16xbf16>
    "tpu.trace_start"() <{level = 10 : i32, message = "bqk,bkd->bqd"}> : () -> ()
    %cst_27 = arith.constant dense<0.000000e+00> : vector<4x16x32xf32>
    %101 = tpu.matmul %100, %84, %cst_27 {dimension_numbers = #tpu.dot_dimension_numbers<[2], [1], [1], [2], [0, 0, 0, 1, 1, 2], [0], [0]>} : vector<4x16x16xbf16>, vector<4x16x32xbf16>, vector<4x16x32xf32> -> vector<4x16x32xf32>
    "tpu.trace_stop"() : () -> ()
    %102 = arith.truncf %101 : vector<4x16x32xf32> to vector<4x16x32xbf16>
    %103 = vector.extract_strided_slice %31 {offsets = [0, 0, 96], sizes = [4, 16, 32], strides = [1, 1, 1]} : vector<4x16x128xbf16> to vector<4x16x32xbf16>
    %104 = vector.extract_strided_slice %33 {offsets = [0, 0, 96], sizes = [4, 16, 32], strides = [1, 1, 1]} : vector<4x16x128xbf16> to vector<4x16x32xbf16>
    %105 = vector.extract_strided_slice %35 {offsets = [0, 0, 96], sizes = [4, 16, 32], strides = [1, 1, 1]} : vector<4x16x128xbf16> to vector<4x16x32xbf16>
    "tpu.trace_start"() <{level = 10 : i32, message = "bqd,bkd->bqk"}> : () -> ()
    %cst_28 = arith.constant dense<0.000000e+00> : vector<4x16x16xf32>
    %106 = tpu.matmul %103, %104, %cst_28 {dimension_numbers = #tpu.dot_dimension_numbers<[2], [2], [1], [1], [0, 0, 0, 1, 1, 1], [0], [0]>} : vector<4x16x32xbf16>, vector<4x16x32xbf16>, vector<4x16x16xf32> -> vector<4x16x16xf32>
    %cst_29 = arith.constant 0xFF800000 : f32
    "tpu.trace_stop"() : () -> ()
    %107 = vector.shape_cast %39 : vector<1x16x16xi1> to vector<1x16x16xi1>
    %108 = vector.broadcast %107 : vector<1x16x16xi1> to vector<4x16x16xi1>
    %109 = vector.broadcast %cst_29 : f32 to vector<4x16x16xf32>
    %110 = arith.select %108, %106, %109 : vector<4x16x16xi1>, vector<4x16x16xf32>
    %cst_30 = arith.constant dense<0xFF800000> : vector<4x16xf32>
    %111 = vector.multi_reduction <maximumf>, %110, %cst_30 [2] : vector<4x16x16xf32> to vector<4x16xf32>
    %112 = vector.shape_cast %111 : vector<4x16xf32> to vector<4x16x1xf32>
    %113 = vector.broadcast %112 : vector<4x16x1xf32> to vector<4x16x16xf32>
    %114 = arith.subf %110, %113 : vector<4x16x16xf32>
    %115 = math.exp %114 : vector<4x16x16xf32>
    %cst_31 = arith.constant dense<0.000000e+00> : vector<4x16xf32>
    %116 = vector.multi_reduction <add>, %115, %cst_31 [2] : vector<4x16x16xf32> to vector<4x16xf32>
    %117 = vector.shape_cast %116 : vector<4x16xf32> to vector<4x16x1xf32>
    %118 = tpu.reciprocal %117 {approx = true} : vector<4x16x1xf32> -> vector<4x16x1xf32>
    %119 = vector.broadcast %118 : vector<4x16x1xf32> to vector<4x16x16xf32>
    %120 = arith.mulf %115, %119 : vector<4x16x16xf32>
    %121 = arith.truncf %120 : vector<4x16x16xf32> to vector<4x16x16xbf16>
    "tpu.trace_start"() <{level = 10 : i32, message = "bqk,bkd->bqd"}> : () -> ()
    %cst_32 = arith.constant dense<0.000000e+00> : vector<4x16x32xf32>
    %122 = tpu.matmul %121, %105, %cst_32 {dimension_numbers = #tpu.dot_dimension_numbers<[2], [1], [1], [2], [0, 0, 0, 1, 1, 2], [0], [0]>} : vector<4x16x16xbf16>, vector<4x16x32xbf16>, vector<4x16x32xf32> -> vector<4x16x32xf32>
    "tpu.trace_stop"() : () -> ()
    %123 = arith.truncf %122 : vector<4x16x32xf32> to vector<4x16x32xbf16>
    %124 = tpu.concatenate %60, %81, %102, %123 in 2 : vector<4x16x32xbf16>, vector<4x16x32xbf16>, vector<4x16x32xbf16>, vector<4x16x32xbf16> -> vector<4x16x128xbf16>
    %125 = vector.shape_cast %124 : vector<4x16x128xbf16> to vector<64x128xbf16>
    %c0_33 = arith.constant 0 : index
    %c0_34 = arith.constant 0 : index
    %126 = vector.load %arg3[%c0_33, %c0_34] : memref<128x128xbf16, #tpu.memory_space<vmem>>, vector<128x128xbf16>
    %cst_35 = arith.constant dense<0.000000e+00> : vector<64x128xf32>
    %127 = tpu.matmul %125, %126, %cst_35 {dimension_numbers = #tpu.dot_dimension_numbers<[1], [0], [0], [1], [0, 0, 1, 1], [], []>} : vector<64x128xbf16>, vector<128x128xbf16>, vector<64x128xf32> -> vector<64x128xf32>
    %c0_36 = arith.constant 0 : index
    %c0_37 = arith.constant 0 : index
    %128 = vector.load %arg4[%c0_36, %c0_37] : memref<1x128xf32, #tpu.memory_space<vmem>>, vector<1x128xf32>
    %129 = vector.broadcast %128 : vector<1x128xf32> to vector<64x128xf32>
    %130 = arith.addf %127, %129 : vector<64x128xf32>
    %131 = arith.addf %1, %130 : vector<64x128xf32>
    %c0_38 = arith.constant 0 : index
    %c0_39 = arith.constant 0 : index
    %132 = vector.load %arg11[%c0_38, %c0_39] : memref<1x128xf32, #tpu.memory_space<vmem>>, vector<1x128xf32>
    %c0_40 = arith.constant 0 : index
    %c0_41 = arith.constant 0 : index
    %133 = vector.load %arg12[%c0_40, %c0_41] : memref<1x128xf32, #tpu.memory_space<vmem>>, vector<1x128xf32>
    %cst_42 = arith.constant dense<0.000000e+00> : vector<64xf32>
    %134 = vector.multi_reduction <add>, %131, %cst_42 [1] : vector<64x128xf32> to vector<64xf32>
    %135 = vector.shape_cast %134 : vector<64xf32> to vector<64x1xf32>
    %cst_43 = arith.constant 1.280000e+02 : f32
    %136 = vector.broadcast %cst_43 : f32 to vector<64x1xf32>
    %137 = arith.divf %135, %136 : vector<64x1xf32>
    %138 = vector.broadcast %137 : vector<64x1xf32> to vector<64x128xf32>
    %139 = arith.subf %131, %138 : vector<64x128xf32>
    %140 = arith.mulf %139, %139 : vector<64x128xf32>
    %cst_44 = arith.constant dense<0.000000e+00> : vector<64xf32>
    %141 = vector.multi_reduction <add>, %140, %cst_44 [1] : vector<64x128xf32> to vector<64xf32>
    %142 = vector.shape_cast %141 : vector<64xf32> to vector<64x1xf32>
    %cst_45 = arith.constant 1.280000e+02 : f32
    %143 = vector.broadcast %cst_45 : f32 to vector<64x1xf32>
    %144 = arith.divf %142, %143 : vector<64x1xf32>
    %145 = vector.broadcast %137 : vector<64x1xf32> to vector<64x128xf32>
    %146 = arith.subf %131, %145 : vector<64x128xf32>
    %cst_46 = arith.constant 9.99999974E-6 : f32
    %147 = vector.broadcast %cst_46 : f32 to vector<64x1xf32>
    %148 = arith.addf %144, %147 : vector<64x1xf32>
    %149 = math.rsqrt %148 : vector<64x1xf32>
    %150 = vector.broadcast %149 : vector<64x1xf32> to vector<64x128xf32>
    %151 = arith.mulf %146, %150 : vector<64x128xf32>
    %152 = vector.broadcast %132 : vector<1x128xf32> to vector<64x128xf32>
    %153 = arith.mulf %151, %152 : vector<64x128xf32>
    %154 = vector.broadcast %133 : vector<1x128xf32> to vector<64x128xf32>
    %155 = arith.addf %153, %154 : vector<64x128xf32>
    %156 = arith.truncf %155 : vector<64x128xf32> to vector<64x128xbf16>
    %c0_47 = arith.constant 0 : index
    %c0_48 = arith.constant 0 : index
    %157 = vector.load %arg5[%c0_47, %c0_48] : memref<128x512xbf16, #tpu.memory_space<vmem>>, vector<128x512xbf16>
    %cst_49 = arith.constant dense<0.000000e+00> : vector<64x512xf32>
    %158 = tpu.matmul %156, %157, %cst_49 {dimension_numbers = #tpu.dot_dimension_numbers<[1], [0], [0], [1], [0, 0, 1, 1], [], []>} : vector<64x128xbf16>, vector<128x512xbf16>, vector<64x512xf32> -> vector<64x512xf32>
    %c0_50 = arith.constant 0 : index
    %c0_51 = arith.constant 0 : index
    %159 = vector.load %arg6[%c0_50, %c0_51] : memref<1x512xf32, #tpu.memory_space<vmem>>, vector<1x512xf32>
    %160 = vector.broadcast %159 : vector<1x512xf32> to vector<64x512xf32>
    %161 = arith.addf %158, %160 : vector<64x512xf32>
    %cst_52 = arith.constant 0.000000e+00 : f32
    %162 = vector.broadcast %cst_52 : f32 to vector<64x512xf32>
    %163 = arith.maximumf %161, %162 : vector<64x512xf32>
    %164 = arith.truncf %163 : vector<64x512xf32> to vector<64x512xbf16>
    %c0_53 = arith.constant 0 : index
    %c0_54 = arith.constant 0 : index
    %165 = vector.load %arg7[%c0_53, %c0_54] : memref<512x128xbf16, #tpu.memory_space<vmem>>, vector<512x128xbf16>
    %cst_55 = arith.constant dense<0.000000e+00> : vector<64x128xf32>
    %166 = tpu.matmul %164, %165, %cst_55 {dimension_numbers = #tpu.dot_dimension_numbers<[1], [0], [0], [1], [0, 0, 1, 1], [], []>} : vector<64x512xbf16>, vector<512x128xbf16>, vector<64x128xf32> -> vector<64x128xf32>
    %c0_56 = arith.constant 0 : index
    %c0_57 = arith.constant 0 : index
    %167 = vector.load %arg8[%c0_56, %c0_57] : memref<1x128xf32, #tpu.memory_space<vmem>>, vector<1x128xf32>
    %168 = vector.broadcast %167 : vector<1x128xf32> to vector<64x128xf32>
    %169 = arith.addf %166, %168 : vector<64x128xf32>
    %170 = arith.addf %131, %169 : vector<64x128xf32>
    %171 = vector.shape_cast %170 : vector<64x128xf32> to vector<4x16x128xf32>
    %c0_58 = arith.constant 0 : index
    %c0_59 = arith.constant 0 : index
    %c0_60 = arith.constant 0 : index
    %172 = vector.load %arg13[%c0_58, %c0_59, %c0_60] : memref<4x16x128xf32, #tpu.memory_space<vmem>>, vector<4x16x128xf32>
    tpu.vector_store %arg13[%c0_58, %c0_59, %c0_60], %171 {strides = array<i32>} : memref<4x16x128xf32, #tpu.memory_space<vmem>>, vector<4x16x128xf32>,
    return
  }
  func.func @transform_0(%arg0: i32) -> (i32, i32, i32) {
    %c0_i32 = arith.constant 0 : i32
    %c0_i32_0 = arith.constant 0 : i32
    %c0_i32_1 = arith.constant 0 : i32
    return %arg0, %c0_i32, %c0_i32_0 : i32, i32, i32
  }
  func.func @transform_1(%arg0: i32) -> (i32, i32) {
    %c0_i32 = arith.constant 0 : i32
    %c0_i32_0 = arith.constant 0 : i32
    %c0_i32_1 = arith.constant 0 : i32
    return %c0_i32, %c0_i32_0 : i32, i32
  }
  func.func @transform_2(%arg0: i32) -> (i32, i32) {
    %c0_i32 = arith.constant 0 : i32
    %c0_i32_0 = arith.constant 0 : i32
    %c0_i32_1 = arith.constant 0 : i32
    return %c0_i32, %c0_i32_0 : i32, i32
  }
  func.func @transform_3(%arg0: i32) -> (i32, i32) {
    %c0_i32 = arith.constant 0 : i32
    %c0_i32_0 = arith.constant 0 : i32
    %c0_i32_1 = arith.constant 0 : i32
    return %c0_i32, %c0_i32_0 : i32, i32
  }
  func.func @transform_4(%arg0: i32) -> (i32, i32) {
    %c0_i32 = arith.constant 0 : i32
    %c0_i32_0 = arith.constant 0 : i32
    %c0_i32_1 = arith.constant 0 : i32
    return %c0_i32, %c0_i32_0 : i32, i32
  }
  func.func @transform_5(%arg0: i32) -> (i32, i32) {
    %c0_i32 = arith.constant 0 : i32
    %c0_i32_0 = arith.constant 0 : i32
    %c0_i32_1 = arith.constant 0 : i32
    return %c0_i32, %c0_i32_0 : i32, i32
  }
  func.func @transform_6(%arg0: i32) -> (i32, i32) {
    %c0_i32 = arith.constant 0 : i32
    %c0_i32_0 = arith.constant 0 : i32
    %c0_i32_1 = arith.constant 0 : i32
    return %c0_i32, %c0_i32_0 : i32, i32
  }
  func.func @transform_7(%arg0: i32) -> (i32, i32) {
    %c0_i32 = arith.constant 0 : i32
    %c0_i32_0 = arith.constant 0 : i32
    %c0_i32_1 = arith.constant 0 : i32
    return %c0_i32, %c0_i32_0 : i32, i32
  }
  func.func @transform_8(%arg0: i32) -> (i32, i32) {
    %c0_i32 = arith.constant 0 : i32
    %c0_i32_0 = arith.constant 0 : i32
    %c0_i32_1 = arith.constant 0 : i32
    return %c0_i32, %c0_i32_0 : i32, i32
  }
  func.func @transform_9(%arg0: i32) -> (i32, i32) {
    %c0_i32 = arith.constant 0 : i32
    %c0_i32_0 = arith.constant 0 : i32
    %c0_i32_1 = arith.constant 0 : i32
    return %c0_i32, %c0_i32_0 : i32, i32
  }
  func.func @transform_10(%arg0: i32) -> (i32, i32) {
    %c0_i32 = arith.constant 0 : i32
    %c0_i32_0 = arith.constant 0 : i32
    %c0_i32_1 = arith.constant 0 : i32
    return %c0_i32, %c0_i32_0 : i32, i32
  }
  func.func @transform_11(%arg0: i32) -> (i32, i32) {
    %c0_i32 = arith.constant 0 : i32
    %c0_i32_0 = arith.constant 0 : i32
    %c0_i32_1 = arith.constant 0 : i32
    return %c0_i32, %c0_i32_0 : i32, i32
  }
  func.func @transform_12(%arg0: i32) -> (i32, i32, i32) {
    %c0_i32 = arith.constant 0 : i32
    %c0_i32_0 = arith.constant 0 : i32
    %c0_i32_1 = arith.constant 0 : i32
    return %arg0, %c0_i32, %c0_i32_0 : i32, i32, i32
  }
}

</mosaic_0001>

<bundles_post_ra>
// kernel: tpu_custom_call.1
= control target key start
LH: loop header
LB: loop body
LE: loop exit
PB: predicated region body
PF: predicated region fallthrough
CT: control target
= control target key end

     0   :  { %17 = vsyncpa [#allocation3], 0  ;;  %s5747_s0 = inlined_call_operand.hbm [shape: f32[4,16,128], index: 0, kind: input, shape index: {}]   ;;  %s5748_s1 = inlined_call_operand.hbm [shape: bf16[128,384], index: 1, kind: input, shape index: {}]   ;;  %s5749_s2 = inlined_call_operand.hbm [shape: bf16[128,128], index: 2, kind: input, shape index: {}]   ;;  %s5750_s3 = inlined_call_operand.vmem [shape: f32[1,128], index: 3, kind: input, shape index: {}]   ;;  %s5751_s4 = inlined_call_operand.hbm [shape: bf16[128,512], index: 4, kind: input, shape index: {}]   ;;  %s5752_s5 = inlined_call_operand.vmem [shape: f32[1,512], index: 5, kind: input, shape index: {}]   ;;  %s5753_s6 = inlined_call_operand.hbm [shape: bf16[512,128], index: 6, kind: input, shape index: {}]   ;;  %s5754_s7 = inlined_call_operand.vmem [shape: f32[1,128], index: 7, kind: input, shape index: {}]   ;;  %s5755_s8 = inlined_call_operand.vmem [shape: f32[1,128], index: 8, kind: input, shape index: {}]   ;;  %s5756_s9 = inlined_call_operand.vmem [shape: f32[1,128], index: 9, kind: input, shape index: {}]   ;;  %s5757_s10 = inlined_call_operand.vmem [shape: f32[1,128], index: 10, kind: input, shape index: {}]   ;;  %s5758_s11 = inlined_call_operand.vmem [shape: f32[1,128], index: 11, kind: input, shape index: {}]   ;;  %s5759_s12 = inlined_call_operand.hbm [shape: f32[4,16,128], index: 12, kind: output, shape index: {}]  }
   0x1   :  { %18 = vsyncpa [#allocation6], 0 }
   0x2   :  { %19 = vsyncpa [#allocation9], 0 }
   0x3   :  { %20 = vsyncpa [#allocation4], 0  ;;  %s4710_s21 = smov [#allocation5]   ;;  %s4570_s25 = scalar_lea.hbm %s5748_s1, 3072 }
   0x4   :  { %s38_s22 = sshll.u32 %s4710_s21, 4  ;;  %p4571_p0 = scmp.ne.s32.totalorder %s5748_s1, %s4570_s25  ;;  %s39_s22 = int_to_ptr.vmem [resolvable:$true] %s38_s22 }
   0x5   :  { %p4574_p1 = scmp.lt.u32.totalorder %s4570_s25, %s5748_s1 }
   0x7   :  { %p4576_p2 = pnand %p4574_p1, %p4571_p0 }
   0x9   :  { %4579 = shalt.err (!%p4576_p2)
}
   0xa   :  { %s4580_s30 = scalar_lea.vmem %s39_s22, 3072  ;;  %p4585_p4 = scmp.lt.s32.totalorder %s39_s22, %s39_s22 }
   0xb   :  { %p4581_p3 = scmp.ne.s32.totalorder %s39_s22, %s4580_s30  ;;  %p4586_p5 = scmp.lt.s32.totalorder %s4580_s30, %s4580_s30 }
   0xd   :  { %p4587_p6 = por %p4586_p5, %p4585_p4 }
   0xf   :  { %p4588_p7 = pnand %p4587_p6, %p4581_p3 }
  0x11   :  { %4591 = shalt.err (!%p4588_p7)
}
  0x12   :  { %s4711_s13 = smov 192   ;;  %s4712_s14 = smov 12  }
  0x13   :  { %44 = dma.hbm_to_vmem [thread:$0]  %s5748_s1, 3072, %s39_s22, [#allocation6], %s4711_s13, %s4711_s13, %s4712_s14  }
  0x14   :  { %s4713_s17 = smov [#allocation8]   ;;  %s4592_s21 = scalar_lea.hbm %s5751_s4, 4096 }
  0x15   :  { %s64_s18 = sshll.u32 %s4713_s17, 4  ;;  %p4593_p8 = scmp.ne.s32.totalorder %s5751_s4, %s4592_s21  ;;  %s65_s18 = int_to_ptr.vmem [resolvable:$true] %s64_s18 }
  0x16   :  { %p4596_p9 = scmp.lt.u32.totalorder %s4592_s21, %s5751_s4 }
  0x18   :  { %p4598_p10 = pnand %p4596_p9, %p4593_p8 }
  0x1a   :  { %4601 = shalt.err (!%p4598_p10)
}
  0x1b   :  { %s4602_s27 = scalar_lea.vmem %s65_s18, 4096  ;;  %p4607_p12 = scmp.lt.s32.totalorder %s65_s18, %s65_s18 }
  0x1c   :  { %p4603_p11 = scmp.ne.s32.totalorder %s65_s18, %s4602_s27  ;;  %p4608_p13 = scmp.lt.s32.totalorder %s4602_s27, %s4602_s27 }
  0x1e   :  { %p4609_p0 = por %p4608_p13, %p4607_p12 }
  0x20   :  { %p4610_p1 = pnand %p4609_p0, %p4603_p11 }
  0x22   :  { %4613 = shalt.err (!%p4610_p1)
}
  0x23   :  { %s4714_s1 = smov 256   ;;  %s4715_s22 = smov 16  }
  0x24   :  { %70 = dma.hbm_to_vmem [thread:$0]  %s5751_s4, 4096, %s65_s18, [#allocation9], %s4714_s1, %s4714_s1, %s4715_s22  }
  0x25   :  { %s4716_s30 = smov [#allocation2]   ;;  %s4614_s16 = scalar_lea.hbm %s5747_s0, 1024 }
  0x26   :  { %s26_s13 = sshll.u32 %s4716_s30, 4  ;;  %p4615_p2 = scmp.ne.s32.totalorder %s5747_s0, %s4614_s16  ;;  %s27_s13 = int_to_ptr.vmem [resolvable:$true] %s26_s13 }
  0x27   :  { %p4618_p3 = scmp.lt.u32.totalorder %s4614_s16, %s5747_s0 }
  0x29   :  { %p4620_p4 = pnand %p4618_p3, %p4615_p2 }
  0x2b   :  { %4623 = shalt.err (!%p4620_p4)
}
  0x2c   :  { %s4624_s23 = scalar_lea.vmem %s27_s13, 1024  ;;  %p4629_p6 = scmp.lt.s32.totalorder %s27_s13, %s27_s13 }
  0x2d   :  { %p4625_p5 = scmp.ne.s32.totalorder %s27_s13, %s4624_s23  ;;  %p4630_p7 = scmp.lt.s32.totalorder %s4624_s23, %s4624_s23 }
  0x2f   :  { %p4631_p8 = por %p4630_p7, %p4629_p6 }
  0x31   :  { %p4632_p9 = pnand %p4631_p8, %p4625_p5 }
  0x33   :  { %4635 = shalt.err (!%p4632_p9)
}
  0x34   :  { %s4717_s4 = smov 128   ;;  %s4718_s18 = smov 8  }
  0x35   :  { %32 = dma.hbm_to_vmem [thread:$0]  %s5747_s0, 1024, %s27_s13, [#allocation3], %s4717_s4, %s4717_s4, %s4718_s18  }
  0x36   :  { %s4719_s26 = smov [#allocation7]   ;;  %s4636_s28 = scalar_lea.hbm %s5749_s2, 1024 }
  0x37   :  { %s50_s27 = sshll.u32 %s4719_s26, 4  ;;  %p4637_p10 = scmp.ne.s32.totalorder %s5749_s2, %s4636_s28  ;;  %s51_s27 = int_to_ptr.vmem [resolvable:$true] %s50_s27 }
  0x38   :  { %p4640_p11 = scmp.lt.u32.totalorder %s4636_s28, %s5749_s2 }
  0x3a   :  { %p4642_p12 = pnand %p4640_p11, %p4637_p10 }
  0x3c   :  { %4645 = shalt.err (!%p4642_p12)
}
  0x3d   :  { %s4646_s16 = scalar_lea.vmem %s51_s27, 1024  ;;  %p4651_p0 = scmp.lt.s32.totalorder %s51_s27, %s51_s27 }
  0x3e   :  { %p4647_p13 = scmp.ne.s32.totalorder %s51_s27, %s4646_s16  ;;  %p4652_p1 = scmp.lt.s32.totalorder %s4646_s16, %s4646_s16 }
  0x40   :  { %p4653_p2 = por %p4652_p1, %p4651_p0 }
  0x42   :  { %p4654_p3 = pnand %p4653_p2, %p4647_p13 }
  0x44   :  { %4657 = shalt.err (!%p4654_p3)
}
  0x45   :  { %s4720_s0 = smov 64   ;;  %s4721_s13 = smov 4  }
  0x46   :  { %56 = dma.hbm_to_vmem [thread:$0]  %s5749_s2, 1024, %s51_s27, [#allocation6], %s4720_s0, %s4720_s0, %s4721_s13  }
  0x47   :  { %s4722_s20 = smov [#allocation10]   ;;  %s4658_s25 = scalar_lea.hbm %s5753_s6, 4096 }
  0x48   :  { %s78_s21 = sshll.u32 %s4722_s20, 4  ;;  %p4659_p4 = scmp.ne.s32.totalorder %s5753_s6, %s4658_s25  ;;  %s79_s21 = int_to_ptr.vmem [resolvable:$true] %s78_s21 }
  0x49   :  { %p4662_p5 = scmp.lt.u32.totalorder %s4658_s25, %s5753_s6 }
  0x4b   :  { %p4664_p6 = pnand %p4662_p5, %p4659_p4 }
  0x4d   :  { %4667 = shalt.err (!%p4664_p6)
}
  0x4e   :  { %s4668_s29 = scalar_lea.vmem %s79_s21, 4096  ;;  %p4673_p8 = scmp.lt.s32.totalorder %s79_s21, %s79_s21 }
  0x4f   :  { %p4669_p7 = scmp.ne.s32.totalorder %s79_s21, %s4668_s29  ;;  %p4674_p9 = scmp.lt.s32.totalorder %s4668_s29, %s4668_s29 }
  0x51   :  { %p4675_p10 = por %p4674_p9, %p4673_p8 }
  0x53   :  { %p4676_p11 = pnand %p4675_p10, %p4669_p7 }
  0x55   :  { %4679 = shalt.err (!%p4676_p11)
}
  0x56   :  { %84 = dma.hbm_to_vmem [thread:$0]  %s5753_s6, 4096, %s79_s21, [#allocation9], %s4720_s0, %s4720_s0, %s4721_s13  }
  0x57   :  { %4702 = dma.done.wait [#allocation3], 1024  }
  0x58   :  { %4703 = vsyncadd [#allocation3], 4294966272 }
  0x59   :  { %4704 = dma.done.wait [#allocation6], 4096  }
  0x5a   :  { %4705 = vsyncadd [#allocation6], 4294963200 }
  0x5b   :  { %4706 = dma.done.wait [#allocation9], 8192  }
  0x5c   :  { %4707 = vsyncadd [#allocation9], 4294959104  ;;  %v111_v0 = vld [vmem:[#allocation2] sm:$0xff]  ;;  %v113_v1 = vld [vmem:[#allocation2 + $0x10] sm:$0xff]  ;;  %v4723_v63 = vmov 0   ;;  %vm4725_vm0 = vmmov 0  }
  0x5d   :  { %121 = vadd.xlane.f32.xlu0 %v111_v0  ;;  %125 = vadd.xlane.f32.xlu1 %v113_v1  ;;  %v112_v2 = vld [vmem:[#allocation2 + $0x8] sm:$0xff]  ;;  %v114_v3 = vld [vmem:[#allocation2 + $0x18] sm:$0xff]  ;;  %v115_v4 = vld [vmem:[#allocation2 + $0x20] sm:$0xff]  ;;  %vm559_vm1 = vcmask 261120   ;;  %vm760_vm3 = vcmask 130048   ;;  %vm2581_vm5 = vcmask 523264  }
  0x5e   :  { %v116_v5 = vld [vmem:[#allocation2 + $0x28] sm:$0xff]  ;;  %v117_v6 = vld [vmem:[#allocation2 + $0x30] sm:$0xff]  ;;  %v118_v7 = vld [vmem:[#allocation2 + $0x38] sm:$0xff]  ;;  %434 = vmatprep.mubr.bf16.mxu0 %v4723_v63  ;;  %vm2590_vm6 = vcmask 785408  }
  0x5f   :  { %v4282_v8 = vld [vmem:[#allocation5 + $0x4] ss:$12 sps:$4 sm:$0xff]   ;;  %v4284_v9 = vld [vmem:[#allocation5] ss:$12 sps:$4 sm:$0xff]   ;;  %v4285_v10 = vld [vmem:[#allocation5 + $0x1c] ss:$12 sps:$4 sm:$0xff]  }
  0x60   :  { %v4287_v11 = vld [vmem:[#allocation5 + $0x8] ss:$12 sps:$4 sm:$0xff]   ;;  %402 = vmatprep.subr.bf16.mxu0 %v4282_v8  ;;  %v4288_v44 = vld [vmem:[#allocation5 + $0x18] ss:$12 sps:$4 sm:$0xff]   ;;  %v4291_v46 = vld [vmem:[#allocation5 + $0x20] ss:$12 sps:$4 sm:$0xff]  }
  0x61   :  { %123 = vadd.xlane.f32.xlu0 %v112_v2  ;;  %127 = vadd.xlane.f32.xlu1 %v114_v3  ;;  %v4289_v45 = vld [vmem:[#allocation5 + $0x34] ss:$12 sps:$4 sm:$0xff]   ;;  %v4292_v47 = vld [vmem:[#allocation5 + $0x30] ss:$12 sps:$4 sm:$0xff]   ;;  %v4293_v48 = vld [vmem:[#allocation5 + $0x4c] ss:$12 sps:$4 sm:$0xff]  }
  0x62   :  { %403 = vmatpush1.bf16.msra.mxu0 %v4284_v9  ;;  %4007 = vmatprep.subr.bf16.mxu1 %v4287_v11  ;;  %v4295_v49 = vld [vmem:[#allocation5 + $0x38] ss:$12 sps:$4 sm:$0xff]   ;;  %v4296_v50 = vld [vmem:[#allocation5 + $0x48] ss:$12 sps:$4 sm:$0xff]   ;;  %v4299_v52 = vld [vmem:[#allocation5 + $0x50] ss:$12 sps:$4 sm:$0xff]  }
  0x63   :  { %404 = vmatprep.subr.bf16.mxu0 %v4285_v10  ;;  %4008 = vmatpush3.bf16.msra.mxu1 %v4287_v11  ;;  %v4297_v51 = vld [vmem:[#allocation5 + $0x64] ss:$12 sps:$4 sm:$0xff]   ;;  %v4300_v53 = vld [vmem:[#allocation5 + $0x60] ss:$12 sps:$4 sm:$0xff]   ;;  %v4301_v54 = vld [vmem:[#allocation5 + $0x7c] ss:$12 sps:$4 sm:$0xff]  }
  0x64   :  { %4009 = vmatprep.subr.bf16.mxu1 %v4291_v46  ;;  %v4303_v55 = vld [vmem:[#allocation5 + $0x68] ss:$12 sps:$4 sm:$0xff]   ;;  %v4304_v56 = vld [vmem:[#allocation5 + $0x78] ss:$12 sps:$4 sm:$0xff]   ;;  %v4307_v58 = vld [vmem:[#allocation5 + $0x80] ss:$12 sps:$4 sm:$0xff]  }
  0x65   :  { %129 = vadd.xlane.f32.xlu0 %v115_v4  ;;  %131 = vadd.xlane.f32.xlu1 %v116_v5  ;;  %v4305_v57 = vld [vmem:[#allocation5 + $0x94] ss:$12 sps:$4 sm:$0xff]   ;;  %v4308_v59 = vld [vmem:[#allocation5 + $0x90] ss:$12 sps:$4 sm:$0xff]   ;;  %v4309_v60 = vld [vmem:[#allocation5 + $0xac] ss:$12 sps:$4 sm:$0xff]  }
  0x66   :  { %405 = vmatpush1.bf16.msra.mxu0 %v4288_v44  ;;  %v4311_v61 = vld [vmem:[#allocation5 + $0x98] ss:$12 sps:$4 sm:$0xff]   ;;  %v4312_v62 = vld [vmem:[#allocation5 + $0xa8] ss:$12 sps:$4 sm:$0xff]  }
  0x67   :  { %406 = vmatprep.subr.bf16.mxu0 %v4289_v45  ;;  %4010 = vmatpush3.bf16.msra.mxu1 %v4291_v46 }
  0x68   :  { %4011 = vmatprep.subr.bf16.mxu1 %v4295_v49 }
  0x69   :  { %133 = vadd.xlane.f32.xlu0 %v117_v6  ;;  %135 = vadd.xlane.f32.xlu1 %v118_v7 }
  0x6a   :  { %407 = vmatpush1.bf16.msra.mxu0 %v4292_v47 }
  0x6b   :  { %408 = vmatprep.subr.bf16.mxu0 %v4293_v48  ;;  %4012 = vmatpush3.bf16.msra.mxu1 %v4295_v49 }
  0x6c   :  { %4013 = vmatprep.subr.bf16.mxu1 %v4299_v52 }
  0x6e   :  { %409 = vmatpush1.bf16.msra.mxu0 %v4296_v50 }
  0x6f   :  { %410 = vmatprep.subr.bf16.mxu0 %v4297_v51  ;;  %4014 = vmatpush3.bf16.msra.mxu1 %v4299_v52 }
  0x70   :  { %4015 = vmatprep.subr.bf16.mxu1 %v4303_v55 }
  0x72   :  { %411 = vmatpush1.bf16.msra.mxu0 %v4300_v53 }
  0x73   :  { %412 = vmatprep.subr.bf16.mxu0 %v4301_v54  ;;  %4016 = vmatpush3.bf16.msra.mxu1 %v4303_v55 }
  0x74   :  { %4017 = vmatprep.subr.bf16.mxu1 %v4307_v58 }
  0x76   :  { %413 = vmatpush1.bf16.msra.mxu0 %v4304_v56 }
  0x77   :  { %414 = vmatprep.subr.bf16.mxu0 %v4305_v57  ;;  %4018 = vmatpush3.bf16.msra.mxu1 %v4307_v58 }
  0x78   :  { %4019 = vmatprep.subr.bf16.mxu1 %v4311_v61 }
  0x7a   :  { %415 = vmatpush1.bf16.msra.mxu0 %v4308_v59 }
  0x7b   :  { %416 = vmatprep.subr.bf16.mxu0 %v4309_v60  ;;  %4020 = vmatpush3.bf16.msra.mxu1 %v4311_v61 }
  0x7e   :  { %417 = vmatpush1.bf16.msra.mxu0 %v4312_v62 }
  0xea   :  { %v122_v12 = vpop.xlane.xlu0 %121  ;;  %v126_v13 = vpop.xlane.xlu1 %125 }
  0xeb   :  { %v138_v14 = vmul.f32 0.0078125, %v122_v12  ;;  %v140_v15 = vmul.f32 0.0078125, %v126_v13 }
  0xed   :  { %v4861_v16 = vsub.f32 %v111_v0, %v138_v14  ;;  %v4863_v17 = vsub.f32 %v113_v1, %v140_v15  ;;  %v4313_v0 = vld [vmem:[#allocation5 + $0xb0] ss:$12 sps:$4 sm:$0xff]  }
  0xee   :  { %v124_v18 = vpop.xlane.xlu0 %123  ;;  %v128_v19 = vpop.xlane.xlu1 %127  ;;  %4021 = vmatprep.subr.bf16.mxu1 %v4313_v0 }
  0xef   :  { %v139_v20 = vmul.f32 0.0078125, %v124_v18  ;;  %v154_v21 = vmul.f32 %v4861_v16, %v4861_v16  ;;  %v141_v22 = vmul.f32 0.0078125, %v128_v19  ;;  %v156_v23 = vmul.f32 %v4863_v17, %v4863_v17  ;;  %4022 = vmatpush3.bf16.msra.mxu1 %v4313_v0 }
  0xf1   :  { %162 = vadd.xlane.f32.xlu0 %v154_v21  ;;  %v4869_v24 = vsub.f32 %v112_v2, %v139_v20  ;;  %v4871_v25 = vsub.f32 %v114_v3, %v141_v22 }
  0xf2   :  { %v130_v26 = vpop.xlane.xlu0 %129  ;;  %v132_v27 = vpop.xlane.xlu1 %131 }
  0xf3   :  { %v142_v28 = vmul.f32 0.0078125, %v130_v26  ;;  %v155_v29 = vmul.f32 %v4869_v24, %v4869_v24  ;;  %v143_v30 = vmul.f32 0.0078125, %v132_v27  ;;  %v157_v31 = vmul.f32 %v4871_v25, %v4871_v25 }
  0xf5   :  { %166 = vadd.xlane.f32.xlu0 %v156_v23  ;;  %164 = vadd.xlane.f32.xlu1 %v155_v29  ;;  %v4877_v32 = vsub.f32 %v115_v4, %v142_v28  ;;  %v4879_v33 = vsub.f32 %v116_v5, %v143_v30  ;;  %v3705_v30 = vld [vmem:[%s5755_s8] ss:$0 sm:$0xff]  ;;  %s4726_s8 = smov 96  }
  0xf6   :  { %v134_v34 = vpop.xlane.xlu0 %133  ;;  %v136_v35 = vpop.xlane.xlu1 %135 }
  0xf7   :  { %v144_v36 = vmul.f32 0.0078125, %v134_v34  ;;  %v158_v37 = vmul.f32 %v4877_v32, %v4877_v32  ;;  %v145_v38 = vmul.f32 0.0078125, %v136_v35  ;;  %v159_v39 = vmul.f32 %v4879_v33, %v4879_v33 }
  0xf9   :  { %168 = vadd.xlane.f32.xlu1 %v157_v31  ;;  %170 = vadd.xlane.f32.xlu0 %v158_v37  ;;  %v4885_v40 = vsub.f32 %v117_v6, %v144_v36  ;;  %v4887_v41 = vsub.f32 %v118_v7, %v145_v38  ;;  %v3706_v38 = vld [vmem:[%s5756_s9] ss:$0 sm:$0xff]  ;;  %s4727_s9 = smov 32  }
  0xfb   :  { %v160_v42 = vmul.f32 %v4885_v40, %v4885_v40  ;;  %v161_v43 = vmul.f32 %v4887_v41, %v4887_v41 }
  0xfd   :  { %172 = vadd.xlane.f32.xlu1 %v159_v39  ;;  %174 = vadd.xlane.f32.xlu0 %v160_v42 }
 0x101   :  { %176 = vadd.xlane.f32.xlu1 %v161_v43 }
 0x17e   :  { %v163_v1 = vpop.xlane.xlu0 %162 }
 0x17f   :  { %v178_v2 = vmul.f32 0.0078125, %v163_v1 }
 0x181   :  { %v186_v3 = vadd.f32 1e-05, %v178_v2 }
 0x182   :  { %v165_v4 = vpop.xlane.xlu1 %164  ;;  %v167_v5 = vpop.xlane.xlu0 %166 }
 0x183   :  { %4402 = vrsqrt.f32 %v186_v3  ;;  %v179_v6 = vmul.f32 0.0078125, %v165_v4  ;;  %v180_v7 = vmul.f32 0.0078125, %v167_v5 }
 0x185   :  { %v187_v8 = vadd.f32 1e-05, %v179_v6  ;;  %v188_v9 = vadd.f32 1e-05, %v180_v7 }
 0x186   :  { %v169_v10 = vpop.xlane.xlu1 %168  ;;  %v171_v11 = vpop.xlane.xlu0 %170 }
 0x187   :  { %4404 = vrsqrt.f32 %v187_v8  ;;  %v181_v12 = vmul.f32 0.0078125, %v169_v10  ;;  %v182_v13 = vmul.f32 0.0078125, %v171_v11 }
 0x188   :  { %4406 = vrsqrt.f32 %v188_v9 }
 0x189   :  { %v189_v14 = vadd.f32 1e-05, %v181_v12  ;;  %v190_v15 = vadd.f32 1e-05, %v182_v13 }
 0x18a   :  { %v173_v18 = vpop.xlane.xlu1 %172  ;;  %v175_v19 = vpop.xlane.xlu0 %174 }
 0x18b   :  { %4408 = vrsqrt.f32 %v189_v14  ;;  %v183_v20 = vmul.f32 0.0078125, %v173_v18  ;;  %v184_v21 = vmul.f32 0.0078125, %v175_v19 }
 0x18c   :  { %4410 = vrsqrt.f32 %v190_v15 }
 0x18d   :  { %v4403_v22 = vpop.eup %4402  ;;  %v191_v23 = vadd.f32 1e-05, %v183_v20  ;;  %v192_v26 = vadd.f32 1e-05, %v184_v21 }
 0x18e   :  { %v177_v27 = vpop.xlane.xlu1 %176  ;;  %v202_v28 = vmul.f32 %v4403_v22, %v4861_v16 }
 0x18f   :  { %4412 = vrsqrt.f32 %v191_v23  ;;  %v185_v29 = vmul.f32 0.0078125, %v177_v27 }
 0x190   :  { %4414 = vrsqrt.f32 %v192_v26  ;;  %v216_v37 = vmul.f32 %v3705_v30, %v202_v28 }
 0x191   :  { %v4405_v31 = vpop.eup %4404  ;;  %v193_v34 = vadd.f32 1e-05, %v185_v29 }
 0x192   :  { %v4407_v35 = vpop.eup %4406  ;;  %v203_v36 = vmul.f32 %v4405_v31, %v4869_v24  ;;  %v230_v45 = vadd.f32 %v3706_v38, %v216_v37 }
 0x193   :  { %4416 = vrsqrt.f32 %v193_v34  ;;  %v204_v16 = vmul.f32 %v4407_v35, %v4863_v17 }
 0x194   :  { %v217_v39 = vmul.f32 %v3705_v30, %v203_v36 }
 0x195   :  { %v4409_v42 = vpop.eup %4408  ;;  %v218_v43 = vmul.f32 %v3705_v30, %v204_v16 }
 0x196   :  { %v4411_v44 = vpop.eup %4410  ;;  %v231_v46 = vadd.f32 %v3706_v38, %v217_v39  ;;  %v205_v47 = vmul.f32 %v4409_v42, %v4871_v25 }
 0x197   :  { %v206_v48 = vmul.f32 %v4411_v44, %v4877_v32  ;;  %v232_v51 = vadd.f32 %v3706_v38, %v218_v43 }
 0x198   :  { %v238_v49 = vpack.c.bf16 %v231_v46, %v230_v45  ;;  %v219_v24 = vmul.f32 %v3705_v30, %v205_v47 }
 0x199   :  { %v4413_v50 = vpop.eup %4412  ;;  %v220_v54 = vmul.f32 %v3705_v30, %v206_v48  ;;  %v552_v48 = vlaneseq }
 0x19a   :  { %v4415_v52 = vpop.eup %4414  ;;  %435 = vmatmul.mubr.bf16.vlgmr.msra.gmra.mrb[0].mxu0 %v238_v49  ;;  %4023 = vmatprep.mubr.bf16.mxu1 %v238_v49  ;;  %v233_v53 = vadd.f32 %v3706_v38, %v219_v24  ;;  %v207_v17 = vmul.f32 %v4413_v50, %v4879_v33 }
 0x19b   :  { %444 = vmatprep.mubr.bf16.mxu0 %v4723_v63  ;;  %v208_v55 = vmul.f32 %v4415_v52, %v4885_v40  ;;  %v234_v32 = vadd.f32 %v3706_v38, %v220_v54  ;;  %v4724_v40 = vmov 0.0   ;;  %v4973_v49 = vshrl.u32 %v552_v48, 7 }
 0x19c   :  { %v239_v56 = vpack.c.bf16 %v233_v53, %v232_v51  ;;  %v221_v57 = vmul.f32 %v3705_v30, %v207_v17  ;;  %4031 = vmatprep.subr.bf16.mxu1 %v4724_v40  ;;  %4043 = vmatprep.subr.bf16.mxu0 %v4724_v40  ;;  %v556_v24 = vand.u32 127, %v552_v48 }
 0x19d   :  { %v4417_v25 = vpop.eup %4416  ;;  %v222_v60 = vmul.f32 %v3705_v30, %v208_v55  ;;  %v554_v50 = vadd.s32 8, %v4973_v49 }
 0x19e   :  { %4024 = vmatmul.mubr.bf16.vlgmr.msra.gmra.mrb[0].mxu1 %v239_v56  ;;  %v235_v58 = vadd.f32 %v3706_v38, %v221_v57  ;;  %v209_v59 = vmul.f32 %v4417_v25, %v4887_v41  ;;  %vm4977_vm2 = vcmp.le.s32.totalorder %v556_v24, %v4973_v49 }
 0x19f   :  { %v236_v0 = vadd.f32 %v3706_v38, %v222_v60  ;;  %vm4981_vm4 = vcmp.le.s32.totalorder %v556_v24, %v554_v50 }
 0x1a0   :  { %v240_v61 = vpack.c.bf16 %v235_v58, %v234_v32  ;;  %v223_v62 = vmul.f32 %v3705_v30, %v209_v59 }
 0x1a2   :  { %445 = vmatmul.mubr.bf16.gmra.mrb[4].mxu0 %v239_v56  ;;  %4027 = vmatprep.mubr.bf16.mxu1 %v240_v61  ;;  %v237_v33 = vadd.f32 %v3706_v38, %v223_v62 }
 0x1a3   :  { %454 = vmatprep.mubr.bf16.mxu0 %v4723_v63 }
 0x1a4   :  { %v241_v1 = vpack.c.bf16 %v237_v33, %v236_v0 }
 0x1a6   :  { %4028 = vmatmul.mubr.bf16.gmra.mrb[4].mxu1 %v241_v1 }
 0x1a7   :  { %4033 = vmatprep.mubr.msk.bf16.mxu1 %vm4725_vm0, %v4724_v40 }
 0x1aa   :  { %455 = vmatmul.mubr.bf16.gmra.mrb[8].mxu0 %v240_v61 }
 0x1ab   :  { %464 = vmatprep.mubr.bf16.mxu0 %v4723_v63 }
 0x1b2   :  { %465 = vmatmul.mubr.bf16.gmra.mrb[12].mxu0 %v241_v1 }
 0x1b3   :  { %4045 = vmatprep.mubr.msk.bf16.mxu0 %vm4725_vm0, %v4724_v40 }
 0x26d   :  { %v436_v41 = vpop.f32.mrb[0].mxu0 }
 0x26e   :  { %v438_v2 = vpop.f32.mrb[1].mxu0 }
 0x26f   :  { %v440_v3 = vpop.f32.mrb[2].mxu0 }
 0x270   :  { %v4917_v4 = vpack.c.bf16 %v440_v3, %v436_v41  ;;  %v442_v5 = vpop.f32.mrb[3].mxu0 }
 0x271   :  { %v4919_v6 = vpack.c.bf16 %v442_v5, %v438_v2  ;;  %v4025_v7 = vpop.f32.mrb[0].mxu1 }
 0x272   :  { %v509_v8 = vpop.f32.mrb[1].mxu1 }
 0x273   :  { %v4026_v9 = vpop.f32.mrb[2].mxu1  ;;  %v564_v10 = vsel %vm559_vm1, %v4919_v6, 0 }
 0x274   :  { %v4923_v11 = vpack.c.bf16 %v4026_v9, %v4025_v7  ;;  %v512_v12 = vpop.f32.mrb[3].mxu1  ;;  %4032 = vmatpush3.bf16.xpose.msra.mxu1 %v564_v10 }
 0x275   :  { %v4925_v13 = vpack.c.bf16 %v512_v12, %v509_v8  ;;  %v446_v14 = vpop.f32.mrb[4].mxu0  ;;  %4037 = vmatprep.subr.bf16.mxu1 %v4724_v40 }
 0x276   :  { %v448_v15 = vpop.f32.mrb[5].mxu0 }
 0x277   :  { %v450_v18 = vpop.f32.mrb[6].mxu0 }
 0x278   :  { %v4928_v19 = vpack.c.bf16 %v450_v18, %v446_v14  ;;  %v452_v20 = vpop.f32.mrb[7].mxu0 }
 0x279   :  { %v4930_v21 = vpack.c.bf16 %v452_v20, %v448_v15  ;;  %v4029_v22 = vpop.f32.mrb[4].mxu1 }
 0x27a   :  { %v525_v23 = vpop.f32.mrb[5].mxu1 }
 0x27b   :  { %v4030_v26 = vpop.f32.mrb[6].mxu1  ;;  %4034 = vmatmul.mubr.msk.bf16.vlgmr.msra.gmra.mrb[8].mxu1 %vm559_vm1, %v4917_v4  ;;  %v611_v27 = vsel %vm559_vm1, %v4930_v21, 0 }
 0x27c   :  { %v4936_v28 = vpack.c.bf16 %v4030_v26, %v4029_v22  ;;  %v528_v29 = vpop.f32.mrb[7].mxu1  ;;  %4038 = vmatpush3.bf16.xpose.msra.mxu1 %v611_v27  ;;  %4039 = vmatprep.mubr.msk.bf16.mxu1 %vm4725_vm0, %v4724_v40 }
 0x27d   :  { %v4940_v30 = vpack.c.bf16 %v528_v29, %v525_v23  ;;  %v456_v31 = vpop.f32.mrb[8].mxu0  ;;  %4049 = vmatprep.subr.bf16.mxu1 %v4724_v40 }
 0x27e   :  { %v458_v34 = vpop.f32.mrb[9].mxu0 }
 0x27f   :  { %v460_v35 = vpop.f32.mrb[10].mxu0 }
 0x280   :  { %v4943_v36 = vpack.c.bf16 %v460_v35, %v456_v31  ;;  %v462_v37 = vpop.f32.mrb[11].mxu0 }
 0x281   :  { %v4945_v38 = vpack.c.bf16 %v462_v37, %v458_v34 }
 0x283   :  { %4040 = vmatmul.mubr.msk.bf16.vlgmr.msra.gmra.mrb[12].mxu1 %vm559_vm1, %v4928_v19  ;;  %v658_v16 = vsel %vm559_vm1, %v4945_v38, 0 }
 0x284   :  { %4044 = vmatpush3.bf16.xpose.msra.mxu0 %v658_v16  ;;  %4051 = vmatprep.mubr.msk.bf16.mxu1 %vm4725_vm0, %v4724_v40 }
 0x285   :  { %v466_v39 = vpop.f32.mrb[12].mxu0  ;;  %4055 = vmatprep.subr.bf16.mxu0 %v4724_v40 }
 0x286   :  { %v468_v42 = vpop.f32.mrb[13].mxu0 }
 0x287   :  { %v470_v43 = vpop.f32.mrb[14].mxu0 }
 0x288   :  { %v4954_v44 = vpack.c.bf16 %v470_v43, %v466_v39  ;;  %v472_v45 = vpop.f32.mrb[15].mxu0 }
 0x289   :  { %v4956_v46 = vpack.c.bf16 %v472_v45, %v468_v42 }
 0x28b   :  { %4046 = vmatmul.mubr.msk.bf16.vlgmr.msra.gmra.mrb[16].mxu0 %vm559_vm1, %v4943_v36  ;;  %v705_v47 = vsel %vm559_vm1, %v4956_v46, 0 }
 0x28c   :  { %4050 = vmatpush3.bf16.xpose.msra.mxu1 %v705_v47  ;;  %4056 = vmatpush3.bf16.msra.mxu0 %v4925_v13 }
 0x28d   :  { %4061 = vmatprep.subr.bf16.mxu1 %v4724_v40  ;;  %4057 = vmatprep.mubr.msk.bf16.mxu0 %vm4725_vm0, %v4724_v40 }
 0x28e   :  { %4067 = vmatprep.subr.bf16.mxu0 %v4724_v40 }
 0x293   :  { %4052 = vmatmul.mubr.msk.bf16.vlgmr.msra.gmra.mrb[16].mxu1 %vm559_vm1, %v4954_v44 }
 0x294   :  { %4062 = vmatpush3.bf16.msra.mxu1 %v4923_v11  ;;  %4063 = vmatprep.mubr.msk.bf16.mxu1 %vm4725_vm0, %v4724_v40 }
 0x295   :  { %4073 = vmatprep.subr.bf16.mxu1 %v4724_v40 }
 0x34e   :  { %v600_v52 = vpop.f32.mrb[8].mxu1 }
 0x34f   :  { %v752_v17 = vsel %vm4977_vm2, %v600_v52, -inf  ;;  %v4035_v54 = vpop.f32.mrb[9].mxu1 }
 0x350   :  { %v603_v55 = vpop.f32.mrb[10].mxu1  ;;  %v761_v56 = vsel %vm760_vm3, %v752_v17, -inf }
 0x351   :  { %v753_v57 = vsel %vm4981_vm4, %v603_v55, -inf  ;;  %762 = vmax.xlane.f32.xlu0 %v761_v56  ;;  %v4036_v25 = vpop.f32.mrb[11].mxu1 }
 0x352   :  { %v764_v32 = vsel %vm760_vm3, %v753_v57, -inf }
 0x353   :  { %765 = vmax.xlane.f32.xlu1 %v764_v32 }
 0x356   :  { %v647_v58 = vpop.f32.mrb[12].mxu1 }
 0x357   :  { %v754_v59 = vsel %vm4977_vm2, %v647_v58, -inf  ;;  %v4041_v60 = vpop.f32.mrb[13].mxu1 }
 0x358   :  { %v650_v61 = vpop.f32.mrb[14].mxu1  ;;  %v767_v62 = vsel %vm760_vm3, %v754_v59, -inf }
 0x359   :  { %v755_v0 = vsel %vm4981_vm4, %v650_v61, -inf  ;;  %768 = vmax.xlane.f32.xlu0 %v767_v62  ;;  %v4042_v33 = vpop.f32.mrb[15].mxu1 }
 0x35a   :  { %v770_v1 = vsel %vm760_vm3, %v755_v0, -inf }
 0x35b   :  { %771 = vmax.xlane.f32.xlu1 %v770_v1 }
 0x35e   :  { %v694_v41 = vpop.f32.mrb[16].mxu0 }
 0x35f   :  { %v756_v2 = vsel %vm4977_vm2, %v694_v41, -inf  ;;  %v4047_v3 = vpop.f32.mrb[17].mxu0 }
 0x360   :  { %v697_v5 = vpop.f32.mrb[18].mxu0  ;;  %v773_v7 = vsel %vm760_vm3, %v756_v2, -inf }
 0x361   :  { %v757_v8 = vsel %vm4981_vm4, %v697_v5, -inf  ;;  %774 = vmax.xlane.f32.xlu0 %v773_v7  ;;  %v4048_v9 = vpop.f32.mrb[19].mxu0 }
 0x362   :  { %v776_v10 = vsel %vm760_vm3, %v757_v8, -inf }
 0x363   :  { %777 = vmax.xlane.f32.xlu1 %v776_v10 }
 0x366   :  { %v741_v12 = vpop.f32.mrb[16].mxu1 }
 0x367   :  { %v758_v14 = vsel %vm4977_vm2, %v741_v12, -inf  ;;  %v4053_v15 = vpop.f32.mrb[17].mxu1 }
 0x368   :  { %v744_v18 = vpop.f32.mrb[18].mxu1  ;;  %v779_v20 = vsel %vm760_vm3, %v758_v14, -inf }
 0x369   :  { %v759_v22 = vsel %vm4981_vm4, %v744_v18, -inf  ;;  %780 = vmax.xlane.f32.xlu0 %v779_v20  ;;  %v4054_v23 = vpop.f32.mrb[19].mxu1 }
 0x36a   :  { %v782_v26 = vsel %vm760_vm3, %v759_v22, -inf }
 0x36b   :  { %783 = vmax.xlane.f32.xlu1 %v782_v26 }
 0x3de   :  { %v763_v27 = vpop.xlane.xlu0 %762 }
 0x3df   :  { %v785_v29 = vsub.f32 %v752_v17, %v763_v27 }
 0x3e0   :  { %v766_v31 = vpop.xlane.xlu1 %765 }
 0x3e1   :  { %v793_v34 = vmul.f32 1.442695, %v785_v29  ;;  %v786_v35 = vsub.f32 %v753_v57, %v766_v31 }
 0x3e3   :  { %4418 = vpow2.f32 %v793_v34  ;;  %v795_v37 = vmul.f32 1.442695, %v786_v35 }
 0x3e5   :  { %4420 = vpow2.f32 %v795_v37 }
 0x3e6   :  { %v769_v16 = vpop.xlane.xlu0 %768 }
 0x3e7   :  { %v787_v39 = vsub.f32 %v754_v59, %v769_v16 }
 0x3e8   :  { %v772_v42 = vpop.xlane.xlu1 %771 }
 0x3e9   :  { %v797_v43 = vmul.f32 1.442695, %v787_v39  ;;  %v788_v45 = vsub.f32 %v755_v0, %v772_v42 }
 0x3eb   :  { %4422 = vpow2.f32 %v797_v43  ;;  %v799_v47 = vmul.f32 1.442695, %v788_v45 }
 0x3ed   :  { %v4419_v48 = vpop.eup %4418  ;;  %4424 = vpow2.f32 %v799_v47 }
 0x3ee   :  { %v775_v24 = vpop.xlane.xlu0 %774  ;;  %v809_v50 = vsel %vm760_vm3, %v4419_v48, 0.0 }
 0x3ef   :  { %v4421_v52 = vpop.eup %4420  ;;  %v789_v17 = vsub.f32 %v756_v2, %v775_v24  ;;  %810 = vadd.xlane.f32.xlu0 %v809_v50 }
 0x3f0   :  { %v778_v54 = vpop.xlane.xlu1 %777  ;;  %v812_v55 = vsel %vm760_vm3, %v4421_v52, 0.0 }
 0x3f1   :  { %v801_v56 = vmul.f32 1.442695, %v789_v17  ;;  %v790_v57 = vsub.f32 %v757_v8, %v778_v54  ;;  %813 = vadd.xlane.f32.xlu1 %v812_v55 }
 0x3f3   :  { %4426 = vpow2.f32 %v801_v56  ;;  %v803_v25 = vmul.f32 1.442695, %v790_v57 }
 0x3f5   :  { %v4423_v32 = vpop.eup %4422  ;;  %4428 = vpow2.f32 %v803_v25 }
 0x3f6   :  { %v781_v58 = vpop.xlane.xlu0 %780  ;;  %v815_v59 = vsel %vm760_vm3, %v4423_v32, 0.0 }
 0x3f7   :  { %v4425_v60 = vpop.eup %4424  ;;  %v791_v61 = vsub.f32 %v758_v14, %v781_v58  ;;  %816 = vadd.xlane.f32.xlu0 %v815_v59 }
 0x3f8   :  { %v818_v62 = vsel %vm760_vm3, %v4425_v60, 0.0  ;;  %v784_v7 = vpop.xlane.xlu1 %783 }
 0x3f9   :  { %v805_v0 = vmul.f32 1.442695, %v791_v61  ;;  %819 = vadd.xlane.f32.xlu1 %v818_v62  ;;  %v792_v8 = vsub.f32 %v759_v22, %v784_v7 }
 0x3fb   :  { %4430 = vpow2.f32 %v805_v0  ;;  %v807_v9 = vmul.f32 1.442695, %v792_v8 }
 0x3fd   :  { %v4427_v33 = vpop.eup %4426  ;;  %4432 = vpow2.f32 %v807_v9 }
 0x3fe   :  { %v821_v1 = vsel %vm760_vm3, %v4427_v33, 0.0 }
 0x3ff   :  { %v4429_v41 = vpop.eup %4428  ;;  %822 = vadd.xlane.f32.xlu0 %v821_v1 }
 0x400   :  { %v824_v2 = vsel %vm760_vm3, %v4429_v41, 0.0 }
 0x401   :  { %825 = vadd.xlane.f32.xlu1 %v824_v2 }
 0x405   :  { %v5015_v3 = vpop.eup %4430 }
 0x406   :  { %v827_v5 = vsel %vm760_vm3, %v5015_v3, 0.0 }
 0x407   :  { %828 = vadd.xlane.f32.xlu0 %v827_v5  ;;  %v5029_v10 = vpop.eup %4432 }
 0x408   :  { %v830_v12 = vsel %vm760_vm3, %v5029_v10, 0.0 }
 0x412   :  { %1090 = vrot.lane.b32.xlu1 %v4930_v21, %s4726_s8 }
 0x416   :  { %1034 = vrot.lane.b32.xlu1 %v4917_v4, %s4726_s8 }
 0x41d   :  { %1037 = vrot.lane.b32.xlu0 %v4919_v6, %s4726_s8 }
 0x421   :  { %1087 = vrot.lane.b32.xlu0 %v4928_v19, %s4726_s8 }
 0x425   :  { %1140 = vrot.lane.b32.xlu0 %v4943_v36, %s4726_s8 }
 0x43a   :  { %831 = vadd.xlane.f32.xlu1 %v830_v12 }
 0x44b   :  { %1143 = vrot.lane.b32.xlu1 %v4945_v38, %s4726_s8 }
 0x44f   :  { %1196 = vrot.lane.b32.xlu1 %v4956_v46, %s4726_s8 }
 0x453   :  { %1193 = vrot.lane.b32.xlu1 %v4954_v44, %s4726_s8 }
 0x47c   :  { %v811_v14 = vpop.xlane.xlu0 %810 }
 0x47d   :  { %4434 = vrcp.f32 %v811_v14 }
 0x47e   :  { %v814_v15 = vpop.xlane.xlu1 %813 }
 0x47f   :  { %4436 = vrcp.f32 %v814_v15 }
 0x484   :  { %v817_v18 = vpop.xlane.xlu0 %816 }
 0x485   :  { %4438 = vrcp.f32 %v817_v18 }
 0x486   :  { %v820_v20 = vpop.xlane.xlu1 %819 }
 0x487   :  { %v4435_v22 = vpop.eup %4434  ;;  %4440 = vrcp.f32 %v820_v20 }
 0x488   :  { %v841_v26 = vmul.f32 %v4435_v22, %v4419_v48 }
 0x489   :  { %v4437_v23 = vpop.eup %4436 }
 0x48a   :  { %v842_v27 = vmul.f32 %v4437_v23, %v4421_v52 }
 0x48c   :  { %v823_v29 = vpop.xlane.xlu0 %822  ;;  %v849_v31 = vpack.c.bf16 %v842_v27, %v841_v26 }
 0x48d   :  { %4442 = vrcp.f32 %v823_v29 }
 0x48e   :  { %4058 = vmatmul.mubr.msk.bf16.vlgmr.msra.gmra.mrb[20].mxu0 %vm760_vm3, %v849_v31  ;;  %v826_v34 = vpop.xlane.xlu1 %825 }
 0x48f   :  { %v4439_v35 = vpop.eup %4438  ;;  %4068 = vmatpush3.bf16.msra.mxu0 %v4940_v30  ;;  %4444 = vrcp.f32 %v826_v34  ;;  %4069 = vmatprep.mubr.msk.bf16.mxu0 %vm4725_vm0, %v4724_v40 }
 0x490   :  { %4079 = vmatprep.subr.bf16.mxu0 %v4724_v40  ;;  %v843_v16 = vmul.f32 %v4439_v35, %v4423_v32 }
 0x491   :  { %v4441_v37 = vpop.eup %4440 }
 0x492   :  { %v844_v39 = vmul.f32 %v4441_v37, %v4425_v60  ;;  %v1091_v54 = vpop.permute.xlu1 %1090 }
 0x494   :  { %v850_v42 = vpack.c.bf16 %v844_v39, %v843_v16  ;;  %v829_v43 = vpop.xlane.xlu0 %828 }
 0x495   :  { %4446 = vrcp.f32 %v829_v43 }
 0x496   :  { %4064 = vmatmul.mubr.msk.bf16.vlgmr.msra.gmra.mrb[20].mxu1 %vm760_vm3, %v850_v42  ;;  %v1035_v55 = vpop.permute.xlu1 %1034 }
 0x497   :  { %v4443_v45 = vpop.eup %4442  ;;  %4074 = vmatpush3.bf16.msra.mxu1 %v4936_v28  ;;  %4075 = vmatprep.mubr.msk.bf16.mxu1 %vm4725_vm0, %v4724_v40 }
 0x498   :  { %4085 = vmatprep.subr.bf16.mxu1 %v4724_v40  ;;  %v845_v48 = vmul.f32 %v4443_v45, %v4427_v33  ;;  %v1038_v50 = vpop.permute.xlu0 %1037  ;;  %v1096_v33 = vsel %vm559_vm1, %v1091_v54, 0 }
 0x499   :  { %v4445_v47 = vpop.eup %4444  ;;  %v1043_v17 = vsel %vm559_vm1, %v1038_v50, 0 }
 0x49a   :  { %v846_v24 = vmul.f32 %v4445_v47, %v4429_v41 }
 0x49c   :  { %v851_v52 = vpack.c.bf16 %v846_v24, %v845_v48  ;;  %v1088_v32 = vpop.permute.xlu0 %1087 }
 0x49e   :  { %4070 = vmatmul.mubr.msk.bf16.vlgmr.msra.gmra.mrb[24].mxu0 %vm760_vm3, %v851_v52 }
 0x49f   :  { %4080 = vmatpush3.bf16.xpose.msra.mxu0 %v1043_v17  ;;  %4081 = vmatprep.mubr.msk.bf16.mxu0 %vm4725_vm0, %v4724_v40  ;;  %v4447_v58 = vpop.eup %4446 }
 0x4a0   :  { %4091 = vmatprep.subr.bf16.mxu0 %v4724_v40  ;;  %v847_v60 = vmul.f32 %v4447_v58, %v5015_v3  ;;  %v1141_v61 = vpop.permute.xlu0 %1140 }
 0x4a6   :  { %4082 = vmatmul.mubr.msk.bf16.vlgmr.msra.gmra.mrb[28].mxu0 %vm559_vm1, %v1035_v55 }
 0x4a7   :  { %4093 = vmatprep.mubr.msk.bf16.mxu0 %vm4725_vm0, %v4724_v40 }
 0x4c7   :  { %v832_v56 = vpop.xlane.xlu1 %831 }
 0x4c8   :  { %4448 = vrcp.f32 %v832_v56 }
 0x4cb   :  { %v1144_v57 = vpop.permute.xlu1 %1143 }
 0x4cc   :  { %v1149_v25 = vsel %vm559_vm1, %v1144_v57, 0 }
 0x4cd   :  { %4092 = vmatpush3.bf16.xpose.msra.mxu0 %v1149_v25 }
 0x4ce   :  { %4103 = vmatprep.subr.bf16.mxu0 %v4724_v40 }
 0x4cf   :  { %v1197_v1 = vpop.permute.xlu1 %1196 }
 0x4d0   :  { %v1202_v41 = vsel %vm559_vm1, %v1197_v1, 0 }
 0x4d2   :  { %v4449_v59 = vpop.eup %4448 }
 0x4d3   :  { %v848_v62 = vmul.f32 %v4449_v59, %v5029_v10  ;;  %v1194_v2 = vpop.permute.xlu1 %1193 }
 0x4d4   :  { %4094 = vmatmul.mubr.msk.bf16.vlgmr.msra.gmra.mrb[32].mxu0 %vm559_vm1, %v1141_v61 }
 0x4d5   :  { %v852_v0 = vpack.c.bf16 %v848_v62, %v847_v60  ;;  %4105 = vmatprep.mubr.msk.bf16.mxu0 %vm4725_vm0, %v4724_v40 }
 0x4d7   :  { %4076 = vmatmul.mubr.msk.bf16.vlgmr.msra.gmra.mrb[24].mxu1 %vm760_vm3, %v852_v0 }
 0x4d8   :  { %4086 = vmatpush3.bf16.xpose.msra.mxu1 %v1096_v33  ;;  %4087 = vmatprep.mubr.msk.bf16.mxu1 %vm4725_vm0, %v4724_v40 }
 0x4d9   :  { %4097 = vmatprep.subr.bf16.mxu1 %v4724_v40 }
 0x4df   :  { %4088 = vmatmul.mubr.msk.bf16.vlgmr.msra.gmra.mrb[28].mxu1 %vm559_vm1, %v1088_v32 }
 0x4e0   :  { %4098 = vmatpush3.bf16.xpose.msra.mxu1 %v1202_v41  ;;  %4099 = vmatprep.mubr.msk.bf16.mxu1 %vm4725_vm0, %v4724_v40 }
 0x4e1   :  { %4109 = vmatprep.subr.bf16.mxu1 %v4724_v40 }
 0x4e7   :  { %4100 = vmatmul.mubr.msk.bf16.vlgmr.msra.gmra.mrb[32].mxu1 %vm559_vm1, %v1194_v2 }
 0x4e8   :  { %4111 = vmatprep.mubr.msk.bf16.mxu1 %vm4725_vm0, %v4724_v40 }
 0x561   :  { %v5077_v3 = vpop.f32.mrb[20].mxu0 }
 0x562   :  { %v4059_v5 = vpop.f32.mrb[21].mxu0 }
 0x563   :  { %v5079_v7 = vpop.f32.mrb[22].mxu0 }
 0x564   :  { %v4060_v9 = vpop.f32.mrb[23].mxu0 }
 0x569   :  { %v5083_v10 = vpop.f32.mrb[20].mxu1 }
 0x56a   :  { %v4065_v12 = vpop.f32.mrb[21].mxu1 }
 0x56b   :  { %v5085_v14 = vpop.f32.mrb[22].mxu1 }
 0x56c   :  { %v4066_v18 = vpop.f32.mrb[23].mxu1 }
 0x571   :  { %v5089_v20 = vpop.f32.mrb[24].mxu0 }
 0x572   :  { %v4071_v22 = vpop.f32.mrb[25].mxu0 }
 0x573   :  { %v5091_v23 = vpop.f32.mrb[26].mxu0 }
 0x574   :  { %v4072_v27 = vpop.f32.mrb[27].mxu0 }
 0x579   :  { %v1079_v29 = vpop.f32.mrb[28].mxu0 }
 0x57a   :  { %v1245_v31 = vsel %vm4977_vm2, %v1079_v29, -inf  ;;  %v4083_v34 = vpop.f32.mrb[29].mxu0 }
 0x57b   :  { %v1082_v35 = vpop.f32.mrb[30].mxu0  ;;  %v1253_v37 = vsel %vm760_vm3, %v1245_v31, -inf }
 0x57c   :  { %v1246_v16 = vsel %vm4981_vm4, %v1082_v35, -inf  ;;  %1254 = vmax.xlane.f32.xlu0 %v1253_v37  ;;  %v4084_v39 = vpop.f32.mrb[31].mxu0 }
 0x57d   :  { %v1256_v42 = vsel %vm760_vm3, %v1246_v16, -inf }
 0x57e   :  { %1257 = vmax.xlane.f32.xlu1 %v1256_v42 }
 0x5a7   :  { %v1185_v43 = vpop.f32.mrb[32].mxu0 }
 0x5a8   :  { %v4095_v45 = vpop.f32.mrb[33].mxu0  ;;  %v1249_v0 = vsel %vm4977_vm2, %v1185_v43, -inf }
 0x5a9   :  { %v1188_v47 = vpop.f32.mrb[34].mxu0  ;;  %v1265_v2 = vsel %vm760_vm3, %v1249_v0, -inf }
 0x5aa   :  { %v1250_v48 = vsel %vm4981_vm4, %v1188_v47, -inf  ;;  %v5103_v24 = vpop.f32.mrb[24].mxu1  ;;  %v4096_v50 = vpop.f32.mrb[35].mxu0 }
 0x5ab   :  { %v4077_v52 = vpop.f32.mrb[25].mxu1  ;;  %v1268_v17 = vsel %vm760_vm3, %v1250_v48, -inf }
 0x5ac   :  { %1269 = vmax.xlane.f32.xlu1 %v1268_v17  ;;  %v5106_v54 = vpop.f32.mrb[26].mxu1 }
 0x5ad   :  { %v4078_v56 = vpop.f32.mrb[27].mxu1 }
 0x5b2   :  { %v1132_v57 = vpop.f32.mrb[28].mxu1 }
 0x5b3   :  { %v1247_v25 = vsel %vm4977_vm2, %v1132_v57, -inf  ;;  %v4089_v32 = vpop.f32.mrb[29].mxu1 }
 0x5b4   :  { %v1135_v58 = vpop.f32.mrb[30].mxu1  ;;  %v1259_v59 = vsel %vm760_vm3, %v1247_v25, -inf }
 0x5b5   :  { %v1248_v60 = vsel %vm4981_vm4, %v1135_v58, -inf  ;;  %1260 = vmax.xlane.f32.xlu0 %v1259_v59  ;;  %v4090_v61 = vpop.f32.mrb[31].mxu1 }
 0x5b6   :  { %v1262_v62 = vsel %vm760_vm3, %v1248_v60, -inf }
 0x5b9   :  { %1263 = vmax.xlane.f32.xlu0 %v1262_v62 }
 0x5ba   :  { %v1238_v33 = vpop.f32.mrb[32].mxu1 }
 0x5bb   :  { %v4101_v1 = vpop.f32.mrb[33].mxu1  ;;  %v1251_v5 = vsel %vm4977_vm2, %v1238_v33, -inf }
 0x5bc   :  { %v1241_v41 = vpop.f32.mrb[34].mxu1  ;;  %v1271_v12 = vsel %vm760_vm3, %v1251_v5, -inf }
 0x5bd   :  { %1394 = vrot.lane.b32.xlu1 %v4923_v11, %s4726_s8  ;;  %1266 = vmax.xlane.f32.xlu0 %v1265_v2  ;;  %v4102_v9 = vpop.f32.mrb[35].mxu1  ;;  %v5130_v18 = vsel %vm4981_vm4, %v1241_v41, -inf }
 0x5be   :  { %v1274_v22 = vsel %vm760_vm3, %v5130_v18, -inf }
 0x5c1   :  { %1442 = vrot.lane.b32.xlu1 %v4940_v30, %s4726_s8  ;;  %1272 = vmax.xlane.f32.xlu0 %v1271_v12 }
 0x5d7   :  { %1346 = vrot.lane.b32.xlu0 %v4925_v13, %s4726_s8 }
 0x5e5   :  { %1275 = vmax.xlane.f32.xlu1 %v1274_v22 }
 0x5f6   :  { %1490 = vrot.lane.b32.xlu1 %v4936_v28, %s4726_s8 }
 0x609   :  { %v1255_v27 = vpop.xlane.xlu0 %1254 }
 0x60a   :  { %v1277_v29 = vsub.f32 %v1245_v31, %v1255_v27 }
 0x60b   :  { %v1258_v34 = vpop.xlane.xlu1 %1257 }
 0x60c   :  { %v1285_v35 = vmul.f32 1.442695, %v1277_v29  ;;  %v1278_v37 = vsub.f32 %v1246_v16, %v1258_v34 }
 0x60e   :  { %4450 = vpow2.f32 %v1285_v35  ;;  %v1287_v39 = vmul.f32 1.442695, %v1278_v37 }
 0x610   :  { %4452 = vpow2.f32 %v1287_v39 }
 0x618   :  { %v5136_v42 = vpop.eup %4450 }
 0x619   :  { %v1301_v43 = vsel %vm760_vm3, %v5136_v42, 0.0 }
 0x61a   :  { %v5140_v45 = vpop.eup %4452  ;;  %1302 = vadd.xlane.f32.xlu0 %v1301_v43 }
 0x61b   :  { %v1304_v47 = vsel %vm760_vm3, %v5140_v45, 0.0 }
 0x61c   :  { %1305 = vadd.xlane.f32.xlu1 %v1304_v47 }
 0x639   :  { %v1270_v50 = vpop.xlane.xlu1 %1269 }
 0x63a   :  { %v1282_v17 = vsub.f32 %v1250_v48, %v1270_v50 }
 0x63c   :  { %v1295_v58 = vmul.f32 1.442695, %v1282_v17 }
 0x63d   :  { %v1395_v31 = vpop.permute.xlu1 %1394 }
 0x63e   :  { %4110 = vmatpush3.bf16.msra.mxu1 %v1395_v31 }
 0x63f   :  { %4121 = vmatprep.subr.bf16.mxu1 %v4724_v40 }
 0x641   :  { %v1443_v35 = vpop.permute.xlu1 %1442 }
 0x642   :  { %v1261_v16 = vpop.xlane.xlu0 %1260 }
 0x643   :  { %v1279_v52 = vsub.f32 %v1247_v25, %v1261_v16 }
 0x645   :  { %v1289_v56 = vmul.f32 1.442695, %v1279_v52 }
 0x646   :  { %v1264_v57 = vpop.xlane.xlu0 %1263 }
 0x647   :  { %4454 = vpow2.f32 %v1289_v56  ;;  %v1280_v32 = vsub.f32 %v1248_v60, %v1264_v57 }
 0x649   :  { %v1291_v59 = vmul.f32 1.442695, %v1280_v32 }
 0x64a   :  { %v1267_v61 = vpop.xlane.xlu0 %1266 }
 0x64b   :  { %4456 = vpow2.f32 %v1291_v59  ;;  %v1281_v62 = vsub.f32 %v1249_v0, %v1267_v61 }
 0x64c   :  { %4458 = vpow2.f32 %v1295_v58 }
 0x64d   :  { %v1293_v33 = vmul.f32 1.442695, %v1281_v62 }
 0x64e   :  { %v1273_v1 = vpop.xlane.xlu0 %1272 }
 0x64f   :  { %4460 = vpow2.f32 %v1293_v33  ;;  %v1283_v41 = vsub.f32 %v1251_v5, %v1273_v1 }
 0x651   :  { %v4455_v2 = vpop.eup %4454  ;;  %v1297_v9 = vmul.f32 1.442695, %v1283_v41 }
 0x652   :  { %v1347_v12 = vpop.permute.xlu0 %1346  ;;  %v1307_v25 = vsel %vm760_vm3, %v4455_v2, 0.0 }
 0x653   :  { %4462 = vpow2.f32 %v1297_v9  ;;  %1308 = vadd.xlane.f32.xlu0 %v1307_v25  ;;  %4104 = vmatpush3.bf16.msra.mxu0 %v1347_v12 }
 0x654   :  { %4115 = vmatprep.subr.bf16.mxu0 %v4724_v40 }
 0x655   :  { %v4457_v48 = vpop.eup %4456 }
 0x656   :  { %v1310_v60 = vsel %vm760_vm3, %v4457_v48, 0.0  ;;  %v4459_v22 = vpop.eup %4458 }
 0x657   :  { %1311 = vadd.xlane.f32.xlu1 %v1310_v60  ;;  %v1316_v5 = vsel %vm760_vm3, %v4459_v22, 0.0 }
 0x659   :  { %v4461_v0 = vpop.eup %4460 }
 0x65a   :  { %v1313_v27 = vsel %vm760_vm3, %v4461_v0, 0.0 }
 0x65b   :  { %1314 = vadd.xlane.f32.xlu0 %v1313_v27  ;;  %1317 = vadd.xlane.f32.xlu1 %v1316_v5 }
 0x65d   :  { %v5150_v29 = vpop.eup %4462 }
 0x65e   :  { %v1319_v34 = vsel %vm760_vm3, %v5150_v29, 0.0 }
 0x65f   :  { %1320 = vadd.xlane.f32.xlu0 %v1319_v34 }
 0x66c   :  { %1594 = vrot.lane.b32.xlu1 %v4930_v21, %s4720_s0 }
 0x672   :  { %v1276_v37 = vpop.xlane.xlu1 %1275 }
 0x673   :  { %v1284_v39 = vsub.f32 %v5130_v18, %v1276_v37 }
 0x675   :  { %1543 = vrot.lane.b32.xlu0 %v4919_v6, %s4720_s0  ;;  %v1299_v43 = vmul.f32 1.442695, %v1284_v39 }
 0x676   :  { %v1491_v31 = vpop.permute.xlu1 %1490 }
 0x677   :  { %4464 = vpow2.f32 %v1299_v43 }
 0x679   :  { %1541 = vrot.lane.b32.xlu0 %v4917_v4, %s4720_s0 }
 0x67d   :  { %1592 = vrot.lane.b32.xlu0 %v4928_v19, %s4720_s0 }
 0x681   :  { %1643 = vrot.lane.b32.xlu0 %v4943_v36, %s4720_s0  ;;  %v5165_v47 = vpop.eup %4464 }
 0x682   :  { %v1322_v50 = vsel %vm760_vm3, %v5165_v47, 0.0 }
 0x690   :  { %1323 = vadd.xlane.f32.xlu1 %v1322_v50 }
 0x6a1   :  { %1645 = vrot.lane.b32.xlu1 %v4945_v38, %s4720_s0 }
 0x6a5   :  { %1696 = vrot.lane.b32.xlu1 %v4956_v46, %s4720_s0 }
 0x6a7   :  { %v1303_v18 = vpop.xlane.xlu0 %1302 }
 0x6a8   :  { %4466 = vrcp.f32 %v1303_v18 }
 0x6a9   :  { %1694 = vrot.lane.b32.xlu1 %v4954_v44, %s4720_s0  ;;  %v1306_v16 = vpop.xlane.xlu1 %1305 }
 0x6aa   :  { %4468 = vrcp.f32 %v1306_v16 }
 0x6b2   :  { %v4467_v52 = vpop.eup %4466 }
 0x6b3   :  { %v1333_v56 = vmul.f32 %v4467_v52, %v5136_v42 }
 0x6b4   :  { %v4469_v17 = vpop.eup %4468 }
 0x6b5   :  { %v1334_v57 = vmul.f32 %v4469_v17, %v5140_v45 }
 0x6b7   :  { %v1341_v32 = vpack.c.bf16 %v1334_v57, %v1333_v56 }
 0x6b9   :  { %4106 = vmatmul.mubr.msk.bf16.vlgmr.msra.gmra.mrb[36].mxu0 %vm760_vm3, %v1341_v32 }
 0x6ba   :  { %4116 = vmatpush3.bf16.msra.mxu0 %v1443_v35  ;;  %4117 = vmatprep.mubr.msk.bf16.mxu0 %vm4725_vm0, %v4724_v40 }
 0x6bb   :  { %4127 = vmatprep.subr.bf16.mxu0 %v4724_v40 }
 0x6e0   :  { %v1309_v58 = vpop.xlane.xlu0 %1308 }
 0x6e1   :  { %4470 = vrcp.f32 %v1309_v58 }
 0x6e4   :  { %v1312_v59 = vpop.xlane.xlu1 %1311 }
 0x6e5   :  { %4472 = vrcp.f32 %v1312_v59 }
 0x6e8   :  { %v1315_v61 = vpop.xlane.xlu0 %1314  ;;  %v1318_v62 = vpop.xlane.xlu1 %1317 }
 0x6e9   :  { %4474 = vrcp.f32 %v1315_v61 }
 0x6ea   :  { %4476 = vrcp.f32 %v1318_v62 }
 0x6eb   :  { %v4471_v42 = vpop.eup %4470 }
 0x6ec   :  { %v1335_v45 = vmul.f32 %v4471_v42, %v4455_v2  ;;  %v1321_v41 = vpop.xlane.xlu0 %1320 }
 0x6ed   :  { %4478 = vrcp.f32 %v1321_v41 }
 0x6ef   :  { %v4473_v33 = vpop.eup %4472 }
 0x6f0   :  { %v1336_v1 = vmul.f32 %v4473_v33, %v4457_v48  ;;  %v1544_v5 = vpop.permute.xlu0 %1543  ;;  %v1595_v48 = vpop.permute.xlu1 %1594 }
 0x6f1   :  { %v1549_v35 = vsel %vm559_vm1, %v1544_v5, 0  ;;  %v1600_v17 = vsel %vm559_vm1, %v1595_v48, 0 }
 0x6f2   :  { %v1342_v9 = vpack.c.bf16 %v1336_v1, %v1335_v45 }
 0x6f3   :  { %v4475_v12 = vpop.eup %4474 }
 0x6f4   :  { %v4477_v25 = vpop.eup %4476  ;;  %v1337_v60 = vmul.f32 %v4475_v12, %v4461_v0  ;;  %4112 = vmatmul.mubr.msk.bf16.vlgmr.msra.gmra.mrb[36].mxu1 %vm760_vm3, %v1342_v9  ;;  %v1542_v2 = vpop.permute.xlu0 %1541 }
 0x6f5   :  { %v1338_v27 = vmul.f32 %v4477_v25, %v4459_v22  ;;  %4122 = vmatpush3.bf16.msra.mxu1 %v1491_v31  ;;  %4123 = vmatprep.mubr.msk.bf16.mxu1 %vm4725_vm0, %v4724_v40 }
 0x6f6   :  { %4133 = vmatprep.subr.bf16.mxu1 %v4724_v40 }
 0x6f7   :  { %v1343_v34 = vpack.c.bf16 %v1338_v27, %v1337_v60  ;;  %v4479_v43 = vpop.eup %4478 }
 0x6f8   :  { %v1593_v39 = vpop.permute.xlu0 %1592  ;;  %v1339_v31 = vmul.f32 %v4479_v43, %v5150_v29 }
 0x6f9   :  { %4118 = vmatmul.mubr.msk.bf16.vlgmr.msra.gmra.mrb[40].mxu0 %vm760_vm3, %v1343_v34 }
 0x6fa   :  { %4128 = vmatpush3.bf16.xpose.msra.mxu0 %v1549_v35  ;;  %4129 = vmatprep.mubr.msk.bf16.mxu0 %vm4725_vm0, %v4724_v40 }
 0x6fb   :  { %4139 = vmatprep.subr.bf16.mxu0 %v4724_v40 }
 0x6fc   :  { %v1644_v18 = vpop.permute.xlu0 %1643 }
 0x701   :  { %4130 = vmatmul.mubr.msk.bf16.vlgmr.msra.gmra.mrb[44].mxu0 %vm559_vm1, %v1542_v2 }
 0x702   :  { %4141 = vmatprep.mubr.msk.bf16.mxu0 %vm4725_vm0, %v4724_v40 }
 0x71d   :  { %v1324_v22 = vpop.xlane.xlu1 %1323 }
 0x71e   :  { %4480 = vrcp.f32 %v1324_v22 }
 0x721   :  { %v1646_v0 = vpop.permute.xlu1 %1645 }
 0x722   :  { %v1651_v37 = vsel %vm559_vm1, %v1646_v0, 0 }
 0x723   :  { %4140 = vmatpush3.bf16.xpose.msra.mxu0 %v1651_v37 }
 0x724   :  { %4151 = vmatprep.subr.bf16.mxu0 %v4724_v40 }
 0x725   :  { %v1697_v29 = vpop.permute.xlu1 %1696 }
 0x726   :  { %v1702_v56 = vsel %vm559_vm1, %v1697_v29, 0 }
 0x728   :  { %v4481_v50 = vpop.eup %4480 }
 0x729   :  { %v1340_v16 = vmul.f32 %v4481_v50, %v5165_v47  ;;  %v1695_v47 = vpop.permute.xlu1 %1694 }
 0x72a   :  { %4142 = vmatmul.mubr.msk.bf16.vlgmr.msra.gmra.mrb[48].mxu0 %vm559_vm1, %v1644_v18 }
 0x72b   :  { %v1344_v52 = vpack.c.bf16 %v1340_v16, %v1339_v31  ;;  %4153 = vmatprep.mubr.msk.bf16.mxu0 %vm4725_vm0, %v4724_v40 }
 0x72d   :  { %4124 = vmatmul.mubr.msk.bf16.vlgmr.msra.gmra.mrb[40].mxu1 %vm760_vm3, %v1344_v52 }
 0x72e   :  { %4134 = vmatpush3.bf16.xpose.msra.mxu1 %v1600_v17  ;;  %4135 = vmatprep.mubr.msk.bf16.mxu1 %vm4725_vm0, %v4724_v40 }
 0x72f   :  { %4145 = vmatprep.subr.bf16.mxu1 %v4724_v40 }
 0x735   :  { %4136 = vmatmul.mubr.msk.bf16.vlgmr.msra.gmra.mrb[44].mxu1 %vm559_vm1, %v1593_v39 }
 0x736   :  { %4146 = vmatpush3.bf16.xpose.msra.mxu1 %v1702_v56  ;;  %4147 = vmatprep.mubr.msk.bf16.mxu1 %vm4725_vm0, %v4724_v40 }
 0x737   :  { %4157 = vmatprep.subr.bf16.mxu1 %v4724_v40 }
 0x73d   :  { %4148 = vmatmul.mubr.msk.bf16.vlgmr.msra.gmra.mrb[48].mxu1 %vm559_vm1, %v1695_v47 }
 0x73e   :  { %4159 = vmatprep.mubr.msk.bf16.mxu1 %vm4725_vm0, %v4724_v40 }
 0x78c   :  { %v5213_v57 = vpop.f32.mrb[36].mxu0 }
 0x78d   :  { %v4107_v32 = vpop.f32.mrb[37].mxu0 }
 0x78e   :  { %v5215_v58 = vpop.f32.mrb[38].mxu0 }
 0x78f   :  { %v1537_v59 = vpack.c.bf16 %v5215_v58, %v5213_v57  ;;  %v4108_v61 = vpop.f32.mrb[39].mxu0 }
 0x7c7   :  { %v5219_v62 = vpop.f32.mrb[36].mxu1 }
 0x7c8   :  { %v4113_v42 = vpop.f32.mrb[37].mxu1 }
 0x7c9   :  { %v5221_v33 = vpop.f32.mrb[38].mxu1 }
 0x7ca   :  { %v1538_v45 = vpack.c.bf16 %v5221_v33, %v5219_v62  ;;  %v4114_v1 = vpop.f32.mrb[39].mxu1 }
 0x7cc   :  { %v5225_v41 = vpop.f32.mrb[40].mxu0 }
 0x7cd   :  { %v4119_v9 = vpop.f32.mrb[41].mxu0 }
 0x7ce   :  { %v5227_v12 = vpop.f32.mrb[42].mxu0 }
 0x7cf   :  { %v1539_v25 = vpack.c.bf16 %v5227_v12, %v5225_v41  ;;  %v4120_v60 = vpop.f32.mrb[43].mxu0 }
 0x7d4   :  { %v1585_v27 = vpop.f32.mrb[44].mxu0 }
 0x7d5   :  { %v1745_v5 = vsel %vm4977_vm2, %v1585_v27, -inf  ;;  %v4131_v34 = vpop.f32.mrb[45].mxu0 }
 0x7d6   :  { %v1588_v35 = vpop.f32.mrb[46].mxu0  ;;  %v1753_v2 = vsel %vm760_vm3, %v1745_v5, -inf }
 0x7d7   :  { %v1746_v48 = vsel %vm4981_vm4, %v1588_v35, -inf  ;;  %1754 = vmax.xlane.f32.xlu0 %v1753_v2  ;;  %v4132_v22 = vpop.f32.mrb[47].mxu0 }
 0x7d8   :  { %v1756_v0 = vsel %vm760_vm3, %v1746_v48, -inf }
 0x7d9   :  { %1757 = vmax.xlane.f32.xlu1 %v1756_v0 }
 0x7fd   :  { %v1687_v37 = vpop.f32.mrb[48].mxu0 }
 0x7fe   :  { %v4143_v39 = vpop.f32.mrb[49].mxu0  ;;  %v1749_v34 = vsel %vm4977_vm2, %v1687_v37, -inf }
 0x7ff   :  { %v1690_v43 = vpop.f32.mrb[50].mxu0  ;;  %v1765_v0 = vsel %vm760_vm3, %v1749_v34, -inf }
 0x800   :  { %v1750_v50 = vsel %vm4981_vm4, %v1690_v43, -inf  ;;  %v5239_v31 = vpop.f32.mrb[40].mxu1  ;;  %v4144_v18 = vpop.f32.mrb[51].mxu0 }
 0x801   :  { %v4125_v16 = vpop.f32.mrb[41].mxu1  ;;  %v1768_v52 = vsel %vm760_vm3, %v1750_v50, -inf }
 0x802   :  { %1769 = vmax.xlane.f32.xlu1 %v1768_v52  ;;  %v5242_v17 = vpop.f32.mrb[42].mxu1 }
 0x803   :  { %v1540_v29 = vpack.c.bf16 %v5242_v17, %v5239_v31  ;;  %v4126_v56 = vpop.f32.mrb[43].mxu1 }
 0x808   :  { %v1636_v47 = vpop.f32.mrb[44].mxu1 }
 0x809   :  { %v1747_v32 = vsel %vm4977_vm2, %v1636_v47, -inf  ;;  %v4137_v61 = vpop.f32.mrb[45].mxu1 }
 0x80a   :  { %v1639_v42 = vpop.f32.mrb[46].mxu1  ;;  %v1759_v1 = vsel %vm760_vm3, %v1747_v32, -inf }
 0x80b   :  { %v1748_v9 = vsel %vm4981_vm4, %v1639_v42, -inf  ;;  %1760 = vmax.xlane.f32.xlu0 %v1759_v1  ;;  %v4138_v60 = vpop.f32.mrb[47].mxu1 }
 0x80c   :  { %v1762_v27 = vsel %vm760_vm3, %v1748_v9, -inf }
 0x80f   :  { %1763 = vmax.xlane.f32.xlu0 %v1762_v27 }
 0x810   :  { %v1738_v35 = vpop.f32.mrb[48].mxu1 }
 0x811   :  { %v4149_v2 = vpop.f32.mrb[49].mxu1  ;;  %v1751_v39 = vsel %vm4977_vm2, %v1738_v35, -inf }
 0x812   :  { %v1741_v22 = vpop.f32.mrb[50].mxu1  ;;  %v1771_v52 = vsel %vm760_vm3, %v1751_v39, -inf }
 0x813   :  { %v1752_v43 = vsel %vm4981_vm4, %v1741_v22, -inf  ;;  %1766 = vmax.xlane.f32.xlu0 %v1765_v0  ;;  %v4150_v18 = vpop.f32.mrb[51].mxu1 }
 0x814   :  { %v1774_v16 = vsel %vm760_vm3, %v1752_v43, -inf }
 0x815   :  { %1775 = vmax.xlane.f32.xlu1 %v1774_v16 }
 0x817   :  { %1772 = vmax.xlane.f32.xlu0 %v1771_v52 }
 0x826   :  { %1892 = vrot.lane.b32.xlu1 %v4923_v11, %s4720_s0 }
 0x82a   :  { %1939 = vrot.lane.b32.xlu1 %v4940_v30, %s4720_s0 }
 0x82d   :  { %1845 = vrot.lane.b32.xlu0 %v4925_v13, %s4720_s0 }
 0x82e   :  { %1986 = vrot.lane.b32.xlu1 %v4936_v28, %s4720_s0 }
 0x864   :  { %v1755_v37 = vpop.xlane.xlu0 %1754 }
 0x865   :  { %v1777_v56 = vsub.f32 %v1745_v5, %v1755_v37 }
 0x866   :  { %v1758_v47 = vpop.xlane.xlu1 %1757 }
 0x867   :  { %v1785_v61 = vmul.f32 1.442695, %v1777_v56  ;;  %v1778_v42 = vsub.f32 %v1746_v48, %v1758_v47 }
 0x869   :  { %4482 = vpow2.f32 %v1785_v61  ;;  %v1787_v1 = vmul.f32 1.442695, %v1778_v42 }
 0x86b   :  { %4484 = vpow2.f32 %v1787_v1 }
 0x873   :  { %v5269_v60 = vpop.eup %4482 }
 0x874   :  { %v1801_v27 = vsel %vm760_vm3, %v5269_v60, 0.0 }
 0x875   :  { %v5273_v35 = vpop.eup %4484  ;;  %1802 = vadd.xlane.f32.xlu0 %v1801_v27 }
 0x876   :  { %v1804_v2 = vsel %vm760_vm3, %v5273_v35, 0.0 }
 0x877   :  { %1805 = vadd.xlane.f32.xlu1 %v1804_v2 }
 0x88f   :  { %v1770_v22 = vpop.xlane.xlu1 %1769 }
 0x890   :  { %v1782_v18 = vsub.f32 %v1750_v50, %v1770_v22 }
 0x892   :  { %v1795_v37 = vmul.f32 1.442695, %v1782_v18 }
 0x898   :  { %v1761_v5 = vpop.xlane.xlu0 %1760 }
 0x899   :  { %v1779_v0 = vsub.f32 %v1747_v32, %v1761_v5 }
 0x89b   :  { %v1789_v48 = vmul.f32 1.442695, %v1779_v0 }
 0x89c   :  { %v1764_v16 = vpop.xlane.xlu0 %1763 }
 0x89d   :  { %4486 = vpow2.f32 %v1789_v48  ;;  %v1780_v52 = vsub.f32 %v1748_v9, %v1764_v16 }
 0x89f   :  { %v1791_v56 = vmul.f32 1.442695, %v1780_v52 }
 0x8a0   :  { %v1767_v47 = vpop.xlane.xlu0 %1766 }
 0x8a1   :  { %4488 = vpow2.f32 %v1791_v56  ;;  %v1781_v61 = vsub.f32 %v1749_v34, %v1767_v47 }
 0x8a2   :  { %v1776_v42 = vpop.xlane.xlu1 %1775  ;;  %4490 = vpow2.f32 %v1795_v37 }
 0x8a3   :  { %v1793_v1 = vmul.f32 1.442695, %v1781_v61  ;;  %v1784_v27 = vsub.f32 %v1752_v43, %v1776_v42 }
 0x8a4   :  { %v1773_v55 = vpop.xlane.xlu0 %1772 }
 0x8a5   :  { %4492 = vpow2.f32 %v1793_v1  ;;  %v1799_v2 = vmul.f32 1.442695, %v1784_v27  ;;  %v1783_v26 = vsub.f32 %v1751_v39, %v1773_v55 }
 0x8a6   :  { %v1893_v15 = vpop.permute.xlu1 %1892 }
 0x8a7   :  { %v5277_v32 = vpop.eup %4486  ;;  %4494 = vpow2.f32 %v1799_v2  ;;  %v1797_v50 = vmul.f32 1.442695, %v1783_v26  ;;  %4158 = vmatpush3.bf16.msra.mxu1 %v1893_v15 }
 0x8a8   :  { %v1846_v9 = vpop.permute.xlu0 %1845  ;;  %v1807_v22 = vsel %vm760_vm3, %v5277_v32, 0.0  ;;  %4169 = vmatprep.subr.bf16.mxu1 %v4724_v40 }
 0x8a9   :  { %4496 = vpow2.f32 %v1797_v50  ;;  %1808 = vadd.xlane.f32.xlu0 %v1807_v22  ;;  %4152 = vmatpush3.bf16.msra.mxu0 %v1846_v9 }
 0x8aa   :  { %4163 = vmatprep.subr.bf16.mxu0 %v4724_v40 }
 0x8ab   :  { %v4489_v34 = vpop.eup %4488 }
 0x8ac   :  { %v1810_v55 = vsel %vm760_vm3, %v4489_v34, 0.0  ;;  %v4491_v39 = vpop.eup %4490 }
 0x8ad   :  { %1811 = vadd.xlane.f32.xlu1 %v1810_v55  ;;  %v1816_v15 = vsel %vm760_vm3, %v4491_v39, 0.0 }
 0x8af   :  { %v4493_v43 = vpop.eup %4492 }
 0x8b0   :  { %v1813_v26 = vsel %vm760_vm3, %v4493_v43, 0.0 }
 0x8b1   :  { %v5286_v5 = vpop.eup %4494  ;;  %1814 = vadd.xlane.f32.xlu0 %v1813_v26  ;;  %1817 = vadd.xlane.f32.xlu1 %v1816_v15 }
 0x8b2   :  { %v1822_v48 = vsel %vm760_vm3, %v5286_v5, 0.0 }
 0x8b3   :  { %v4497_v0 = vpop.eup %4496 }
 0x8b4   :  { %v1819_v18 = vsel %vm760_vm3, %v4497_v0, 0.0 }
 0x8b5   :  { %1820 = vadd.xlane.f32.xlu0 %v1819_v18  ;;  %1823 = vadd.xlane.f32.xlu1 %v1822_v48 }
 0x8c6   :  { %2090 = vrot.lane.b32.xlu1 %v4930_v21, %s4727_s9  ;;  %v1940_v21 = vpop.permute.xlu1 %1939 }
 0x8ca   :  { %2088 = vrot.lane.b32.xlu1 %v4928_v19, %s4727_s9  ;;  %v1987_v19 = vpop.permute.xlu1 %1986 }
 0x8cb   :  { %2039 = vrot.lane.b32.xlu0 %v4919_v6, %s4727_s9 }
 0x8ce   :  { %2192 = vrot.lane.b32.xlu1 %v4956_v46, %s4727_s9 }
 0x8cf   :  { %2037 = vrot.lane.b32.xlu0 %v4917_v4, %s4727_s9 }
 0x8d2   :  { %2190 = vrot.lane.b32.xlu1 %v4954_v44, %s4727_s9 }
 0x8d3   :  { %2141 = vrot.lane.b32.xlu0 %v4945_v38, %s4727_s9 }
 0x8d7   :  { %2139 = vrot.lane.b32.xlu0 %v4943_v36, %s4727_s9 }
 0x902   :  { %v1803_v16 = vpop.xlane.xlu0 %1802 }
 0x903   :  { %4498 = vrcp.f32 %v1803_v16 }
 0x904   :  { %v1806_v6 = vpop.xlane.xlu1 %1805 }
 0x905   :  { %4500 = vrcp.f32 %v1806_v6 }
 0x90d   :  { %v4499_v52 = vpop.eup %4498 }
 0x90e   :  { %v1833_v37 = vmul.f32 %v4499_v52, %v5269_v60 }
 0x90f   :  { %v4501_v46 = vpop.eup %4500 }
 0x910   :  { %v1834_v4 = vmul.f32 %v4501_v46, %v5273_v35 }
 0x912   :  { %v1841_v56 = vpack.c.bf16 %v1834_v4, %v1833_v37 }
 0x914   :  { %4154 = vmatmul.mubr.msk.bf16.vlgmr.msra.gmra.mrb[52].mxu0 %vm760_vm3, %v1841_v56 }
 0x915   :  { %4164 = vmatpush3.bf16.msra.mxu0 %v1940_v21  ;;  %4165 = vmatprep.mubr.msk.bf16.mxu0 %vm4725_vm0, %v4724_v40 }
 0x916   :  { %4175 = vmatprep.subr.bf16.mxu0 %v4724_v40 }
 0x936   :  { %v1809_v36 = vpop.xlane.xlu0 %1808 }
 0x937   :  { %4502 = vrcp.f32 %v1809_v36 }
 0x93a   :  { %v1812_v38 = vpop.xlane.xlu1 %1811 }
 0x93b   :  { %4504 = vrcp.f32 %v1812_v38 }
 0x93e   :  { %v1815_v44 = vpop.xlane.xlu0 %1814  ;;  %v1818_v47 = vpop.xlane.xlu1 %1817 }
 0x93f   :  { %4506 = vrcp.f32 %v1815_v44 }
 0x940   :  { %4508 = vrcp.f32 %v1818_v47 }
 0x941   :  { %v4503_v35 = vpop.eup %4502 }
 0x942   :  { %v1821_v60 = vpop.xlane.xlu0 %1820  ;;  %v1824_v61 = vpop.xlane.xlu1 %1823  ;;  %v1835_v1 = vmul.f32 %v4503_v35, %v5277_v32 }
 0x943   :  { %4510 = vrcp.f32 %v1821_v60 }
 0x944   :  { %4512 = vrcp.f32 %v1824_v61 }
 0x945   :  { %v4505_v42 = vpop.eup %4504 }
 0x946   :  { %v1836_v27 = vmul.f32 %v4505_v42, %v4489_v34  ;;  %v2040_v2 = vpop.permute.xlu0 %2039  ;;  %v2091_v15 = vpop.permute.xlu1 %2090 }
 0x947   :  { %v2045_v6 = vsel %vm559_vm1, %v2040_v2, 0 }
 0x948   :  { %v1842_v50 = vpack.c.bf16 %v1836_v27, %v1835_v1 }
 0x949   :  { %v4507_v9 = vpop.eup %4506 }
 0x94a   :  { %v4509_v22 = vpop.eup %4508  ;;  %v1837_v55 = vmul.f32 %v4507_v9, %v4493_v43  ;;  %4160 = vmatmul.mubr.msk.bf16.vlgmr.msra.gmra.mrb[52].mxu1 %vm760_vm3, %v1842_v50  ;;  %v2038_v34 = vpop.permute.xlu0 %2037 }
 0x94b   :  { %v1838_v26 = vmul.f32 %v4509_v22, %v4491_v39  ;;  %4170 = vmatpush3.bf16.msra.mxu1 %v1987_v19  ;;  %4171 = vmatprep.mubr.msk.bf16.mxu1 %vm4725_vm0, %v4724_v40  ;;  %v2089_v43 = vpop.permute.xlu1 %2088  ;;  %v2096_v19 = vsel %vm559_vm1, %v2091_v15, 0 }
 0x94c   :  { %4181 = vmatprep.subr.bf16.mxu1 %v4724_v40 }
 0x94d   :  { %v4511_v18 = vpop.eup %4510  ;;  %v1843_v48 = vpack.c.bf16 %v1838_v26, %v1837_v55 }
 0x94e   :  { %v4513_v21 = vpop.eup %4512  ;;  %v1839_v32 = vmul.f32 %v4511_v18, %v4497_v0  ;;  %v2142_v0 = vpop.permute.xlu0 %2141 }
 0x94f   :  { %v1840_v16 = vmul.f32 %v4513_v21, %v5286_v5  ;;  %4166 = vmatmul.mubr.msk.bf16.vlgmr.msra.gmra.mrb[56].mxu0 %vm760_vm3, %v1843_v48  ;;  %v2147_v5 = vsel %vm559_vm1, %v2142_v0, 0  ;;  %v2193_v52 = vpop.permute.xlu1 %2192 }
 0x950   :  { %4176 = vmatpush3.bf16.xpose.msra.mxu0 %v2045_v6  ;;  %4177 = vmatprep.mubr.msk.bf16.mxu0 %vm4725_vm0, %v4724_v40  ;;  %v2198_v46 = vsel %vm559_vm1, %v2193_v52, 0 }
 0x951   :  { %v1844_v39 = vpack.c.bf16 %v1840_v16, %v1839_v32  ;;  %4187 = vmatprep.subr.bf16.mxu0 %v4724_v40 }
 0x952   :  { %v2140_v37 = vpop.permute.xlu0 %2139 }
 0x953   :  { %4172 = vmatmul.mubr.msk.bf16.vlgmr.msra.gmra.mrb[56].mxu1 %vm760_vm3, %v1844_v39  ;;  %v2191_v4 = vpop.permute.xlu1 %2190 }
 0x954   :  { %4182 = vmatpush3.bf16.xpose.msra.mxu1 %v2096_v19  ;;  %4183 = vmatprep.mubr.msk.bf16.mxu1 %vm4725_vm0, %v4724_v40 }
 0x955   :  { %4193 = vmatprep.subr.bf16.mxu1 %v4724_v40 }
 0x957   :  { %4178 = vmatmul.mubr.msk.bf16.vlgmr.msra.gmra.mrb[60].mxu0 %vm559_vm1, %v2038_v34 }
 0x958   :  { %4188 = vmatpush3.bf16.xpose.msra.mxu0 %v2147_v5  ;;  %4189 = vmatprep.mubr.msk.bf16.mxu0 %vm4725_vm0, %v4724_v40 }
 0x959   :  { %4199 = vmatprep.subr.bf16.mxu0 %v4724_v40 }
 0x95b   :  { %4184 = vmatmul.mubr.msk.bf16.vlgmr.msra.gmra.mrb[60].mxu1 %vm559_vm1, %v2089_v43 }
 0x95c   :  { %4194 = vmatpush3.bf16.xpose.msra.mxu1 %v2198_v46  ;;  %4195 = vmatprep.mubr.msk.bf16.mxu1 %vm4725_vm0, %v4724_v40 }
 0x95d   :  { %4205 = vmatprep.subr.bf16.mxu1 %v4724_v40 }
 0x95f   :  { %4190 = vmatmul.mubr.msk.bf16.vlgmr.msra.gmra.mrb[64].mxu0 %vm559_vm1, %v2140_v37 }
 0x960   :  { %4201 = vmatprep.mubr.msk.bf16.mxu0 %vm4725_vm0, %v4724_v40 }
 0x963   :  { %4196 = vmatmul.mubr.msk.bf16.vlgmr.msra.gmra.mrb[64].mxu1 %vm559_vm1, %v2191_v4 }
 0x964   :  { %4207 = vmatprep.mubr.msk.bf16.mxu1 %vm4725_vm0, %v4724_v40 }
 0x9e7   :  { %v5345_v56 = vpop.f32.mrb[52].mxu0 }
 0x9e8   :  { %v4155_v36 = vpop.f32.mrb[53].mxu0 }
 0x9e9   :  { %v5347_v38 = vpop.f32.mrb[54].mxu0 }
 0x9ea   :  { %v2033_v44 = vpack.c.bf16 %v5347_v38, %v5345_v56  ;;  %v4156_v47 = vpop.f32.mrb[55].mxu0 }
 0xa1d   :  { %v5351_v60 = vpop.f32.mrb[52].mxu1 }
 0xa1e   :  { %v4161_v61 = vpop.f32.mrb[53].mxu1 }
 0xa1f   :  { %v5353_v35 = vpop.f32.mrb[54].mxu1 }
 0xa20   :  { %v2034_v42 = vpack.c.bf16 %v5353_v35, %v5351_v60  ;;  %v4162_v1 = vpop.f32.mrb[55].mxu1 }
 0xa22   :  { %v5357_v27 = vpop.f32.mrb[56].mxu0 }
 0xa23   :  { %v4167_v2 = vpop.f32.mrb[57].mxu0 }
 0xa24   :  { %v5359_v50 = vpop.f32.mrb[58].mxu0 }
 0xa25   :  { %v2035_v9 = vpack.c.bf16 %v5359_v50, %v5357_v27  ;;  %v4168_v22 = vpop.f32.mrb[59].mxu0  ;;  %v5764_v27 = vpack.c.bf16 %v5079_v7, %v5077_v3 }
 0xa26   :  { %v5363_v55 = vpop.f32.mrb[56].mxu1 }
 0xa27   :  { %v4173_v26 = vpop.f32.mrb[57].mxu1 }
 0xa28   :  { %v5365_v15 = vpop.f32.mrb[58].mxu1 }
 0xa29   :  { %v2036_v18 = vpack.c.bf16 %v5365_v15, %v5363_v55  ;;  %v4174_v48 = vpop.f32.mrb[59].mxu1 }
 0xa2a   :  { %v2081_v21 = vpop.f32.mrb[60].mxu0 }
 0xa2b   :  { %v2241_v32 = vsel %vm4977_vm2, %v2081_v21, -inf  ;;  %v4179_v34 = vpop.f32.mrb[61].mxu0 }
 0xa2c   :  { %v2084_v16 = vpop.f32.mrb[62].mxu0  ;;  %v2249_v6 = vsel %vm760_vm3, %v2241_v32, -inf }
 0xa2d   :  { %v2242_v39 = vsel %vm4981_vm4, %v2084_v16, -inf  ;;  %2250 = vmax.xlane.f32.xlu0 %v2249_v6  ;;  %v4180_v43 = vpop.f32.mrb[63].mxu0 }
 0xa2e   :  { %v2252_v19 = vsel %vm760_vm3, %v2242_v39, -inf  ;;  %v2132_v0 = vpop.f32.mrb[60].mxu1 }
 0xa2f   :  { %v2243_v5 = vsel %vm4977_vm2, %v2132_v0, -inf  ;;  %2253 = vmax.xlane.f32.xlu1 %v2252_v19  ;;  %v4185_v52 = vpop.f32.mrb[61].mxu1 }
 0xa30   :  { %v2135_v46 = vpop.f32.mrb[62].mxu1  ;;  %v2255_v37 = vsel %vm760_vm3, %v2243_v5, -inf }
 0xa31   :  { %v2244_v4 = vsel %vm4981_vm4, %v2135_v46, -inf  ;;  %2256 = vmax.xlane.f32.xlu0 %v2255_v37  ;;  %v4186_v36 = vpop.f32.mrb[63].mxu1 }
 0xa32   :  { %v2183_v47 = vpop.f32.mrb[64].mxu0  ;;  %v2258_v1 = vsel %vm760_vm3, %v2244_v4, -inf }
 0xa33   :  { %v4191_v61 = vpop.f32.mrb[65].mxu0  ;;  %v2245_v22 = vsel %vm4977_vm2, %v2183_v47, -inf }
 0xa34   :  { %v2186_v2 = vpop.f32.mrb[66].mxu0  ;;  %v2261_v6 = vsel %vm760_vm3, %v2245_v22, -inf }
 0xa35   :  { %v2246_v26 = vsel %vm4981_vm4, %v2186_v2, -inf  ;;  %v4192_v48 = vpop.f32.mrb[67].mxu0  ;;  %2259 = vmax.xlane.f32.xlu0 %v2258_v1 }
 0xa36   :  { %v2264_v21 = vsel %vm760_vm3, %v2246_v26, -inf  ;;  %v2234_v34 = vpop.f32.mrb[64].mxu1 }
 0xa37   :  { %2265 = vmax.xlane.f32.xlu1 %v2264_v21  ;;  %v4197_v16 = vpop.f32.mrb[65].mxu1  ;;  %v2247_v19 = vsel %vm4977_vm2, %v2234_v34, -inf }
 0xa38   :  { %v2237_v43 = vpop.f32.mrb[66].mxu1  ;;  %v2267_v37 = vsel %vm760_vm3, %v2247_v19, -inf }
 0xa39   :  { %v5391_v0 = vsel %vm4981_vm4, %v2237_v43, -inf  ;;  %2262 = vmax.xlane.f32.xlu0 %v2261_v6  ;;  %v4198_v52 = vpop.f32.mrb[67].mxu1 }
 0xa3a   :  { %v2270_v46 = vsel %vm760_vm3, %v5391_v0, -inf }
 0xa3b   :  { %2271 = vmax.xlane.f32.xlu1 %v2270_v46 }
 0xa3d   :  { %2268 = vmax.xlane.f32.xlu0 %v2267_v37 }
 0xaba   :  { %v2251_v36 = vpop.xlane.xlu0 %2250 }
 0xabb   :  { %v2273_v47 = vsub.f32 %v2241_v32, %v2251_v36 }
 0xabc   :  { %v2254_v61 = vpop.xlane.xlu1 %2253 }
 0xabd   :  { %v2281_v1 = vmul.f32 1.442695, %v2273_v47  ;;  %v2274_v2 = vsub.f32 %v2242_v39, %v2254_v61 }
 0xabe   :  { %v2257_v51 = vpop.xlane.xlu0 %2256 }
 0xabf   :  { %4514 = vpow2.f32 %v2281_v1  ;;  %v2283_v48 = vmul.f32 1.442695, %v2274_v2  ;;  %v2275_v53 = vsub.f32 %v2243_v5, %v2257_v51 }
 0xac1   :  { %4516 = vpow2.f32 %v2283_v48  ;;  %v2285_v21 = vmul.f32 1.442695, %v2275_v53 }
 0xac2   :  { %v2260_v34 = vpop.xlane.xlu0 %2259 }
 0xac3   :  { %4518 = vpow2.f32 %v2285_v21  ;;  %v2276_v16 = vsub.f32 %v2244_v4, %v2260_v34 }
 0xac4   :  { %v2266_v6 = vpop.xlane.xlu1 %2265 }
 0xac5   :  { %v2287_v43 = vmul.f32 1.442695, %v2276_v16  ;;  %v2278_v52 = vsub.f32 %v2246_v26, %v2266_v6 }
 0xac6   :  { %v2263_v46 = vpop.xlane.xlu0 %2262 }
 0xac7   :  { %4520 = vpow2.f32 %v2287_v43  ;;  %v2291_v37 = vmul.f32 1.442695, %v2278_v52  ;;  %v2277_v8 = vsub.f32 %v2245_v22, %v2263_v46 }
 0xac8   :  { %v2272_v16 = vpop.xlane.xlu1 %2271 }
 0xac9   :  { %v5396_v32 = vpop.eup %4514  ;;  %4522 = vpow2.f32 %v2291_v37  ;;  %v2289_v39 = vmul.f32 1.442695, %v2277_v8  ;;  %v2280_v6 = vsub.f32 %v5391_v0, %v2272_v16  ;;  %v4318_v16 = vld [vmem:[#allocation7 + $0x20] sm:$0xff]  }
 0xaca   :  { %v2269_v36 = vpop.xlane.xlu0 %2268  ;;  %v2297_v5 = vsel %vm760_vm3, %v5396_v32, 0.0 }
 0xacb   :  { %v4517_v47 = vpop.eup %4516  ;;  %4524 = vpow2.f32 %v2289_v39  ;;  %v2279_v61 = vsub.f32 %v2247_v19, %v2269_v36  ;;  %2298 = vadd.xlane.f32.xlu0 %v2297_v5 }
 0xacc   :  { %v2300_v4 = vsel %vm760_vm3, %v4517_v47, 0.0 }
 0xacd   :  { %v4519_v1 = vpop.eup %4518  ;;  %v2293_v26 = vmul.f32 1.442695, %v2279_v61  ;;  %2301 = vadd.xlane.f32.xlu1 %v2300_v4 }
 0xace   :  { %v2303_v2 = vsel %vm760_vm3, %v4519_v1, 0.0 }
 0xacf   :  { %4526 = vpow2.f32 %v2293_v26  ;;  %2304 = vadd.xlane.f32.xlu0 %v2303_v2 }
 0xad1   :  { %v4521_v22 = vpop.eup %4520 }
 0xad2   :  { %v2306_v8 = vsel %vm760_vm3, %v4521_v22, 0.0 }
 0xad3   :  { %v4523_v51 = vpop.eup %4522  ;;  %2307 = vadd.xlane.f32.xlu1 %v2306_v8 }
 0xad4   :  { %v2312_v19 = vsel %vm760_vm3, %v4523_v51, 0.0 }
 0xad5   :  { %v4525_v48 = vpop.eup %4524 }
 0xad6   :  { %v2309_v53 = vsel %vm760_vm3, %v4525_v48, 0.0 }
 0xad7   :  { %2310 = vadd.xlane.f32.xlu0 %v2309_v53  ;;  %2313 = vadd.xlane.f32.xlu1 %v2312_v19 }
 0xad9   :  { %v5405_v21 = vpop.eup %4526 }
 0xada   :  { %v2315_v34 = vsel %vm760_vm3, %v5405_v21, 0.0 }
 0xadb   :  { %2316 = vadd.xlane.f32.xlu0 %v2315_v34  ;;  %v4317_v34 = vld [vmem:[#allocation7 + $0x18] sm:$0xff]  }
 0xae8   :  { %2388 = vrot.lane.b32.xlu1 %v4923_v11, %s4727_s9  ;;  %v2295_v11 = vmul.f32 1.442695, %v2280_v6  ;;  %v4320_v6 = vld [vmem:[#allocation7 + $0x30] sm:$0xff]  }
 0xaea   :  { %4528 = vpow2.f32 %v2295_v11  ;;  %v4321_v11 = vld [vmem:[#allocation7 + $0x38] sm:$0xff]  }
 0xaec   :  { %2435 = vrot.lane.b32.xlu1 %v4940_v30, %s4727_s9 }
 0xaf1   :  { %2341 = vrot.lane.b32.xlu0 %v4925_v13, %s4727_s9 }
 0xaf4   :  { %v4529_v43 = vpop.eup %4528 }
 0xaf5   :  { %2537 = vrot.lane.b32.xlu0 %v1537_v59, %s4727_s9  ;;  %v2318_v30 = vsel %vm760_vm3, %v4529_v43, 0.0 }
 0xaf9   :  { %2549 = vrot.lane.b32.xlu0 %v2033_v44, %s4720_s0 }
 0xb10   :  { %2319 = vadd.xlane.f32.xlu1 %v2318_v30 }
 0xb21   :  { %2482 = vrot.lane.b32.xlu1 %v4936_v28, %s4727_s9 }
 0xb25   :  { %2539 = vrot.lane.b32.xlu1 %v1538_v45, %s4727_s9 }
 0xb29   :  { %2551 = vrot.lane.b32.xlu1 %v2034_v42, %s4720_s0 }
 0xb58   :  { %v2299_v13 = vpop.xlane.xlu0 %2298 }
 0xb5a   :  { %v2302_v57 = vpop.xlane.xlu1 %2301 }
 0xb5b   :  { %4530 = vrcp.f32 %v2302_v57 }
 0xb5c   :  { %v2305_v58 = vpop.xlane.xlu0 %2304  ;;  %4532 = vrcp.f32 %v2299_v13 }
 0xb5d   :  { %4534 = vrcp.f32 %v2305_v58 }
 0xb60   :  { %v2308_v59 = vpop.xlane.xlu1 %2307 }
 0xb61   :  { %4536 = vrcp.f32 %v2308_v59 }
 0xb64   :  { %v2311_v56 = vpop.xlane.xlu0 %2310  ;;  %v2314_v28 = vpop.xlane.xlu1 %2313 }
 0xb65   :  { %4538 = vrcp.f32 %v2311_v56  ;;  %v4531_v38 = vpop.eup %4530 }
 0xb66   :  { %4540 = vrcp.f32 %v2314_v28  ;;  %v4533_v62 = vpop.eup %4532  ;;  %v2330_v60 = vmul.f32 %v4531_v38, %v4517_v47 }
 0xb67   :  { %v4535_v44 = vpop.eup %4534  ;;  %v2329_v42 = vmul.f32 %v4533_v62, %v5396_v32 }
 0xb68   :  { %v2317_v33 = vpop.xlane.xlu0 %2316  ;;  %v2389_v45 = vpop.permute.xlu1 %2388  ;;  %v2331_v0 = vmul.f32 %v4535_v44, %v4519_v1 }
 0xb69   :  { %4206 = vmatpush3.bf16.msra.mxu1 %v2389_v45  ;;  %v2337_v37 = vpack.c.bf16 %v2330_v60, %v2329_v42  ;;  %4542 = vrcp.f32 %v2317_v33 }
 0xb6a   :  { %4217 = vmatprep.subr.bf16.mxu1 %v4724_v40 }
 0xb6b   :  { %v4537_v35 = vpop.eup %4536 }
 0xb6c   :  { %v2332_v52 = vmul.f32 %v4537_v35, %v4521_v22  ;;  %v2342_v46 = vpop.permute.xlu0 %2341  ;;  %v2436_v61 = vpop.permute.xlu1 %2435 }
 0xb6d   :  { %4200 = vmatpush3.bf16.msra.mxu0 %v2342_v46 }
 0xb6e   :  { %4211 = vmatprep.subr.bf16.mxu0 %v4724_v40  ;;  %v2338_v39 = vpack.c.bf16 %v2332_v52, %v2331_v0 }
 0xb6f   :  { %v4539_v36 = vpop.eup %4538 }
 0xb70   :  { %v4541_v5 = vpop.eup %4540  ;;  %4202 = vmatmul.mubr.msk.bf16.vlgmr.msra.gmra.mrb[68].mxu0 %vm760_vm3, %v2337_v37  ;;  %4208 = vmatmul.mubr.msk.bf16.vlgmr.msra.gmra.mrb[68].mxu1 %vm760_vm3, %v2338_v39  ;;  %v2333_v32 = vmul.f32 %v4539_v36, %v4525_v48  ;;  %v4316_v48 = vld [vmem:[#allocation7 + $0x10] sm:$0xff]  }
 0xb71   :  { %4212 = vmatpush3.bf16.msra.mxu0 %v2436_v61  ;;  %4213 = vmatprep.mubr.msk.bf16.mxu0 %vm4725_vm0, %v4724_v40  ;;  %v2334_v47 = vmul.f32 %v4541_v5, %v4523_v51  ;;  %v4314_v51 = vld [vmem:[#allocation7] sm:$0xff]   ;;  %v5766_v5 = vpack.c.bf16 %v5091_v23, %v5089_v20 }
 0xb72   :  { %4219 = vmatprep.mubr.msk.bf16.mxu1 %vm4725_vm0, %v4724_v40  ;;  %v4315_v40 = vld [vmem:[#allocation7 + $0x8] sm:$0xff]   ;;  %4223 = vmatprep.subr.bf16.mxu0 %v4314_v51  ;;  %v3763_v23 = vld [vmem:[%s5750_s3] ss:$0 sm:$0xff] }
 0xb73   :  { %v2339_v4 = vpack.c.bf16 %v2334_v47, %v2333_v32  ;;  %v4543_v2 = vpop.eup %4542 }
 0xb74   :  { %v2335_v8 = vmul.f32 %v4543_v2, %v5405_v21  ;;  %v4319_v21 = vld [vmem:[#allocation7 + $0x28] sm:$0xff]  }
 0xb78   :  { %4214 = vmatmul.mubr.msk.bf16.vlgmr.msra.gmra.mrb[72].mxu0 %vm760_vm3, %v2339_v4 }
 0xb79   :  { %4224 = vmatpush3.bf16.msra.mxu0 %v4314_v51 }
 0xb7a   :  { %4225 = vmatprep.subr.bf16.mxu0 %v4315_v40 }
 0xb7d   :  { %4226 = vmatpush3.bf16.msra.mxu0 %v4315_v40 }
 0xb7e   :  { %4227 = vmatprep.subr.bf16.mxu0 %v4316_v48 }
 0xb81   :  { %4228 = vmatpush3.bf16.msra.mxu0 %v4316_v48 }
 0xb82   :  { %4229 = vmatprep.subr.bf16.mxu0 %v4317_v34 }
 0xb85   :  { %4230 = vmatpush3.bf16.msra.mxu0 %v4317_v34 }
 0xb86   :  { %4231 = vmatprep.subr.bf16.mxu0 %v4318_v16 }
 0xb89   :  { %4232 = vmatpush3.bf16.msra.mxu0 %v4318_v16  ;;  %v4563_v16 = vld [vmem:[#allocation2 + $0x8] sm:$0xff] }
 0xb8a   :  { %4233 = vmatprep.subr.bf16.mxu0 %v4319_v21 }
 0xb8d   :  { %4234 = vmatpush3.bf16.msra.mxu0 %v4319_v21 }
 0xb8e   :  { %4235 = vmatprep.subr.bf16.mxu0 %v4320_v6 }
 0xb91   :  { %4236 = vmatpush3.bf16.msra.mxu0 %v4320_v6  ;;  %v4564_v6 = vld [vmem:[#allocation2 + $0x10] sm:$0xff] }
 0xb92   :  { %4237 = vmatprep.subr.bf16.mxu0 %v4321_v11 }
 0xb95   :  { %4238 = vmatpush3.bf16.msra.mxu0 %v4321_v11 }
 0xb9d   :  { %v2320_v1 = vpop.xlane.xlu1 %2319 }
 0xb9e   :  { %4544 = vrcp.f32 %v2320_v1  ;;  %v5767_v1 = vpack.c.bf16 %v5106_v54, %v5103_v24  ;;  %v4562_v54 = vld [vmem:[#allocation2] sm:$0xff] }
 0xba1   :  { %v2483_v26 = vpop.permute.xlu1 %2482 }
 0xba2   :  { %4218 = vmatpush3.bf16.msra.mxu1 %v2483_v26 }
 0xba5   :  { %v2540_v42 = vpop.permute.xlu1 %2539 }
 0xba8   :  { %v4545_v22 = vpop.eup %4544 }
 0xba9   :  { %v2336_v53 = vmul.f32 %v4545_v22, %v4529_v43  ;;  %v2552_v52 = vpop.permute.xlu1 %2551 }
 0xbab   :  { %v2340_v19 = vpack.c.bf16 %v2336_v53, %v2335_v8 }
 0xbad   :  { %4220 = vmatmul.mubr.msk.bf16.vlgmr.msra.gmra.mrb[72].mxu1 %vm760_vm3, %v2340_v19 }
 0xbae   :  { %3115 = vmatprep.mubr.bf16.mxu1 %v4723_v63 }
 0xc43   :  { %v2381_v43 = vpop.f32.mrb[68].mxu0  ;;  %v2428_v30 = vpop.f32.mrb[68].mxu1 }
 0xc44   :  { %v4203_v13 = vpop.f32.mrb[69].mxu0  ;;  %v4209_v57 = vpop.f32.mrb[69].mxu1 }
 0xc45   :  { %v2384_v58 = vpop.f32.mrb[70].mxu0  ;;  %v2431_v59 = vpop.f32.mrb[70].mxu1 }
 0xc46   :  { %v2529_v56 = vpack.c.bf16 %v2384_v58, %v2381_v43  ;;  %v2530_v28 = vpack.c.bf16 %v2431_v59, %v2428_v30  ;;  %v4204_v38 = vpop.f32.mrb[71].mxu0  ;;  %v4210_v62 = vpop.f32.mrb[71].mxu1  ;;  %v4565_v30 = vld [vmem:[#allocation2 + $0x18] sm:$0xff] }
 0xc48   :  { %2561 = vrot.lane.b32.xlu0 %v2529_v56, %s4726_s8  ;;  %2563 = vrot.lane.b32.xlu1 %v2530_v28, %s4726_s8 }
 0xc4b   :  { %v2475_v33 = vpop.f32.mrb[72].mxu0 }
 0xc4c   :  { %2541 = vrot.lane.b32.xlu0 %v1539_v25, %s4727_s9  ;;  %v4215_v45 = vpop.f32.mrb[73].mxu0  ;;  %2543 = vrot.lane.b32.xlu1 %v1540_v29, %s4727_s9  ;;  %v2538_v29 = vpop.permute.xlu0 %2537 }
 0xc4d   :  { %v2478_v44 = vpop.f32.mrb[74].mxu0  ;;  %v2571_v50 = vsel %vm559_vm1, %v5764_v27, %v2538_v29  ;;  %v4324_v29 = vld [vmem:[#allocation8 + $0x4] ss:$16 sps:$4 sm:$0xff]   ;;  %v4333_v27 = vld [vmem:[#allocation8 + $0x2c] ss:$16 sps:$4 sm:$0xff]  }
 0xc4e   :  { %v2531_v60 = vpack.c.bf16 %v2478_v44, %v2475_v33  ;;  %v4216_v35 = vpop.f32.mrb[75].mxu0  ;;  %v4566_v33 = vld [vmem:[#allocation2 + $0x20] sm:$0xff]  ;;  %3083 = vmatprep.subr.bf16.mxu1 %v4324_v29 }
 0xc50   :  { %2553 = vrot.lane.b32.xlu0 %v2035_v9, %s4720_s0  ;;  %2555 = vrot.lane.b32.xlu1 %v2036_v18, %s4720_s0  ;;  %v2550_v0 = vpop.permute.xlu0 %2549  ;;  %v5765_v9 = vpack.c.bf16 %v5085_v14, %v5083_v10 }
 0xc51   :  { %v2583_v15 = vsel %vm2581_vm5, %v2571_v50, %v2550_v0  ;;  %v4327_v0 = vld [vmem:[#allocation8 + $0xc] ss:$16 sps:$4 sm:$0xff]   ;;  %v4328_v50 = vld [vmem:[#allocation8 + $0x20] ss:$16 sps:$4 sm:$0xff]  }
 0xc52   :  { %v2574_v55 = vsel %vm559_vm1, %v5765_v9, %v2540_v42  ;;  %v4325_v42 = vld [vmem:[#allocation8 + $0x8] ss:$16 sps:$4 sm:$0xff]   ;;  %3156 = vmatprep.subr.bf16.mxu0 %v4327_v0 }
 0xc53   :  { %v2585_v18 = vsel %vm2581_vm5, %v2574_v55, %v2552_v52  ;;  %v4330_v52 = vld [vmem:[#allocation8 + $0x24] ss:$16 sps:$4 sm:$0xff]   ;;  %v4331_v9 = vld [vmem:[#allocation8 + $0x28] ss:$16 sps:$4 sm:$0xff]  }
 0xc54   :  { %2565 = vrot.lane.b32.xlu0 %v2531_v60, %s4726_s8  ;;  %v4567_v60 = vld [vmem:[#allocation2 + $0x28] sm:$0xff] }
 0xc80   :  { %v2522_v41 = vpop.f32.mrb[72].mxu1 }
 0xc81   :  { %v4221_v12 = vpop.f32.mrb[73].mxu1 }
 0xc82   :  { %v2525_v25 = vpop.f32.mrb[74].mxu1 }
 0xc83   :  { %v2532_v31 = vpack.c.bf16 %v2525_v25, %v2522_v41  ;;  %v4222_v17 = vpop.f32.mrb[75].mxu1  ;;  %v4568_v41 = vld [vmem:[#allocation2 + $0x30] sm:$0xff]  ;;  %v4569_v25 = vld [vmem:[#allocation2 + $0x38] sm:$0xff] }
 0xc84   :  { %v4322_v17 = vld [vmem:[#allocation8] ss:$16 sps:$4 sm:$0xff]  }
 0xc85   :  { %2567 = vrot.lane.b32.xlu1 %v2532_v31, %s4726_s8  ;;  %3084 = vmatpush1.bf16.msra.mxu1 %v4322_v17 }
 0xc86   :  { %3085 = vmatprep.subr.bf16.mxu1 %v4330_v52 }
 0xc89   :  { %3086 = vmatpush1.bf16.msra.mxu1 %v4328_v50 }
 0xcba   :  { %v2562_v46 = vpop.permute.xlu0 %2561  ;;  %v2564_v37 = vpop.permute.xlu1 %2563 }
 0xcbb   :  { %v2595_v39 = vsel %vm2590_vm6, %v2585_v18, %v2564_v37  ;;  %v2592_v36 = vsel %vm2590_vm6, %v2583_v15, %v2562_v46 }
 0xcbc   :  { %4239 = vmatprep.mubr.bf16.mxu0 %v2592_v36 }
 0xcbd   :  { %4240 = vmatmul.mubr.bf16.vlgmr.msra.gmra.mrb[76].mxu0 %v2595_v39 }
 0xcbe   :  { %v2542_v3 = vpop.permute.xlu0 %2541  ;;  %v2544_v47 = vpop.permute.xlu1 %2543  ;;  %3157 = vmatpush1.bf16.msra.mxu0 %v4325_v42 }
 0xcbf   :  { %v2577_v10 = vsel %vm559_vm1, %v5766_v5, %v2542_v3  ;;  %v2580_v26 = vsel %vm559_vm1, %v5767_v1, %v2544_v47  ;;  %3158 = vmatprep.subr.bf16.mxu0 %v4333_v27  ;;  %v4336_v1 = vld [vmem:[#allocation8 + $0x44] ss:$16 sps:$4 sm:$0xff]  }
 0xcc0   :  { %3087 = vmatprep.subr.bf16.mxu1 %v4336_v1 }
 0xcc2   :  { %v2554_v7 = vpop.permute.xlu0 %2553  ;;  %v2556_v4 = vpop.permute.xlu1 %2555  ;;  %3159 = vmatpush1.bf16.msra.mxu0 %v4331_v9 }
 0xcc3   :  { %v2587_v14 = vsel %vm2581_vm5, %v2577_v10, %v2554_v7  ;;  %v2589_v2 = vsel %vm2581_vm5, %v2580_v26, %v2556_v4  ;;  %v4339_v26 = vld [vmem:[#allocation8 + $0x4c] ss:$16 sps:$4 sm:$0xff]  }
 0xcc4   :  { %3160 = vmatprep.subr.bf16.mxu0 %v4339_v26 }
 0xcc6   :  { %v2566_v61 = vpop.permute.xlu0 %2565 }
 0xcc7   :  { %v2598_v32 = vsel %vm2590_vm6, %v2587_v14, %v2566_v61 }
 0xcc8   :  { %4243 = vmatprep.mubr.bf16.mxu0 %v2598_v32 }
 0xcf7   :  { %v2568_v22 = vpop.permute.xlu1 %2567 }
 0xcf8   :  { %v2601_v20 = vsel %vm2590_vm6, %v2589_v2, %v2568_v22  ;;  %v4334_v2 = vld [vmem:[#allocation8 + $0x40] ss:$16 sps:$4 sm:$0xff]   ;;  %v4337_v22 = vld [vmem:[#allocation8 + $0x48] ss:$16 sps:$4 sm:$0xff]  }
 0xcf9   :  { %4244 = vmatmul.mubr.bf16.gmra.mrb[80].mxu0 %v2601_v20  ;;  %3088 = vmatpush1.bf16.msra.mxu1 %v4334_v2  ;;  %v4342_v20 = vld [vmem:[#allocation8 + $0x64] ss:$16 sps:$4 sm:$0xff]  }
 0xcfa   :  { %3188 = vmatprep.mubr.bf16.mxu0 %v4723_v63  ;;  %3161 = vmatpush1.bf16.msra.mxu0 %v4337_v22 }
 0xcfb   :  { %3089 = vmatprep.subr.bf16.mxu1 %v4342_v20 }
 0xd90   :  { %v4241_v8 = vpop.f32.mrb[76].mxu0 }
 0xd91   :  { %v2708_v53 = vpop.f32.mrb[77].mxu0  ;;  %v2717_v24 = vadd.f32 %v4241_v8, %v3763_v23  ;;  %v4340_v8 = vld [vmem:[#allocation8 + $0x60] ss:$16 sps:$4 sm:$0xff]  }
 0xd92   :  { %v2709_v19 = vadd.f32 %v3763_v23, %v2708_v53  ;;  %v4242_v51 = vpop.f32.mrb[78].mxu0  ;;  %v4343_v53 = vld [vmem:[#allocation8 + $0x68] ss:$16 sps:$4 sm:$0xff]   ;;  %3090 = vmatpush1.bf16.msra.mxu1 %v4340_v8 }
 0xd93   :  { %v2711_v40 = vpop.f32.mrb[79].mxu0  ;;  %v5501_v11 = vadd.f32 %v4564_v6, %v2717_v24  ;;  %v2720_v43 = vadd.f32 %v4242_v51, %v3763_v23  ;;  %v4351_v51 = vld [vmem:[#allocation8 + $0x8c] ss:$16 sps:$4 sm:$0xff]   ;;  %v4349_v24 = vld [vmem:[#allocation8 + $0x88] ss:$16 sps:$4 sm:$0xff]  }
 0xd94   :  { %v5496_v48 = vadd.f32 %v4562_v54, %v2709_v19  ;;  %v2712_v34 = vadd.f32 %v3763_v23, %v2711_v40  ;;  %v4348_v19 = vld [vmem:[#allocation8 + $0x84] ss:$16 sps:$4 sm:$0xff]   ;;  %v4346_v40 = vld [vmem:[#allocation8 + $0x80] ss:$16 sps:$4 sm:$0xff]   ;;  %v4355_v6 = vld [vmem:[#allocation8 + $0xa8] ss:$16 sps:$4 sm:$0xff]  }
 0xd95   :  { %v5505_v13 = vadd.f32 %v4565_v30, %v2720_v43  ;;  %3091 = vmatprep.subr.bf16.mxu1 %v4348_v19  ;;  %v4354_v54 = vld [vmem:[#allocation8 + $0xa4] ss:$16 sps:$4 sm:$0xff]   ;;  %v4363_v30 = vld [vmem:[#allocation8 + $0xcc] ss:$16 sps:$4 sm:$0xff]  }
 0xd96   :  { %v5498_v21 = vadd.f32 %v4563_v16, %v2712_v34  ;;  %2749 = vadd.xlane.f32.xlu0 %v5496_v48  ;;  %3092 = vmatpush1.bf16.msra.mxu1 %v4346_v40  ;;  %v4357_v34 = vld [vmem:[#allocation8 + $0xac] ss:$16 sps:$4 sm:$0xff]   ;;  %v4352_v16 = vld [vmem:[#allocation8 + $0xa0] ss:$16 sps:$4 sm:$0xff]   ;;  %v4360_v43 = vld [vmem:[#allocation8 + $0xc4] ss:$16 sps:$4 sm:$0xff]  }
 0xd97   :  { %3093 = vmatprep.subr.bf16.mxu1 %v4354_v54 }
 0xd98   :  { %2751 = vadd.xlane.f32.xlu1 %v5498_v21 }
 0xd9a   :  { %2753 = vadd.xlane.f32.xlu0 %v5501_v11  ;;  %3094 = vmatpush1.bf16.msra.mxu1 %v4352_v16 }
 0xd9b   :  { %3095 = vmatprep.subr.bf16.mxu1 %v4360_v43 }
 0xd9e   :  { %2755 = vadd.xlane.f32.xlu0 %v5505_v13 }
 0xdcc   :  { %v4245_v57 = vpop.f32.mrb[80].mxu0 }
 0xdcd   :  { %v2733_v58 = vadd.f32 %v4245_v57, %v3763_v23  ;;  %v2724_v59 = vpop.f32.mrb[81].mxu0  ;;  %v4358_v57 = vld [vmem:[#allocation8 + $0xc0] ss:$16 sps:$4 sm:$0xff]  }
 0xdce   :  { %v2725_v56 = vadd.f32 %v3763_v23, %v2724_v59  ;;  %v4246_v28 = vpop.f32.mrb[82].mxu0  ;;  %v4366_v59 = vld [vmem:[#allocation8 + $0xe4] ss:$16 sps:$4 sm:$0xff]   ;;  %3096 = vmatpush1.bf16.msra.mxu1 %v4358_v57 }
 0xdcf   :  { %v2736_v38 = vadd.f32 %v4246_v28, %v3763_v23  ;;  %v2727_v62 = vpop.f32.mrb[83].mxu0  ;;  %v5513_v12 = vadd.f32 %v4568_v41, %v2733_v58  ;;  %v4361_v58 = vld [vmem:[#allocation8 + $0xc8] ss:$16 sps:$4 sm:$0xff]   ;;  %v4364_v28 = vld [vmem:[#allocation8 + $0xe0] ss:$16 sps:$4 sm:$0xff]   ;;  %3097 = vmatprep.subr.bf16.mxu1 %v4366_v59 }
 0xdd0   :  { %v5508_v45 = vadd.f32 %v4566_v33, %v2725_v56  ;;  %v2728_v44 = vadd.f32 %v3763_v23, %v2727_v62  ;;  %v4345_v23 = vld [vmem:[#allocation8 + $0x6c] ss:$16 sps:$4 sm:$0xff]   ;;  %v5581_v57 = vld [vmem:[#allocation10 + $0x80] sm:$0xff]  }
 0xdd1   :  { %v5516_v31 = vadd.f32 %v4569_v25, %v2736_v38  ;;  %3162 = vmatprep.subr.bf16.mxu0 %v4345_v23  ;;  %v4369_v56 = vld [vmem:[#allocation8 + $0xec] ss:$16 sps:$4 sm:$0xff]   ;;  %v4367_v38 = vld [vmem:[#allocation8 + $0xe8] ss:$16 sps:$4 sm:$0xff]   ;;  %v5566_v23 = vld [vmem:[%s5757_s10] ss:$0 sm:$0xff] }
 0xdd2   :  { %v5510_v35 = vadd.f32 %v4567_v60, %v2728_v44  ;;  %2757 = vadd.xlane.f32.xlu0 %v5508_v45  ;;  %3163 = vmatpush1.bf16.msra.mxu0 %v4343_v53  ;;  %v5583_v59 = vld [vmem:[#allocation10 + $0xc8] sm:$0xff]  }
 0xdd3   :  { %3164 = vmatprep.subr.bf16.mxu0 %v4351_v51  ;;  %3098 = vmatpush1.bf16.msra.mxu1 %v4364_v28 }
 0xdd4   :  { %2759 = vadd.xlane.f32.xlu1 %v5510_v35 }
 0xdd6   :  { %2761 = vadd.xlane.f32.xlu0 %v5513_v12  ;;  %3165 = vmatpush1.bf16.msra.mxu0 %v4349_v24  ;;  %v5574_v24 = vld [vmem:[%s5758_s11] ss:$0 sm:$0xff] }
 0xdd7   :  { %3166 = vmatprep.subr.bf16.mxu0 %v4357_v34 }
 0xdd8   :  { %2763 = vadd.xlane.f32.xlu1 %v5516_v31 }
 0xdda   :  { %3167 = vmatpush1.bf16.msra.mxu0 %v4355_v6 }
 0xddb   :  { %3168 = vmatprep.subr.bf16.mxu0 %v4363_v30  ;;  %v4372_v30 = vld [vmem:[#allocation10] sm:$0xff]  }
 0xdde   :  { %3169 = vmatpush1.bf16.msra.mxu0 %v4361_v58  ;;  %v4374_v58 = vld [vmem:[#allocation10 + $0x48] sm:$0xff]  }
 0xddf   :  { %3170 = vmatprep.subr.bf16.mxu0 %v4369_v56 }
 0xde2   :  { %3171 = vmatpush1.bf16.msra.mxu0 %v4367_v38  ;;  %v5591_v38 = vld [vmem:[#allocation10 + $0x88] sm:$0xff]  }
 0xe23   :  { %v2750_v55 = vpop.xlane.xlu0 %2749 }
 0xe24   :  { %v2765_v15 = vmul.f32 0.0078125, %v2750_v55 }
 0xe25   :  { %v2752_v18 = vpop.xlane.xlu1 %2751 }
 0xe26   :  { %v5521_v46 = vsub.f32 %v5496_v48, %v2765_v15  ;;  %v2766_v37 = vmul.f32 0.0078125, %v2752_v18  ;;  %v4370_v18 = vld [vmem:[#allocation10 + $0x40] sm:$0xff]  }
 0xe27   :  { %v2754_v39 = vpop.xlane.xlu0 %2753  ;;  %3927 = vmatprep.subr.bf16.mxu1 %v4370_v18  ;;  %v4388_v18 = vld [vmem:[#allocation10 + $0x20] sm:$0xff]  }
 0xe28   :  { %v5524_v36 = vsub.f32 %v5498_v21, %v2766_v37  ;;  %v2767_v3 = vmul.f32 0.0078125, %v2754_v39  ;;  %v2781_v7 = vmul.f32 %v5521_v46, %v5521_v46  ;;  %v5560_v37 = vld [vmem:[#allocation10 + $0xc0] sm:$0xff]  }
 0xe29   :  { %3967 = vmatprep.subr.bf16.mxu0 %v5560_v37 }
 0xe2a   :  { %v5529_v5 = vsub.f32 %v5501_v11, %v2767_v3  ;;  %2789 = vadd.xlane.f32.xlu0 %v2781_v7  ;;  %v2782_v10 = vmul.f32 %v5524_v36, %v5524_v36 }
 0xe2b   :  { %v2756_v14 = vpop.xlane.xlu0 %2755 }
 0xe2c   :  { %v2768_v61 = vmul.f32 0.0078125, %v2756_v14  ;;  %2791 = vadd.xlane.f32.xlu1 %v2782_v10  ;;  %v2783_v32 = vmul.f32 %v5529_v5, %v5529_v5 }
 0xe2e   :  { %v5536_v47 = vsub.f32 %v5505_v13, %v2768_v61  ;;  %2793 = vadd.xlane.f32.xlu0 %v2783_v32 }
 0xe30   :  { %v2784_v4 = vmul.f32 %v5536_v47, %v5536_v47 }
 0xe32   :  { %2795 = vadd.xlane.f32.xlu1 %v2784_v4 }
 0xe5f   :  { %v2758_v62 = vpop.xlane.xlu0 %2757 }
 0xe60   :  { %v2769_v33 = vmul.f32 0.0078125, %v2758_v62  ;;  %v4378_v62 = vld [vmem:[#allocation10 + $0x50] sm:$0xff]  }
 0xe61   :  { %v2760_v44 = vpop.xlane.xlu1 %2759 }
 0xe62   :  { %v5541_v60 = vsub.f32 %v5508_v45, %v2769_v33  ;;  %v2770_v41 = vmul.f32 0.0078125, %v2760_v44  ;;  %v5594_v33 = vld [vmem:[#allocation10 + $0xd0] sm:$0xff]  }
 0xe63   :  { %v2762_v25 = vpop.xlane.xlu0 %2761 }
 0xe64   :  { %v5544_v17 = vsub.f32 %v5510_v35, %v2770_v41  ;;  %v2771_v29 = vmul.f32 0.0078125, %v2762_v25  ;;  %v2785_v42 = vmul.f32 %v5541_v60, %v5541_v60  ;;  %v4380_v25 = vld [vmem:[#allocation10 + $0x10] sm:$0xff]  }
 0xe65   :  { %v2764_v0 = vpop.xlane.xlu1 %2763 }
 0xe66   :  { %v5549_v52 = vsub.f32 %v5513_v12, %v2771_v29  ;;  %v2772_v27 = vmul.f32 0.0078125, %v2764_v0  ;;  %2797 = vadd.xlane.f32.xlu0 %v2785_v42  ;;  %v2786_v50 = vmul.f32 %v5544_v17, %v5544_v17  ;;  %v5598_v29 = vld [vmem:[#allocation10 + $0x90] sm:$0xff]   ;;  %v4382_v42 = vld [vmem:[#allocation10 + $0x58] sm:$0xff]  }
 0xe67   :  { %v5601_v0 = vld [vmem:[#allocation10 + $0xd8] sm:$0xff]  }
 0xe68   :  { %v5554_v9 = vsub.f32 %v5516_v31, %v2772_v27  ;;  %2799 = vadd.xlane.f32.xlu1 %v2786_v50  ;;  %v2787_v55 = vmul.f32 %v5549_v52, %v5549_v52  ;;  %v4384_v27 = vld [vmem:[#allocation10 + $0x18] sm:$0xff]  }
 0xe69   :  { %v5606_v50 = vld [vmem:[#allocation10 + $0x98] sm:$0xff]  }
 0xe6a   :  { %2801 = vadd.xlane.f32.xlu0 %v2787_v55  ;;  %v2788_v15 = vmul.f32 %v5554_v9, %v5554_v9  ;;  %v4386_v55 = vld [vmem:[#allocation10 + $0x60] sm:$0xff]  }
 0xe6c   :  { %2803 = vadd.xlane.f32.xlu1 %v2788_v15  ;;  %v5609_v15 = vld [vmem:[#allocation10 + $0xe0] sm:$0xff]  }
 0xeb7   :  { %v2790_v39 = vpop.xlane.xlu0 %2789 }
 0xeb8   :  { %v2805_v3 = vmul.f32 0.0078125, %v2790_v39  ;;  %v5612_v39 = vld [vmem:[#allocation10 + $0xa0] sm:$0xff]  }
 0xeb9   :  { %v2792_v7 = vpop.xlane.xlu1 %2791 }
 0xeba   :  { %v2813_v10 = vadd.f32 1e-05, %v2805_v3  ;;  %v2806_v14 = vmul.f32 0.0078125, %v2792_v7  ;;  %v4390_v3 = vld [vmem:[#allocation10 + $0x68] sm:$0xff]  }
 0xebb   :  { %v2794_v61 = vpop.xlane.xlu0 %2793  ;;  %v5615_v7 = vld [vmem:[#allocation10 + $0xe8] sm:$0xff]  }
 0xebc   :  { %4546 = vrsqrt.f32 %v2813_v10  ;;  %v2814_v32 = vadd.f32 1e-05, %v2806_v14  ;;  %v2807_v4 = vmul.f32 0.0078125, %v2794_v61 }
 0xebe   :  { %4548 = vrsqrt.f32 %v2814_v32  ;;  %v2815_v1 = vadd.f32 1e-05, %v2807_v4 }
 0xebf   :  { %v2796_v26 = vpop.xlane.xlu1 %2795 }
 0xec0   :  { %4550 = vrsqrt.f32 %v2815_v1  ;;  %v2808_v2 = vmul.f32 0.0078125, %v2796_v26 }
 0xec2   :  { %v2816_v22 = vadd.f32 1e-05, %v2808_v2 }
 0xec4   :  { %4552 = vrsqrt.f32 %v2816_v22 }
 0xec6   :  { %v4547_v20 = vpop.eup %4546 }
 0xec7   :  { %v2829_v8 = vmul.f32 %v4547_v20, %v5521_v46 }
 0xec8   :  { %v4549_v53 = vpop.eup %4548 }
 0xec9   :  { %v2830_v19 = vmul.f32 %v4549_v53, %v5524_v36  ;;  %v2843_v51 = vmul.f32 %v5566_v23, %v2829_v8 }
 0xeca   :  { %v4551_v40 = vpop.eup %4550 }
 0xecb   :  { %v2844_v54 = vmul.f32 %v5566_v23, %v2830_v19  ;;  %v2857_v34 = vadd.f32 %v5574_v24, %v2843_v51  ;;  %v2831_v6 = vmul.f32 %v4551_v40, %v5529_v5 }
 0xecd   :  { %v2858_v16 = vadd.f32 %v5574_v24, %v2844_v54  ;;  %v2845_v56 = vmul.f32 %v5566_v23, %v2831_v6 }
 0xece   :  { %v4553_v46 = vpop.eup %4552 }
 0xecf   :  { %v2865_v43 = vpack.c.bf16 %v2858_v16, %v2857_v34  ;;  %v2832_v36 = vmul.f32 %v4553_v46, %v5536_v47  ;;  %v4376_v47 = vld [vmem:[#allocation10 + $0x8] sm:$0xff]   ;;  %v2859_v44 = vadd.f32 %v5574_v24, %v2845_v56 }
 0xed1   :  { %3116 = vmatmul.mubr.bf16.vlgmr.msra.gmra.mrb[76].mxu1 %v2865_v43  ;;  %3189 = vmatmul.mubr.bf16.vlgmr.msra.gmra.mrb[84].mxu0 %v2865_v43  ;;  %v2846_v28 = vmul.f32 %v5566_v23, %v2832_v36 }
 0xed2   :  { %3125 = vmatprep.mubr.bf16.mxu1 %v4723_v63  ;;  %3198 = vmatprep.mubr.bf16.mxu0 %v4723_v63 }
 0xed3   :  { %v2860_v5 = vadd.f32 %v5574_v24, %v2846_v28  ;;  %3928 = vmatpush3.bf16.msra.mxu1 %v4372_v30  ;;  %3968 = vmatpush3.bf16.msra.mxu0 %v5581_v57 }
 0xed4   :  { %3929 = vmatprep.subr.bf16.mxu1 %v4374_v58  ;;  %3969 = vmatprep.subr.bf16.mxu0 %v5583_v59 }
 0xed5   :  { %v2866_v41 = vpack.c.bf16 %v2860_v5, %v2859_v44  ;;  %v5636_v44 = vld [vmem:[#allocation10 + $0xf0] sm:$0xff]  }
 0xed7   :  { %3930 = vmatpush3.bf16.msra.mxu1 %v4376_v47  ;;  %3970 = vmatpush3.bf16.msra.mxu0 %v5591_v38 }
 0xed8   :  { %3931 = vmatprep.subr.bf16.mxu1 %v4378_v62  ;;  %3971 = vmatprep.subr.bf16.mxu0 %v5594_v33  ;;  %v4394_v62 = vld [vmem:[#allocation10 + $0x70] sm:$0xff]  }
 0xed9   :  { %3126 = vmatmul.mubr.bf16.gmra.mrb[80].mxu1 %v2866_v41  ;;  %3199 = vmatmul.mubr.bf16.gmra.mrb[88].mxu0 %v2866_v41  ;;  %v5638_v41 = vld [vmem:[#allocation10 + $0xb0] sm:$0xff]  }
 0xeda   :  { %3135 = vmatprep.mubr.bf16.mxu1 %v4723_v63  ;;  %3208 = vmatprep.mubr.bf16.mxu0 %v4723_v63 }
 0xedb   :  { %3932 = vmatpush3.bf16.msra.mxu1 %v4380_v25  ;;  %3972 = vmatpush3.bf16.msra.mxu0 %v5598_v29  ;;  %v4400_v25 = vld [vmem:[#allocation10 + $0x38] sm:$0xff]  }
 0xedc   :  { %3933 = vmatprep.subr.bf16.mxu1 %v4382_v42  ;;  %3973 = vmatprep.subr.bf16.mxu0 %v5601_v0  ;;  %v5644_v42 = vld [vmem:[#allocation10 + $0xb8] sm:$0xff]  }
 0xedf   :  { %3934 = vmatpush3.bf16.msra.mxu1 %v4384_v27  ;;  %3974 = vmatpush3.bf16.msra.mxu0 %v5606_v50  ;;  %v2905_v27 = vsub.s32 0, %v4973_v49 }
 0xee0   :  { %3935 = vmatprep.subr.bf16.mxu1 %v4386_v55  ;;  %3975 = vmatprep.subr.bf16.mxu0 %v5609_v15  ;;  %v2913_v55 = vsub.s32 2, %v4973_v49 }
 0xee3   :  { %3936 = vmatpush3.bf16.msra.mxu1 %v4388_v18  ;;  %3976 = vmatpush3.bf16.msra.mxu0 %v5612_v39  ;;  %v2901_v18 = vld [vmem:[%s5752_s5] sm:$0xf] }
 0xee4   :  { %3937 = vmatprep.subr.bf16.mxu1 %v4390_v3  ;;  %3977 = vmatprep.subr.bf16.mxu0 %v5615_v7  ;;  %v2909_v3 = vsub.s32 1, %v4973_v49 }
 0xef3   :  { %v2798_v10 = vpop.xlane.xlu0 %2797 }
 0xef4   :  { %v2809_v14 = vmul.f32 0.0078125, %v2798_v10  ;;  %v2917_v10 = vsub.s32 3, %v4973_v49 }
 0xef5   :  { %v2800_v61 = vpop.xlane.xlu1 %2799 }
 0xef6   :  { %v2817_v32 = vadd.f32 1e-05, %v2809_v14  ;;  %v2810_v4 = vmul.f32 0.0078125, %v2800_v61  ;;  %v5656_v14 = vrot.slane %v2901_v18, %v2905_v27  ;;  %v5658_v61 = vrot.slane %v2901_v18, %v2913_v55 }
 0xef7   :  { %v2802_v1 = vpop.xlane.xlu0 %2801 }
 0xef8   :  { %4554 = vrsqrt.f32 %v2817_v32  ;;  %v2818_v26 = vadd.f32 1e-05, %v2810_v4  ;;  %v2811_v2 = vmul.f32 0.0078125, %v2802_v1  ;;  %v5660_v32 = vrot.slane %v2901_v18, %v2909_v3 }
 0xef9   :  { %v2804_v22 = vpop.xlane.xlu1 %2803  ;;  %v5662_v4 = vrot.slane %v2901_v18, %v2917_v10 }
 0xefa   :  { %4556 = vrsqrt.f32 %v2818_v26  ;;  %v2819_v20 = vadd.f32 1e-05, %v2811_v2  ;;  %v2812_v8 = vmul.f32 0.0078125, %v2804_v22 }
 0xefc   :  { %4558 = vrsqrt.f32 %v2819_v20  ;;  %v2820_v53 = vadd.f32 1e-05, %v2812_v8 }
 0xefe   :  { %4560 = vrsqrt.f32 %v2820_v53 }
 0xf02   :  { %v4555_v19 = vpop.eup %4554 }
 0xf03   :  { %v2833_v51 = vmul.f32 %v4555_v19, %v5541_v60 }
 0xf04   :  { %v4557_v40 = vpop.eup %4556 }
 0xf05   :  { %v2834_v54 = vmul.f32 %v4557_v40, %v5544_v17  ;;  %v2847_v34 = vmul.f32 %v5566_v23, %v2833_v51 }
 0xf06   :  { %v4559_v16 = vpop.eup %4558 }
 0xf07   :  { %v2848_v6 = vmul.f32 %v5566_v23, %v2834_v54  ;;  %v2861_v43 = vadd.f32 %v5574_v24, %v2847_v34  ;;  %v2835_v30 = vmul.f32 %v4559_v16, %v5549_v52  ;;  %v4392_v52 = vld [vmem:[#allocation10 + $0x28] sm:$0xff]  }
 0xf08   :  { %v4561_v46 = vpop.eup %4560  ;;  %3938 = vmatpush3.bf16.msra.mxu1 %v4392_v52 }
 0xf09   :  { %v2862_v36 = vadd.f32 %v5574_v24, %v2848_v6  ;;  %v2836_v58 = vmul.f32 %v4561_v46, %v5554_v9  ;;  %v2849_v17 = vmul.f32 %v5566_v23, %v2835_v30  ;;  %v5633_v9 = vld [vmem:[#allocation10 + $0xa8] sm:$0xff]   ;;  %3939 = vmatprep.subr.bf16.mxu1 %v4394_v62 }
 0xf0a   :  { %3978 = vmatpush3.bf16.msra.mxu0 %v5633_v9 }
 0xf0b   :  { %v2867_v56 = vpack.c.bf16 %v2862_v36, %v2861_v43  ;;  %v2850_v60 = vmul.f32 %v5566_v23, %v2836_v58  ;;  %v2863_v5 = vadd.f32 %v5574_v24, %v2849_v17  ;;  %v4396_v23 = vld [vmem:[#allocation10 + $0x30] sm:$0xff]   ;;  %3979 = vmatprep.subr.bf16.mxu0 %v5636_v44 }
 0xf0c   :  { %3940 = vmatpush3.bf16.msra.mxu1 %v4396_v23 }
 0xf0d   :  { %3136 = vmatmul.mubr.bf16.gmra.mrb[84].mxu1 %v2867_v56  ;;  %3209 = vmatmul.mubr.bf16.gmra.mrb[92].mxu0 %v2867_v56  ;;  %v2864_v28 = vadd.f32 %v5574_v24, %v2850_v60  ;;  %v5642_v24 = vld [vmem:[#allocation10 + $0xf8] sm:$0xff]  }
 0xf0e   :  { %3145 = vmatprep.mubr.bf16.mxu1 %v4723_v63  ;;  %3218 = vmatprep.mubr.bf16.mxu0 %v4723_v63  ;;  %v4398_v63 = vld [vmem:[#allocation10 + $0x78] sm:$0xff]  }
 0xf0f   :  { %v2868_v47 = vpack.c.bf16 %v2864_v28, %v2863_v5  ;;  %3980 = vmatpush3.bf16.msra.mxu0 %v5638_v41  ;;  %3941 = vmatprep.subr.bf16.mxu1 %v4398_v63 }
 0xf10   :  { %3981 = vmatprep.subr.bf16.mxu0 %v5642_v24  ;;  %3942 = vmatpush3.bf16.msra.mxu1 %v4400_v25 }
 0xf11   :  { %4247 = vmatprep.subr.bf16.mxu1 %v5560_v37 }
 0xf13   :  { %3982 = vmatpush3.bf16.msra.mxu0 %v5644_v42 }
 0xf15   :  { %3146 = vmatmul.mubr.bf16.gmra.mrb[88].mxu1 %v2868_v47  ;;  %3219 = vmatmul.mubr.bf16.gmra.mrb[96].mxu0 %v2868_v47 }
 0xfa4   :  { %v3117_v37 = vpop.f32.mrb[76].mxu1  ;;  %v3190_v1 = vpop.f32.mrb[84].mxu0 }
 0xfa5   :  { %v3118_v26 = vadd.f32 %v3117_v37, %v5656_v14  ;;  %v3191_v2 = vadd.f32 %v3190_v1, %v5658_v61  ;;  %v3119_v22 = vpop.f32.mrb[77].mxu1  ;;  %v3192_v20 = vpop.f32.mrb[85].mxu0 }
 0xfa6   :  { %v3120_v8 = vadd.f32 %v3119_v22, %v5660_v32  ;;  %v3193_v49 = vadd.f32 %v3192_v20, %v5662_v4  ;;  %v3121_v53 = vpop.f32.mrb[78].mxu1  ;;  %v3194_v19 = vpop.f32.mrb[86].mxu0 }
 0xfa7   :  { %v3122_v51 = vadd.f32 %v3121_v53, %v5656_v14  ;;  %v3195_v40 = vadd.f32 %v3194_v19, %v5658_v61  ;;  %v3123_v54 = vpop.f32.mrb[79].mxu1  ;;  %v3196_v34 = vpop.f32.mrb[87].mxu0  ;;  %v3229_v46 = vmax.f32 %v3118_v26, 0.0  ;;  %v3231_v43 = vmax.f32 %v3191_v2, 0.0 }
 0xfa8   :  { %v3124_v16 = vadd.f32 %v3123_v54, %v5660_v32  ;;  %v3197_v6 = vadd.f32 %v3196_v34, %v5662_v4  ;;  %v3230_v58 = vmax.f32 %v3120_v8, 0.0  ;;  %v3232_v56 = vmax.f32 %v3193_v49, 0.0 }
 0xfa9   :  { %v3233_v36 = vmax.f32 %v3122_v51, 0.0  ;;  %v3235_v30 = vmax.f32 %v3195_v40, 0.0 }
 0xfaa   :  { %v3234_v60 = vmax.f32 %v3124_v16, 0.0  ;;  %v3236_v17 = vmax.f32 %v3197_v6, 0.0 }
 0xfab   :  { %v3261_v28 = vpack.c.bf16 %v3233_v36, %v3229_v46  ;;  %v3263_v5 = vpack.c.bf16 %v3235_v30, %v3231_v43 }
 0xfac   :  { %v3262_v47 = vpack.c.bf16 %v3234_v60, %v3230_v58  ;;  %v3264_v52 = vpack.c.bf16 %v3236_v17, %v3232_v56  ;;  %v3127_v62 = vpop.f32.mrb[80].mxu1  ;;  %v3200_v23 = vpop.f32.mrb[88].mxu0 }
 0xfad   :  { %v3128_v63 = vadd.f32 %v3127_v62, %v5656_v14  ;;  %v3201_v25 = vadd.f32 %v3200_v23, %v5658_v61  ;;  %v3129_v27 = vpop.f32.mrb[81].mxu1  ;;  %v3202_v55 = vpop.f32.mrb[89].mxu0 }
 0xfae   :  { %v3130_v18 = vadd.f32 %v3129_v27, %v5660_v32  ;;  %v3203_v3 = vadd.f32 %v3202_v55, %v5662_v4  ;;  %v3131_v10 = vpop.f32.mrb[82].mxu1  ;;  %v3204_v37 = vpop.f32.mrb[90].mxu0  ;;  %3572 = vmatprep.mubr.bf16.mxu1 %v3262_v47  ;;  %3637 = vmatprep.mubr.bf16.mxu0 %v3264_v52 }
 0xfaf   :  { %v3132_v1 = vadd.f32 %v3131_v10, %v5656_v14  ;;  %v3205_v26 = vadd.f32 %v3204_v37, %v5658_v61  ;;  %v3133_v2 = vpop.f32.mrb[83].mxu1  ;;  %v3206_v22 = vpop.f32.mrb[91].mxu0  ;;  %3573 = vmatmul.mubr.bf16.vlgmr.msra.gmra.mrb[92].mxu1 %v3261_v28  ;;  %3638 = vmatmul.mubr.bf16.vlgmr.msra.gmra.mrb[100].mxu0 %v3263_v5  ;;  %v3237_v49 = vmax.f32 %v3128_v63, 0.0  ;;  %v3239_v53 = vmax.f32 %v3201_v25, 0.0 }
 0xfb0   :  { %v3134_v20 = vadd.f32 %v3133_v2, %v5660_v32  ;;  %v3207_v8 = vadd.f32 %v3206_v22, %v5662_v4  ;;  %4255 = vmatpush3.bf16.msra.mxu1 %v5581_v57  ;;  %v3238_v40 = vmax.f32 %v3130_v18, 0.0  ;;  %v3240_v54 = vmax.f32 %v3203_v3, 0.0 }
 0xfb1   :  { %v3241_v19 = vmax.f32 %v3132_v1, 0.0  ;;  %v3243_v51 = vmax.f32 %v3205_v26, 0.0  ;;  %4248 = vmatprep.subr.bf16.mxu1 %v5583_v59 }
 0xfb2   :  { %v3242_v34 = vmax.f32 %v3134_v20, 0.0  ;;  %v3244_v16 = vmax.f32 %v3207_v8, 0.0 }
 0xfb3   :  { %v3265_v6 = vpack.c.bf16 %v3241_v19, %v3237_v49  ;;  %v3267_v46 = vpack.c.bf16 %v3243_v51, %v3239_v53 }
 0xfb4   :  { %v3266_v43 = vpack.c.bf16 %v3242_v34, %v3238_v40  ;;  %v3268_v36 = vpack.c.bf16 %v3244_v16, %v3240_v54  ;;  %4256 = vmatpush3.bf16.msra.mxu1 %v5591_v38 }
 0xfb5   :  { %4249 = vmatprep.subr.bf16.mxu1 %v5594_v33 }
 0xfb6   :  { %3580 = vmatprep.mubr.bf16.mxu1 %v3266_v43  ;;  %3645 = vmatprep.mubr.bf16.mxu0 %v3268_v36 }
 0xfb7   :  { %3581 = vmatmul.mubr.bf16.gmra.mrb[96].mxu1 %v3265_v6  ;;  %3646 = vmatmul.mubr.bf16.gmra.mrb[104].mxu0 %v3267_v46 }
 0xfb8   :  { %4257 = vmatpush3.bf16.msra.mxu1 %v5598_v29 }
 0xfb9   :  { %4250 = vmatprep.subr.bf16.mxu1 %v5601_v0 }
 0xfbc   :  { %4258 = vmatpush3.bf16.msra.mxu1 %v5606_v50 }
 0xfbd   :  { %4251 = vmatprep.subr.bf16.mxu1 %v5609_v15 }
 0xfc0   :  { %4259 = vmatpush3.bf16.msra.mxu1 %v5612_v39 }
 0xfc1   :  { %4252 = vmatprep.subr.bf16.mxu1 %v5615_v7 }
 0xfc4   :  { %4260 = vmatpush3.bf16.msra.mxu1 %v5633_v9 }
 0xfc5   :  { %4253 = vmatprep.subr.bf16.mxu1 %v5636_v44 }
 0xfc8   :  { %4261 = vmatpush3.bf16.msra.mxu1 %v5638_v41 }
 0xfc9   :  { %4254 = vmatprep.subr.bf16.mxu1 %v5642_v24 }
 0xfcc   :  { %4262 = vmatpush3.bf16.msra.mxu1 %v5644_v42 }
 0xfe0   :  { %v3137_v57 = vpop.f32.mrb[84].mxu1  ;;  %v3210_v59 = vpop.f32.mrb[92].mxu0 }
 0xfe1   :  { %v3138_v38 = vadd.f32 %v3137_v57, %v5656_v14  ;;  %v3211_v33 = vadd.f32 %v3210_v59, %v5658_v61  ;;  %v3139_v29 = vpop.f32.mrb[85].mxu1  ;;  %v3212_v0 = vpop.f32.mrb[93].mxu0 }
 0xfe2   :  { %v3140_v50 = vadd.f32 %v3139_v29, %v5660_v32  ;;  %v3213_v15 = vadd.f32 %v3212_v0, %v5662_v4  ;;  %v3141_v39 = vpop.f32.mrb[86].mxu1  ;;  %v3214_v7 = vpop.f32.mrb[94].mxu0 }
 0xfe3   :  { %v3142_v9 = vadd.f32 %v3141_v39, %v5656_v14  ;;  %v3215_v44 = vadd.f32 %v3214_v7, %v5658_v61  ;;  %v3143_v41 = vpop.f32.mrb[87].mxu1  ;;  %v3216_v24 = vpop.f32.mrb[95].mxu0  ;;  %v3245_v58 = vmax.f32 %v3138_v38, 0.0  ;;  %v3247_v56 = vmax.f32 %v3211_v33, 0.0 }
 0xfe4   :  { %v3144_v42 = vadd.f32 %v3143_v41, %v5660_v32  ;;  %v3217_v30 = vadd.f32 %v3216_v24, %v5662_v4  ;;  %v3246_v28 = vmax.f32 %v3140_v50, 0.0  ;;  %v3248_v5 = vmax.f32 %v3213_v15, 0.0 }
 0xfe5   :  { %v3249_v60 = vmax.f32 %v3142_v9, 0.0  ;;  %v3251_v17 = vmax.f32 %v3215_v44, 0.0 }
 0xfe6   :  { %v3250_v47 = vmax.f32 %v3144_v42, 0.0  ;;  %v3252_v52 = vmax.f32 %v3217_v30, 0.0 }
 0xfe7   :  { %v3269_v62 = vpack.c.bf16 %v3249_v60, %v3245_v58  ;;  %v3271_v23 = vpack.c.bf16 %v3251_v17, %v3247_v56 }
 0xfe8   :  { %v3270_v63 = vpack.c.bf16 %v3250_v47, %v3246_v28  ;;  %v3272_v25 = vpack.c.bf16 %v3252_v52, %v3248_v5  ;;  %v3147_v27 = vpop.f32.mrb[88].mxu1  ;;  %v3220_v55 = vpop.f32.mrb[96].mxu0 }
 0xfe9   :  { %v3148_v18 = vadd.f32 %v3147_v27, %v5656_v14  ;;  %v3221_v3 = vadd.f32 %v3220_v55, %v5658_v61  ;;  %v3149_v10 = vpop.f32.mrb[89].mxu1  ;;  %v3222_v37 = vpop.f32.mrb[97].mxu0 }
 0xfea   :  { %v3150_v1 = vadd.f32 %v3149_v10, %v5660_v32  ;;  %v3223_v26 = vadd.f32 %v3222_v37, %v5662_v4  ;;  %v3151_v2 = vpop.f32.mrb[90].mxu1  ;;  %v3224_v22 = vpop.f32.mrb[98].mxu0  ;;  %3588 = vmatprep.mubr.bf16.mxu1 %v3270_v63 }
 0xfeb   :  { %v3152_v20 = vadd.f32 %v3151_v2, %v5656_v14  ;;  %v3225_v8 = vadd.f32 %v3224_v22, %v5658_v61  ;;  %v3153_v49 = vpop.f32.mrb[91].mxu1  ;;  %v3226_v53 = vpop.f32.mrb[99].mxu0  ;;  %3589 = vmatmul.mubr.bf16.gmra.mrb[100].mxu1 %v3269_v62  ;;  %v3253_v40 = vmax.f32 %v3148_v18, 0.0  ;;  %v3255_v54 = vmax.f32 %v3221_v3, 0.0 }
 0xfec   :  { %v3154_v19 = vadd.f32 %v3153_v49, %v5660_v32  ;;  %v3227_v51 = vadd.f32 %v3226_v53, %v5662_v4  ;;  %v3254_v6 = vmax.f32 %v3150_v1, 0.0  ;;  %v3256_v46 = vmax.f32 %v3223_v26, 0.0  ;;  %v5714_v4 = vld [vmem:[%s5754_s7] ss:$0 sm:$0xff]  ;;  %s4728_s7 = smov [#allocation11]  }
 0xfed   :  { %v3257_v34 = vmax.f32 %v3152_v20, 0.0  ;;  %v3259_v16 = vmax.f32 %v3225_v8, 0.0  ;;  %s3691_s21 = sshll.u32 %s4728_s7, 4  ;;  %s3692_s21 = int_to_ptr.vmem [resolvable:$true] %s3691_s21 }
 0xfee   :  { %v3258_v43 = vmax.f32 %v3154_v19, 0.0  ;;  %v3260_v36 = vmax.f32 %v3227_v51, 0.0  ;;  %s4680_s23 = scalar_lea.vmem %s3692_s21, 1024  ;;  %p4685_p13 = scmp.lt.s32.totalorder %s3692_s21, %s3692_s21 }
 0xfef   :  { %v3273_v57 = vpack.c.bf16 %v3257_v34, %v3253_v40  ;;  %v3275_v59 = vpack.c.bf16 %v3259_v16, %v3255_v54  ;;  %p4681_p12 = scmp.ne.s32.totalorder %s3692_s21, %s4680_s23  ;;  %p4686_p0 = scmp.lt.s32.totalorder %s4680_s23, %s4680_s23 }
 0xff0   :  { %v3274_v14 = vpack.c.bf16 %v3258_v43, %v3254_v6  ;;  %v3276_v38 = vpack.c.bf16 %v3260_v36, %v3256_v46 }
 0xff1   :  { %p4687_p1 = por %p4686_p0, %p4685_p13 }
 0xff2   :  { %3596 = vmatprep.mubr.bf16.mxu1 %v3274_v14 }
 0xff3   :  { %3597 = vmatmul.mubr.bf16.gmra.mrb[104].mxu1 %v3273_v57  ;;  %p4688_p2 = pnand %p4687_p1, %p4681_p12 }
 0xff4   :  { %3653 = vmatprep.mubr.bf16.mxu1 %v3272_v25 }
 0xffb   :  { %3654 = vmatmul.mubr.bf16.vlgmr.msra.gmra.mrb[108].mxu1 %v3271_v23 }
 0xffc   :  { %3661 = vmatprep.mubr.bf16.mxu1 %v3276_v38 }
0x1003   :  { %3662 = vmatmul.mubr.bf16.gmra.mrb[112].mxu1 %v3275_v59 }
0x1082   :  { %v3943_v61 = vpop.f32.mrb[92].mxu1  ;;  %v3983_v32 = vpop.f32.mrb[100].mxu0 }
0x1083   :  { %v3944_v33 = vpop.f32.mrb[93].mxu1  ;;  %v3984_v29 = vpop.f32.mrb[101].mxu0 }
0x1084   :  { %v3945_v0 = vadd.f32 %v3944_v33, %v3943_v61  ;;  %v3985_v50 = vadd.f32 %v3984_v29, %v3983_v32  ;;  %v3946_v15 = vpop.f32.mrb[94].mxu1  ;;  %v3986_v39 = vpop.f32.mrb[102].mxu0 }
0x1085   :  { %v3947_v7 = vpop.f32.mrb[95].mxu1  ;;  %v3987_v9 = vpop.f32.mrb[103].mxu0 }
0x1086   :  { %v3575_v44 = vadd.f32 %v3945_v0, %v5714_v4  ;;  %v3948_v41 = vadd.f32 %v3947_v7, %v3946_v15  ;;  %v3988_v24 = vadd.f32 %v3987_v9, %v3986_v39 }
0x1088   :  { %v3640_v42 = vadd.f32 %v3985_v50, %v3575_v44  ;;  %v3578_v30 = vadd.f32 %v3948_v41, %v5714_v4 }
0x108a   :  { %v3670_v58 = vadd.f32 %v3640_v42, %v5496_v48  ;;  %v3643_v56 = vadd.f32 %v3988_v24, %v3578_v30  ;;  %v3949_v60 = vpop.f32.mrb[96].mxu1  ;;  %v3989_v17 = vpop.f32.mrb[104].mxu0 }
0x108b   :  { %v3950_v28 = vpop.f32.mrb[97].mxu1  ;;  %v3990_v5 = vpop.f32.mrb[105].mxu0 }
0x108c   :  { %3678 = vst [vmem:[#allocation11] sm:$0xff] %v3670_v58  ;;  %v3671_v47 = vadd.f32 %v3643_v56, %v5498_v21  ;;  %v3951_v52 = vadd.f32 %v3950_v28, %v3949_v60  ;;  %v3991_v62 = vadd.f32 %v3990_v5, %v3989_v17  ;;  %v3952_v23 = vpop.f32.mrb[98].mxu1  ;;  %v3992_v63 = vpop.f32.mrb[106].mxu0 }
0x108d   :  { %v3953_v25 = vpop.f32.mrb[99].mxu1  ;;  %v3993_v27 = vpop.f32.mrb[107].mxu0 }
0x108e   :  { %3679 = vst [vmem:[#allocation11 + $0x8] sm:$0xff] %v3671_v47  ;;  %v3583_v55 = vadd.f32 %v3951_v52, %v5714_v4  ;;  %v3954_v18 = vadd.f32 %v3953_v25, %v3952_v23  ;;  %v3994_v3 = vadd.f32 %v3993_v27, %v3992_v63 }
0x1090   :  { %v3648_v48 = vadd.f32 %v3991_v62, %v3583_v55  ;;  %v3586_v10 = vadd.f32 %v3954_v18, %v5714_v4 }
0x1092   :  { %v3672_v37 = vadd.f32 %v3648_v48, %v5501_v11  ;;  %v3651_v1 = vadd.f32 %v3994_v3, %v3586_v10 }
0x1094   :  { %3680 = vst [vmem:[#allocation11 + $0x10] sm:$0xff] %v3672_v37  ;;  %v3673_v21 = vadd.f32 %v3651_v1, %v5505_v13 }
0x1096   :  { %3681 = vst [vmem:[#allocation11 + $0x18] sm:$0xff] %v3673_v21 }
0x10be   :  { %v3955_v26 = vpop.f32.mrb[100].mxu1 }
0x10bf   :  { %v3956_v2 = vpop.f32.mrb[101].mxu1 }
0x10c0   :  { %v3957_v22 = vadd.f32 %v3956_v2, %v3955_v26  ;;  %v3958_v20 = vpop.f32.mrb[102].mxu1 }
0x10c1   :  { %v3959_v8 = vpop.f32.mrb[103].mxu1 }
0x10c2   :  { %v3960_v49 = vadd.f32 %v3959_v8, %v3958_v20  ;;  %v3591_v11 = vadd.f32 %v3957_v22, %v5714_v4 }
0x10c4   :  { %v3594_v36 = vadd.f32 %v3960_v49, %v5714_v4 }
0x10c6   :  { %v3961_v53 = vpop.f32.mrb[104].mxu1 }
0x10c7   :  { %v3962_v19 = vpop.f32.mrb[105].mxu1 }
0x10c8   :  { %v3963_v51 = vadd.f32 %v3962_v19, %v3961_v53  ;;  %v3964_v40 = vpop.f32.mrb[106].mxu1 }
0x10c9   :  { %v3965_v54 = vpop.f32.mrb[107].mxu1 }
0x10ca   :  { %v3966_v34 = vadd.f32 %v3965_v54, %v3964_v40  ;;  %v3599_v29 = vadd.f32 %v3963_v51, %v5714_v4 }
0x10cc   :  { %v3602_v39 = vadd.f32 %v3966_v34, %v5714_v4 }
0x10ce   :  { %v3995_v16 = vpop.f32.mrb[108].mxu1 }
0x10cf   :  { %v3996_v6 = vpop.f32.mrb[109].mxu1 }
0x10d0   :  { %v3997_v46 = vadd.f32 %v3996_v6, %v3995_v16  ;;  %v3998_v43 = vpop.f32.mrb[110].mxu1 }
0x10d1   :  { %v3999_v13 = vpop.f32.mrb[111].mxu1 }
0x10d2   :  { %v3656_v57 = vadd.f32 %v3997_v46, %v3591_v11  ;;  %v4000_v59 = vadd.f32 %v3999_v13, %v3998_v43 }
0x10d4   :  { %v3674_v14 = vadd.f32 %v3656_v57, %v5508_v45  ;;  %v3659_v38 = vadd.f32 %v4000_v59, %v3594_v36 }
0x10d6   :  { %3682 = vst [vmem:[#allocation11 + $0x20] sm:$0xff] %v3674_v14  ;;  %v3675_v61 = vadd.f32 %v3659_v38, %v5510_v35  ;;  %v4001_v32 = vpop.f32.mrb[112].mxu1 }
0x10d7   :  { %v4002_v33 = vpop.f32.mrb[113].mxu1 }
0x10d8   :  { %3683 = vst [vmem:[#allocation11 + $0x28] sm:$0xff] %v3675_v61  ;;  %v4003_v0 = vadd.f32 %v4002_v33, %v4001_v32  ;;  %v4004_v50 = vpop.f32.mrb[114].mxu1 }
0x10d9   :  { %v4005_v15 = vpop.f32.mrb[115].mxu1 }
0x10da   :  { %v3664_v7 = vadd.f32 %v4003_v0, %v3599_v29  ;;  %v4006_v9 = vadd.f32 %v4005_v15, %v4004_v50 }
0x10dc   :  { %v3676_v45 = vadd.f32 %v3664_v7, %v5513_v12  ;;  %v3667_v44 = vadd.f32 %v4006_v9, %v3602_v39 }
0x10de   :  { %3684 = vst [vmem:[#allocation11 + $0x30] sm:$0xff] %v3676_v45  ;;  %v3677_v35 = vadd.f32 %v3667_v44, %v5516_v31 }
0x10e0   :  { %3685 = vst [vmem:[#allocation11 + $0x38] sm:$0xff] %v3677_v35 }
0x10e1   :  { %4691 = shalt.err (!%p4688_p2)
}
0x10e2   :  { %s4692_s26 = scalar_lea.hbm %s5759_s12, 1024 }
0x10e3   :  { %p4693_p3 = scmp.ne.s32.totalorder %s5759_s12, %s4692_s26  ;;  %p4696_p4 = scmp.lt.u32.totalorder %s4692_s26, %s5759_s12 }
0x10e5   :  { %p4698_p5 = pnand %p4696_p4, %p4693_p3 }
0x10e7   :  { %4701 = shalt.err (!%p4698_p5)
}
0x10e8   :  { %3697 = dma.vmem_to_hbm [thread:$0]  %s3692_s21, 1024, %s5759_s12, [#allocation4], %s4717_s4, %s4717_s4, %s4718_s18  }
0x10e9   :  { %4708 = dma.done.wait [#allocation4], 1024  }
0x10ea   :  { %4709 = vsyncadd [#allocation4], 4294966272 }
0x10eb   :  { %3701 = vsyncpa [#allocation3], 1 }
0x10ec   :  { %3702 = vsyncpa [#allocation6], 1 }
0x10ed   :  { %3703 = vsyncpa [#allocation9], 1 }
0x10ee   :  { %3704 = vsyncpa [#allocation4], 1 }

</bundles_post_ra>
